<compile_context>
chip_gen: v7x
topology: tpu7x:2x2x1
jax: 0.10.0
libtpu: 0.0.40
codegen_flags: <defaults>
</compile_context>

<pallas_src>
import functools

import jax
import jax.numpy as jnp
from jax import lax
from jax.experimental import pallas as pl
from jax.experimental.pallas import tpu as pltpu


def _round_up(x, m):
    return (x + m - 1) // m * m


# --------------------------------------------------------------------------- #
# Kernel
# --------------------------------------------------------------------------- #
def bottleneck_kernel(x_ref, m_ref, w1_ref, b1_ref, w2_ref, b2_ref,
                      w3_ref, b3_ref, o_ref, h1_ref, acc_ref, *, W, HALO):
    """relu(bn3(conv3(relu(bn2(conv2(relu(bn1(conv1(x)))))))) + x).

    Shapes per grid step (channels padded to lane multiples, BN scale folded):
      x_ref : (1, Rt, Cp) f32      fused rows of one tile (G whole images)
      m_ref : (Rt, 9)     f32      per-row tap-validity masks (col 4 unused)
      w1_ref: (Cp, Pp)    bf16     b1_ref: (1, Pp) f32
      w2_ref: (9*Pp, Pp)  bf16     b2_ref: (1, Pp) f32   (tap-major layout)
      w3_ref: (Pp, Cp)    bf16     b3_ref: (1, Cp) f32
      o_ref : (1, Rt, Cp) f32
      h1_ref: (Rt + 2*HALO, Pp) bf16   haloed conv1 output (scratch)
      acc_ref:(Rt, Pp)    f32          conv2 accumulator   (scratch)
    """
    f32, bf16 = jnp.float32, jnp.bfloat16
    Rt, Pp = acc_ref.shape

    x = x_ref[0]                                              # (Rt, Cp) f32

    # ---- conv1 (1x1) + bn1 + relu (bf16 MXU operands, f32 accumulate) -------
    h1 = jnp.dot(x.astype(bf16), w1_ref[...], preferred_element_type=f32)
    h1 = jnp.maximum(h1 + b1_ref[...], 0.0)                   # (Rt, Pp) f32

    # ---- haloed h1 scratch ---------------------------------------------------
    # Halo rows are zeroed every step (scratch persists, but with a "parallel"
    # grid axis not every core executes step 0) so masked edge taps read finite
    # data.  All values a *valid* output row reads from the halo / padded rows
    # are killed by the vh/vw masks below.
    h1_ref[0:HALO, :] = jnp.zeros((HALO, Pp), bf16)
    h1_ref[HALO + Rt:HALO + Rt + HALO, :] = jnp.zeros((HALO, Pp), bf16)
    h1_ref[HALO:HALO + Rt, :] = h1.astype(bf16)

    # ---- conv2 (3x3, stride=1, pad=1): 9 per-tap dots, f32 accumulation ------
    acc_ref[...] = jnp.zeros_like(acc_ref)
    t = 0
    for dh in (-1, 0, 1):
        for dw in (-1, 0, 1):
            off = HALO + dh * W + dw                          # static offset
            tap = h1_ref[off:off + Rt, :]                     # (Rt, Pp) bf16
            if not (dh == 0 and dw == 0):
                # mask multiply in f32 (v5e VPU has no bf16 ALU)
                tap = (tap.astype(f32) * m_ref[:, t:t + 1]).astype(bf16)
            acc_ref[...] += jnp.dot(tap, w2_ref[t * Pp:(t + 1) * Pp, :],
                                    preferred_element_type=f32)
            t += 1
    h2 = jnp.maximum(acc_ref[...] + b2_ref[...], 0.0)          # (Rt, Pp) f32

    # ---- conv3 (1x1) + bn3 + residual + relu ---------------------------------
    h3 = jnp.dot(h2.astype(bf16), w3_ref[...], preferred_element_type=f32)
    o_ref[0] = jnp.maximum(h3 + b3_ref[...] + x, 0.0)


# --------------------------------------------------------------------------- #
# One-time parameter preprocessing (BN folding, channel padding, bf16 cast)
# --------------------------------------------------------------------------- #
def preprocess_params(params):
    """params = (w1, s1, b1, w2, s2, b2, w3, s3, b3); BN scale folded into W."""
    w1, s1, b1, w2, s2, b2, w3, s3, b3 = params
    C, P = w1.shape
    Cout = w3.shape[1]
    LANE = 128
    Cp, Pp = _round_up(C, LANE), _round_up(P, LANE)
    f32, bf16 = jnp.float32, jnp.bfloat16

    w1f = w1 * s1                      # (C, P)   scale on output channels
    w2f = w2 * s2[0]                   # (3,3,P,P)
    w3f = w3 * s3                      # (P, Cout)

    w1p = jnp.zeros((Cp, Pp), f32).at[:C, :P].set(w1f).astype(bf16)
    w2p = (jnp.zeros((9, Pp, Pp), f32)
           .at[:, :P, :P].set(w2f.reshape(9, P, P))
           .reshape(9 * Pp, Pp).astype(bf16))
    w3p = jnp.zeros((Pp, Cp), f32).at[:P, :Cout].set(w3f).astype(bf16)
    b1p = jnp.zeros((1, Pp), f32).at[:, :P].set(b1)
    b2p = jnp.zeros((1, Pp), f32).at[:, :P].set(b2)
    b3p = jnp.zeros((1, Cp), f32).at[:, :Cout].set(b3)
    return w1p, b1p, w2p, b2p, w3p, b3p


def _build_masks(G, H, W, Rt):
    """(Rt, 9) f32 tap-validity masks, identical for every (image-aligned) tile."""
    HW = H * W
    hh = jnp.arange(HW, dtype=jnp.int32) // W
    ww = jnp.arange(HW, dtype=jnp.int32) % W
    cols = []
    for dh in (-1, 0, 1):
        for dw in (-1, 0, 1):
            ok_h = jnp.ones((HW,), bool) if dh == 0 else \
                (hh >= 1 if dh == -1 else hh < H - 1)
            ok_w = jnp.ones((HW,), bool) if dw == 0 else \
                (ww >= 1 if dw == -1 else ww < W - 1)
            cols.append((ok_h & ok_w).astype(jnp.float32))
    m = jnp.stack(cols, axis=1)                      # (HW, 9)
    m = jnp.tile(m, (G, 1))                          # (G*HW, 9)
    return jnp.zeros((Rt, 9), jnp.float32).at[:G * HW, :].set(m)


# --------------------------------------------------------------------------- #
# Forward wrapper
# --------------------------------------------------------------------------- #
def bottleneck_forward(x_nchw, prepped, *, images_per_tile=1):
    w1p, b1p, w2p, b2p, w3p, b3p = prepped
    N, C, H, W = x_nchw.shape
    Cp, Pp = w1p.shape
    assert w3p.shape[1] == Cp, "residual add requires inplanes == planes * 4"

    HW = H * W
    G = max(1, min(images_per_tile, N))
    Ntiles = pl.cdiv(N, G)
    Npad = Ntiles * G
    Rt = _round_up(G * HW, 8)
    HALO = _round_up(W + 1, 8)
    f32 = jnp.float32

    # Activations -> NHWC, fuse (h, w), pad batch / rows / channels.
    x = jnp.transpose(x_nchw, (0, 2, 3, 1)).reshape(N, HW, C).astype(f32)
    xp = jnp.zeros((Npad, HW, Cp), f32).at[:N, :, :C].set(x)
    xp = xp.reshape(Ntiles, G * HW, Cp)
    if Rt != G * HW:
        xp = jnp.concatenate(
            [xp, jnp.zeros((Ntiles, Rt - G * HW, Cp), f32)], axis=1)

    masks = _build_masks(G, H, W, Rt)

    # VMEM budget (double-buffered blocks + resident weights + scratch) and cost.
    tile_io_bytes = 2 * Rt * Cp * 4                          # x in + out per step
    w_bytes = (Cp * Pp + 9 * Pp * Pp + Pp * Cp) * 2 + (2 * Pp + Cp) * 4
    mask_bytes = Rt * 9 * 4
    scratch_bytes = (Rt + 2 * HALO) * Pp * 2 + Rt * Pp * 4
    vmem_need = 2 * (tile_io_bytes + mask_bytes + w_bytes) + scratch_bytes + (6 << 20)
    vmem_limit = int(min(max(vmem_need, 16 << 20), 64 << 20))

    flops = 2 * Ntiles * Rt * (Cp * Pp + 9 * Pp * Pp + Pp * Cp)
    bytes_accessed = Ntiles * tile_io_bytes + w_bytes + mask_bytes
    cost = pl.CostEstimate(flops=flops, transcendentals=0,
                           bytes_accessed=bytes_accessed)

    kern = functools.partial(bottleneck_kernel, W=W, HALO=HALO)
    out = pl.pallas_call(
        kern,
        out_shape=jax.ShapeDtypeStruct((Ntiles, Rt, Cp), f32),
        grid_spec=pltpu.PrefetchScalarGridSpec(
            num_scalar_prefetch=0,
            grid=(Ntiles,),
            in_specs=[
                pl.BlockSpec((1, Rt, Cp), lambda n: (n, 0, 0)),     # x tile
                pl.BlockSpec((Rt, 9), lambda n: (0, 0)),            # masks (resident)
                pl.BlockSpec((Cp, Pp), lambda n: (0, 0)),           # w1 (bf16, folded)
                pl.BlockSpec((1, Pp), lambda n: (0, 0)),            # bn1 bias
                pl.BlockSpec((9 * Pp, Pp), lambda n: (0, 0)),       # w2 (tap-major)
                pl.BlockSpec((1, Pp), lambda n: (0, 0)),            # bn2 bias
                pl.BlockSpec((Pp, Cp), lambda n: (0, 0)),           # w3
                pl.BlockSpec((1, Cp), lambda n: (0, 0)),            # bn3 bias
            ],
            out_specs=pl.BlockSpec((1, Rt, Cp), lambda n: (n, 0, 0)),
            scratch_shapes=[
                pltpu.VMEM((Rt + 2 * HALO, Pp), jnp.bfloat16),      # haloed h1
                pltpu.VMEM((Rt, Pp), jnp.float32),                  # conv2 acc
            ],
        ),
        compiler_params=pltpu.CompilerParams(
            dimension_semantics=("parallel",),
            vmem_limit_bytes=vmem_limit),
        cost_estimate=cost,
    )(xp, masks, w1p, b1p, w2p, b2p, w3p, b3p)

    out = out[:, :G * HW, :C].reshape(Npad, HW, C)[:N].reshape(N, H, W, C)
    return jnp.transpose(out, (0, 3, 1, 2))                   # back to NCHW


# --------------------------------------------------------------------------- #
# Synthetic parameters + pure-JAX reference
# --------------------------------------------------------------------------- #
def make_params(key, inplanes, planes, eps=1e-5):
    expansion = 4
    cout = planes * expansion
    ks = jax.random.split(key, 15)

    w1 = 0.2 * jax.random.normal(ks[0], (inplanes, planes), jnp.float32)
    w2 = 0.2 * jax.random.normal(ks[1], (3, 3, planes, planes), jnp.float32)
    w3 = 0.2 * jax.random.normal(ks[2], (planes, cout), jnp.float32)

    def bn(kg, kb, km, kv, c):
        gamma = 1.0 + 0.1 * jax.random.normal(kg, (c,), jnp.float32)
        beta = 0.1 * jax.random.normal(kb, (c,), jnp.float32)
        mean = 0.1 * jax.random.normal(km, (c,), jnp.float32)
        var = jax.random.uniform(kv, (c,), jnp.float32, minval=0.5, maxval=1.5)
        scale = gamma / jnp.sqrt(var + eps)
        bias = beta - mean * scale
        return scale.reshape(1, c), bias.reshape(1, c)

    s1, b1 = bn(ks[3], ks[4], ks[5], ks[6], planes)
    s2, b2 = bn(ks[7], ks[8], ks[9], ks[10], planes)
    s3, b3 = bn(ks[11], ks[12], ks[13], ks[14], cout)
    return w1, s1, b1, w2, s2, b2, w3, s3, b3


def bottleneck_ref(x_nchw, params, matmul_dtype=jnp.float32):
    """Pure-JAX reference (NCHW in/out).  matmul_dtype=bf16 mirrors the kernel's
    bf16-operand / f32-accumulate matmuls; f32 uses HIGHEST precision."""
    w1, s1, b1, w2, s2, b2, w3, s3, b3 = params
    f32 = jnp.float32
    md = matmul_dtype
    prec = lax.Precision.HIGHEST if md == jnp.float32 else None

    x = jnp.transpose(x_nchw, (0, 2, 3, 1)).astype(f32)       # NHWC
    w1f = (w1 * s1).astype(md)
    w2f = (w2 * s2[0]).astype(md)
    w3f = (w3 * s3).astype(md)

    h = jnp.einsum('nhwc,cp->nhwp', x.astype(md), w1f,
                   precision=prec, preferred_element_type=f32)
    h = jnp.maximum(h + b1[0], 0.0)
    h = lax.conv_general_dilated(h.astype(md), w2f, (1, 1), 'SAME',
                                 dimension_numbers=('NHWC', 'HWIO', 'NHWC'),
                                 precision=prec, preferred_element_type=f32)
    h = jnp.maximum(h + b2[0], 0.0)
    h = jnp.einsum('nhwp,pc->nhwc', h.astype(md), w3f,
                   precision=prec, preferred_element_type=f32)
    out = jnp.maximum(h + b3[0] + x, 0.0)
    return jnp.transpose(out, (0, 3, 1, 2))


# --------------------------------------------------------------------------- #
if __name__ == "__main__":
    key = jax.random.PRNGKey(0)
    kx, kp = jax.random.split(key)

    # Bottleneck(inplanes=16, planes=4, stride=1, downsample=None) -> out ch 16.
    N, inplanes, planes, H, W = 2, 16, 4, 16, 16
    x = jax.random.normal(kx, (N, inplanes, H, W), jnp.float32)
    params = make_params(kp, inplanes, planes)

    prepped = preprocess_params(params)                        # one-time folding
    fwd = jax.jit(functools.partial(bottleneck_forward, images_per_tile=1))
    out = jax.block_until_ready(fwd(x, prepped))

    ref_match = bottleneck_ref(x, params, matmul_dtype=jnp.bfloat16)
    ref_full = bottleneck_ref(x, params, matmul_dtype=jnp.float32)

    assert out.shape == (N, planes * 4, H, W)
    if not jnp.allclose(out, ref_match, atol=3e-3, rtol=3e-3):
        err = float(jnp.max(jnp.abs(out - ref_match)))
        raise AssertionError(f"mismatch vs bf16-matched reference (max err {err})")
    if not jnp.allclose(out, ref_full, atol=1e-1, rtol=1e-1):
        err = float(jnp.max(jnp.abs(out - ref_full)))
        raise AssertionError(f"mismatch vs f32 HIGHEST reference (max err {err})")

    print("KERNEL_OK")
</pallas_src>

<mosaic_0001>
module attributes {stable_mosaic.version = 11 : i64} {
  func.func @bottleneck_kernel(%arg0: i32, %arg1: memref<1x256x128xf32, #tpu.memory_space<vmem>>, %arg2: memref<256x9xf32, #tpu.memory_space<vmem>>, %arg3: memref<128x128xbf16, #tpu.memory_space<vmem>>, %arg4: memref<1x128xf32, #tpu.memory_space<vmem>>, %arg5: memref<1152x128xbf16, #tpu.memory_space<vmem>>, %arg6: memref<1x128xf32, #tpu.memory_space<vmem>>, %arg7: memref<128x128xbf16, #tpu.memory_space<vmem>>, %arg8: memref<1x128xf32, #tpu.memory_space<vmem>>, %arg9: memref<1x256x128xf32, #tpu.memory_space<vmem>>, %arg10: memref<304x128xbf16, #tpu.memory_space<vmem>>, %arg11: memref<256x128xf32, #tpu.memory_space<vmem>>) attributes {dimension_semantics = [#tpu.dimension_semantics<parallel>], iteration_bounds = array<i64: 2>, scalar_prefetch = 0 : i64, scratch_operands = 2 : i64, tpu.core_type = #tpu.core_type<tc>, window_params = [{transform_indices = @transform_0, window_bounds = array<i64: 1, 256, 128>}, {pipeline_mode = #tpu.pipeline_mode<synchronous>, transform_indices = @transform_1, window_bounds = array<i64: 256, 9>}, {pipeline_mode = #tpu.pipeline_mode<synchronous>, transform_indices = @transform_2, window_bounds = array<i64: 128, 128>}, {pipeline_mode = #tpu.pipeline_mode<synchronous>, transform_indices = @transform_3, window_bounds = array<i64: 1, 128>}, {pipeline_mode = #tpu.pipeline_mode<synchronous>, transform_indices = @transform_4, window_bounds = array<i64: 1152, 128>}, {pipeline_mode = #tpu.pipeline_mode<synchronous>, transform_indices = @transform_5, window_bounds = array<i64: 1, 128>}, {pipeline_mode = #tpu.pipeline_mode<synchronous>, transform_indices = @transform_6, window_bounds = array<i64: 128, 128>}, {pipeline_mode = #tpu.pipeline_mode<synchronous>, transform_indices = @transform_7, window_bounds = array<i64: 1, 128>}, {transform_indices = @transform_8, window_bounds = array<i64: 1, 256, 128>}]} {
    %c0 = arith.constant 0 : index
    %c0_0 = arith.constant 0 : index
    %c0_1 = arith.constant 0 : index
    %0 = vector.load %arg1[%c0, %c0_0, %c0_1] : memref<1x256x128xf32, #tpu.memory_space<vmem>>, vector<1x256x128xf32>
    %1 = vector.shape_cast %0 : vector<1x256x128xf32> to vector<256x128xf32>
    %2 = arith.truncf %1 : vector<256x128xf32> to vector<256x128xbf16>
    %c0_2 = arith.constant 0 : index
    %c0_3 = arith.constant 0 : index
    %3 = vector.load %arg3[%c0_2, %c0_3] : memref<128x128xbf16, #tpu.memory_space<vmem>>, vector<128x128xbf16>
    %cst = arith.constant dense<0.000000e+00> : vector<256x128xf32>
    %4 = tpu.matmul %2, %3, %cst {dimension_numbers = #tpu.dot_dimension_numbers<[1], [0], [0], [1], [0, 0, 1, 1], [], []>} : vector<256x128xbf16>, vector<128x128xbf16>, vector<256x128xf32> -> vector<256x128xf32>
    %c0_4 = arith.constant 0 : index
    %c0_5 = arith.constant 0 : index
    %5 = vector.load %arg4[%c0_4, %c0_5] : memref<1x128xf32, #tpu.memory_space<vmem>>, vector<1x128xf32>
    %6 = vector.broadcast %5 : vector<1x128xf32> to vector<256x128xf32>
    %7 = arith.addf %4, %6 : vector<256x128xf32>
    %cst_6 = arith.constant 0.000000e+00 : f32
    %8 = vector.broadcast %cst_6 : f32 to vector<256x128xf32>
    %9 = arith.maximumf %7, %8 : vector<256x128xf32>
    %cst_7 = arith.constant 0.000000e+00 : bf16
    %10 = vector.broadcast %cst_7 : bf16 to vector<24x128xbf16>
    %c0_8 = arith.constant 0 : index
    %c0_9 = arith.constant 0 : index
    %11 = vector.load %arg10[%c0_8, %c0_9] : memref<304x128xbf16, #tpu.memory_space<vmem>>, vector<24x128xbf16>
    tpu.vector_store %arg10[%c0_8, %c0_9], %10 {strides = array<i32>} : memref<304x128xbf16, #tpu.memory_space<vmem>>, vector<24x128xbf16>,
    %cst_10 = arith.constant 0.000000e+00 : bf16
    %12 = vector.broadcast %cst_10 : bf16 to vector<24x128xbf16>
    %c280 = arith.constant 280 : index
    %c0_11 = arith.constant 0 : index
    %13 = vector.load %arg10[%c280, %c0_11] : memref<304x128xbf16, #tpu.memory_space<vmem>>, vector<24x128xbf16>
    tpu.vector_store %arg10[%c280, %c0_11], %12 {strides = array<i32>} : memref<304x128xbf16, #tpu.memory_space<vmem>>, vector<24x128xbf16>,
    %14 = arith.truncf %9 : vector<256x128xf32> to vector<256x128xbf16>
    %c24 = arith.constant 24 : index
    %c0_12 = arith.constant 0 : index
    %15 = vector.load %arg10[%c24, %c0_12] : memref<304x128xbf16, #tpu.memory_space<vmem>>, vector<256x128xbf16>
    tpu.vector_store %arg10[%c24, %c0_12], %14 {strides = array<i32>} : memref<304x128xbf16, #tpu.memory_space<vmem>>, vector<256x128xbf16>,
    %cst_13 = arith.constant 0.000000e+00 : f32
    %16 = vector.broadcast %cst_13 : f32 to vector<256x128xf32>
    %c0_14 = arith.constant 0 : index
    %c0_15 = arith.constant 0 : index
    %17 = vector.load %arg11[%c0_14, %c0_15] : memref<256x128xf32, #tpu.memory_space<vmem>>, vector<256x128xf32>
    tpu.vector_store %arg11[%c0_14, %c0_15], %16 {strides = array<i32>} : memref<256x128xf32, #tpu.memory_space<vmem>>, vector<256x128xf32>,
    %c7 = arith.constant 7 : index
    %c0_16 = arith.constant 0 : index
    %18 = vector.load %arg10[%c7, %c0_16] : memref<304x128xbf16, #tpu.memory_space<vmem>>, vector<256x128xbf16>
    %19 = arith.extf %18 : vector<256x128xbf16> to vector<256x128xf32>
    %c0_17 = arith.constant 0 : index
    %c0_18 = arith.constant 0 : index
    %20 = vector.load %arg2[%c0_17, %c0_18] : memref<256x9xf32, #tpu.memory_space<vmem>>, vector<256x1xf32>
    %21 = vector.broadcast %20 : vector<256x1xf32> to vector<256x128xf32>
    %22 = arith.mulf %19, %21 : vector<256x128xf32>
    %23 = arith.truncf %22 : vector<256x128xf32> to vector<256x128xbf16>
    %c0_19 = arith.constant 0 : index
    %c0_20 = arith.constant 0 : index
    %24 = vector.load %arg11[%c0_19, %c0_20] : memref<256x128xf32, #tpu.memory_space<vmem>>, vector<256x128xf32>
    %c0_21 = arith.constant 0 : index
    %c0_22 = arith.constant 0 : index
    %25 = vector.load %arg5[%c0_21, %c0_22] : memref<1152x128xbf16, #tpu.memory_space<vmem>>, vector<128x128xbf16>
    %cst_23 = arith.constant dense<0.000000e+00> : vector<256x128xf32>
    %26 = tpu.matmul %23, %25, %cst_23 {dimension_numbers = #tpu.dot_dimension_numbers<[1], [0], [0], [1], [0, 0, 1, 1], [], []>} : vector<256x128xbf16>, vector<128x128xbf16>, vector<256x128xf32> -> vector<256x128xf32>
    %27 = arith.addf %24, %26 : vector<256x128xf32>
    %c0_24 = arith.constant 0 : index
    %c0_25 = arith.constant 0 : index
    %28 = vector.load %arg11[%c0_24, %c0_25] : memref<256x128xf32, #tpu.memory_space<vmem>>, vector<256x128xf32>
    tpu.vector_store %arg11[%c0_24, %c0_25], %27 {strides = array<i32>} : memref<256x128xf32, #tpu.memory_space<vmem>>, vector<256x128xf32>,
    %c8 = arith.constant 8 : index
    %c0_26 = arith.constant 0 : index
    %29 = vector.load %arg10[%c8, %c0_26] : memref<304x128xbf16, #tpu.memory_space<vmem>>, vector<256x128xbf16>
    %30 = arith.extf %29 : vector<256x128xbf16> to vector<256x128xf32>
    %c0_27 = arith.constant 0 : index
    %c1 = arith.constant 1 : index
    %31 = vector.load %arg2[%c0_27, %c1] : memref<256x9xf32, #tpu.memory_space<vmem>>, vector<256x1xf32>
    %32 = vector.broadcast %31 : vector<256x1xf32> to vector<256x128xf32>
    %33 = arith.mulf %30, %32 : vector<256x128xf32>
    %34 = arith.truncf %33 : vector<256x128xf32> to vector<256x128xbf16>
    %c0_28 = arith.constant 0 : index
    %c0_29 = arith.constant 0 : index
    %35 = vector.load %arg11[%c0_28, %c0_29] : memref<256x128xf32, #tpu.memory_space<vmem>>, vector<256x128xf32>
    %c128 = arith.constant 128 : index
    %c0_30 = arith.constant 0 : index
    %36 = vector.load %arg5[%c128, %c0_30] : memref<1152x128xbf16, #tpu.memory_space<vmem>>, vector<128x128xbf16>
    %cst_31 = arith.constant dense<0.000000e+00> : vector<256x128xf32>
    %37 = tpu.matmul %34, %36, %cst_31 {dimension_numbers = #tpu.dot_dimension_numbers<[1], [0], [0], [1], [0, 0, 1, 1], [], []>} : vector<256x128xbf16>, vector<128x128xbf16>, vector<256x128xf32> -> vector<256x128xf32>
    %38 = arith.addf %35, %37 : vector<256x128xf32>
    %c0_32 = arith.constant 0 : index
    %c0_33 = arith.constant 0 : index
    %39 = vector.load %arg11[%c0_32, %c0_33] : memref<256x128xf32, #tpu.memory_space<vmem>>, vector<256x128xf32>
    tpu.vector_store %arg11[%c0_32, %c0_33], %38 {strides = array<i32>} : memref<256x128xf32, #tpu.memory_space<vmem>>, vector<256x128xf32>,
    %c9 = arith.constant 9 : index
    %c0_34 = arith.constant 0 : index
    %40 = vector.load %arg10[%c9, %c0_34] : memref<304x128xbf16, #tpu.memory_space<vmem>>, vector<256x128xbf16>
    %41 = arith.extf %40 : vector<256x128xbf16> to vector<256x128xf32>
    %c0_35 = arith.constant 0 : index
    %c2 = arith.constant 2 : index
    %42 = vector.load %arg2[%c0_35, %c2] : memref<256x9xf32, #tpu.memory_space<vmem>>, vector<256x1xf32>
    %43 = vector.broadcast %42 : vector<256x1xf32> to vector<256x128xf32>
    %44 = arith.mulf %41, %43 : vector<256x128xf32>
    %45 = arith.truncf %44 : vector<256x128xf32> to vector<256x128xbf16>
    %c0_36 = arith.constant 0 : index
    %c0_37 = arith.constant 0 : index
    %46 = vector.load %arg11[%c0_36, %c0_37] : memref<256x128xf32, #tpu.memory_space<vmem>>, vector<256x128xf32>
    %c256 = arith.constant 256 : index
    %c0_38 = arith.constant 0 : index
    %47 = vector.load %arg5[%c256, %c0_38] : memref<1152x128xbf16, #tpu.memory_space<vmem>>, vector<128x128xbf16>
    %cst_39 = arith.constant dense<0.000000e+00> : vector<256x128xf32>
    %48 = tpu.matmul %45, %47, %cst_39 {dimension_numbers = #tpu.dot_dimension_numbers<[1], [0], [0], [1], [0, 0, 1, 1], [], []>} : vector<256x128xbf16>, vector<128x128xbf16>, vector<256x128xf32> -> vector<256x128xf32>
    %49 = arith.addf %46, %48 : vector<256x128xf32>
    %c0_40 = arith.constant 0 : index
    %c0_41 = arith.constant 0 : index
    %50 = vector.load %arg11[%c0_40, %c0_41] : memref<256x128xf32, #tpu.memory_space<vmem>>, vector<256x128xf32>
    tpu.vector_store %arg11[%c0_40, %c0_41], %49 {strides = array<i32>} : memref<256x128xf32, #tpu.memory_space<vmem>>, vector<256x128xf32>,
    %c23 = arith.constant 23 : index
    %c0_42 = arith.constant 0 : index
    %51 = vector.load %arg10[%c23, %c0_42] : memref<304x128xbf16, #tpu.memory_space<vmem>>, vector<256x128xbf16>
    %52 = arith.extf %51 : vector<256x128xbf16> to vector<256x128xf32>
    %c0_43 = arith.constant 0 : index
    %c3 = arith.constant 3 : index
    %53 = vector.load %arg2[%c0_43, %c3] : memref<256x9xf32, #tpu.memory_space<vmem>>, vector<256x1xf32>
    %54 = vector.broadcast %53 : vector<256x1xf32> to vector<256x128xf32>
    %55 = arith.mulf %52, %54 : vector<256x128xf32>
    %56 = arith.truncf %55 : vector<256x128xf32> to vector<256x128xbf16>
    %c0_44 = arith.constant 0 : index
    %c0_45 = arith.constant 0 : index
    %57 = vector.load %arg11[%c0_44, %c0_45] : memref<256x128xf32, #tpu.memory_space<vmem>>, vector<256x128xf32>
    %c384 = arith.constant 384 : index
    %c0_46 = arith.constant 0 : index
    %58 = vector.load %arg5[%c384, %c0_46] : memref<1152x128xbf16, #tpu.memory_space<vmem>>, vector<128x128xbf16>
    %cst_47 = arith.constant dense<0.000000e+00> : vector<256x128xf32>
    %59 = tpu.matmul %56, %58, %cst_47 {dimension_numbers = #tpu.dot_dimension_numbers<[1], [0], [0], [1], [0, 0, 1, 1], [], []>} : vector<256x128xbf16>, vector<128x128xbf16>, vector<256x128xf32> -> vector<256x128xf32>
    %60 = arith.addf %57, %59 : vector<256x128xf32>
    %c0_48 = arith.constant 0 : index
    %c0_49 = arith.constant 0 : index
    %61 = vector.load %arg11[%c0_48, %c0_49] : memref<256x128xf32, #tpu.memory_space<vmem>>, vector<256x128xf32>
    tpu.vector_store %arg11[%c0_48, %c0_49], %60 {strides = array<i32>} : memref<256x128xf32, #tpu.memory_space<vmem>>, vector<256x128xf32>,
    %c24_50 = arith.constant 24 : index
    %c0_51 = arith.constant 0 : index
    %62 = vector.load %arg10[%c24_50, %c0_51] : memref<304x128xbf16, #tpu.memory_space<vmem>>, vector<256x128xbf16>
    %c0_52 = arith.constant 0 : index
    %c0_53 = arith.constant 0 : index
    %63 = vector.load %arg11[%c0_52, %c0_53] : memref<256x128xf32, #tpu.memory_space<vmem>>, vector<256x128xf32>
    %c512 = arith.constant 512 : index
    %c0_54 = arith.constant 0 : index
    %64 = vector.load %arg5[%c512, %c0_54] : memref<1152x128xbf16, #tpu.memory_space<vmem>>, vector<128x128xbf16>
    %cst_55 = arith.constant dense<0.000000e+00> : vector<256x128xf32>
    %65 = tpu.matmul %62, %64, %cst_55 {dimension_numbers = #tpu.dot_dimension_numbers<[1], [0], [0], [1], [0, 0, 1, 1], [], []>} : vector<256x128xbf16>, vector<128x128xbf16>, vector<256x128xf32> -> vector<256x128xf32>
    %66 = arith.addf %63, %65 : vector<256x128xf32>
    %c0_56 = arith.constant 0 : index
    %c0_57 = arith.constant 0 : index
    %67 = vector.load %arg11[%c0_56, %c0_57] : memref<256x128xf32, #tpu.memory_space<vmem>>, vector<256x128xf32>
    tpu.vector_store %arg11[%c0_56, %c0_57], %66 {strides = array<i32>} : memref<256x128xf32, #tpu.memory_space<vmem>>, vector<256x128xf32>,
    %c25 = arith.constant 25 : index
    %c0_58 = arith.constant 0 : index
    %68 = vector.load %arg10[%c25, %c0_58] : memref<304x128xbf16, #tpu.memory_space<vmem>>, vector<256x128xbf16>
    %69 = arith.extf %68 : vector<256x128xbf16> to vector<256x128xf32>
    %c0_59 = arith.constant 0 : index
    %c5 = arith.constant 5 : index
    %70 = vector.load %arg2[%c0_59, %c5] : memref<256x9xf32, #tpu.memory_space<vmem>>, vector<256x1xf32>
    %71 = vector.broadcast %70 : vector<256x1xf32> to vector<256x128xf32>
    %72 = arith.mulf %69, %71 : vector<256x128xf32>
    %73 = arith.truncf %72 : vector<256x128xf32> to vector<256x128xbf16>
    %c0_60 = arith.constant 0 : index
    %c0_61 = arith.constant 0 : index
    %74 = vector.load %arg11[%c0_60, %c0_61] : memref<256x128xf32, #tpu.memory_space<vmem>>, vector<256x128xf32>
    %c640 = arith.constant 640 : index
    %c0_62 = arith.constant 0 : index
    %75 = vector.load %arg5[%c640, %c0_62] : memref<1152x128xbf16, #tpu.memory_space<vmem>>, vector<128x128xbf16>
    %cst_63 = arith.constant dense<0.000000e+00> : vector<256x128xf32>
    %76 = tpu.matmul %73, %75, %cst_63 {dimension_numbers = #tpu.dot_dimension_numbers<[1], [0], [0], [1], [0, 0, 1, 1], [], []>} : vector<256x128xbf16>, vector<128x128xbf16>, vector<256x128xf32> -> vector<256x128xf32>
    %77 = arith.addf %74, %76 : vector<256x128xf32>
    %c0_64 = arith.constant 0 : index
    %c0_65 = arith.constant 0 : index
    %78 = vector.load %arg11[%c0_64, %c0_65] : memref<256x128xf32, #tpu.memory_space<vmem>>, vector<256x128xf32>
    tpu.vector_store %arg11[%c0_64, %c0_65], %77 {strides = array<i32>} : memref<256x128xf32, #tpu.memory_space<vmem>>, vector<256x128xf32>,
    %c39 = arith.constant 39 : index
    %c0_66 = arith.constant 0 : index
    %79 = vector.load %arg10[%c39, %c0_66] : memref<304x128xbf16, #tpu.memory_space<vmem>>, vector<256x128xbf16>
    %80 = arith.extf %79 : vector<256x128xbf16> to vector<256x128xf32>
    %c0_67 = arith.constant 0 : index
    %c6 = arith.constant 6 : index
    %81 = vector.load %arg2[%c0_67, %c6] : memref<256x9xf32, #tpu.memory_space<vmem>>, vector<256x1xf32>
    %82 = vector.broadcast %81 : vector<256x1xf32> to vector<256x128xf32>
    %83 = arith.mulf %80, %82 : vector<256x128xf32>
    %84 = arith.truncf %83 : vector<256x128xf32> to vector<256x128xbf16>
    %c0_68 = arith.constant 0 : index
    %c0_69 = arith.constant 0 : index
    %85 = vector.load %arg11[%c0_68, %c0_69] : memref<256x128xf32, #tpu.memory_space<vmem>>, vector<256x128xf32>
    %c768 = arith.constant 768 : index
    %c0_70 = arith.constant 0 : index
    %86 = vector.load %arg5[%c768, %c0_70] : memref<1152x128xbf16, #tpu.memory_space<vmem>>, vector<128x128xbf16>
    %cst_71 = arith.constant dense<0.000000e+00> : vector<256x128xf32>
    %87 = tpu.matmul %84, %86, %cst_71 {dimension_numbers = #tpu.dot_dimension_numbers<[1], [0], [0], [1], [0, 0, 1, 1], [], []>} : vector<256x128xbf16>, vector<128x128xbf16>, vector<256x128xf32> -> vector<256x128xf32>
    %88 = arith.addf %85, %87 : vector<256x128xf32>
    %c0_72 = arith.constant 0 : index
    %c0_73 = arith.constant 0 : index
    %89 = vector.load %arg11[%c0_72, %c0_73] : memref<256x128xf32, #tpu.memory_space<vmem>>, vector<256x128xf32>
    tpu.vector_store %arg11[%c0_72, %c0_73], %88 {strides = array<i32>} : memref<256x128xf32, #tpu.memory_space<vmem>>, vector<256x128xf32>,
    %c40 = arith.constant 40 : index
    %c0_74 = arith.constant 0 : index
    %90 = vector.load %arg10[%c40, %c0_74] : memref<304x128xbf16, #tpu.memory_space<vmem>>, vector<256x128xbf16>
    %91 = arith.extf %90 : vector<256x128xbf16> to vector<256x128xf32>
    %c0_75 = arith.constant 0 : index
    %c7_76 = arith.constant 7 : index
    %92 = vector.load %arg2[%c0_75, %c7_76] : memref<256x9xf32, #tpu.memory_space<vmem>>, vector<256x1xf32>
    %93 = vector.broadcast %92 : vector<256x1xf32> to vector<256x128xf32>
    %94 = arith.mulf %91, %93 : vector<256x128xf32>
    %95 = arith.truncf %94 : vector<256x128xf32> to vector<256x128xbf16>
    %c0_77 = arith.constant 0 : index
    %c0_78 = arith.constant 0 : index
    %96 = vector.load %arg11[%c0_77, %c0_78] : memref<256x128xf32, #tpu.memory_space<vmem>>, vector<256x128xf32>
    %c896 = arith.constant 896 : index
    %c0_79 = arith.constant 0 : index
    %97 = vector.load %arg5[%c896, %c0_79] : memref<1152x128xbf16, #tpu.memory_space<vmem>>, vector<128x128xbf16>
    %cst_80 = arith.constant dense<0.000000e+00> : vector<256x128xf32>
    %98 = tpu.matmul %95, %97, %cst_80 {dimension_numbers = #tpu.dot_dimension_numbers<[1], [0], [0], [1], [0, 0, 1, 1], [], []>} : vector<256x128xbf16>, vector<128x128xbf16>, vector<256x128xf32> -> vector<256x128xf32>
    %99 = arith.addf %96, %98 : vector<256x128xf32>
    %c0_81 = arith.constant 0 : index
    %c0_82 = arith.constant 0 : index
    %100 = vector.load %arg11[%c0_81, %c0_82] : memref<256x128xf32, #tpu.memory_space<vmem>>, vector<256x128xf32>
    tpu.vector_store %arg11[%c0_81, %c0_82], %99 {strides = array<i32>} : memref<256x128xf32, #tpu.memory_space<vmem>>, vector<256x128xf32>,
    %c41 = arith.constant 41 : index
    %c0_83 = arith.constant 0 : index
    %101 = vector.load %arg10[%c41, %c0_83] : memref<304x128xbf16, #tpu.memory_space<vmem>>, vector<256x128xbf16>
    %102 = arith.extf %101 : vector<256x128xbf16> to vector<256x128xf32>
    %c0_84 = arith.constant 0 : index
    %c8_85 = arith.constant 8 : index
    %103 = vector.load %arg2[%c0_84, %c8_85] : memref<256x9xf32, #tpu.memory_space<vmem>>, vector<256x1xf32>
    %104 = vector.broadcast %103 : vector<256x1xf32> to vector<256x128xf32>
    %105 = arith.mulf %102, %104 : vector<256x128xf32>
    %106 = arith.truncf %105 : vector<256x128xf32> to vector<256x128xbf16>
    %c0_86 = arith.constant 0 : index
    %c0_87 = arith.constant 0 : index
    %107 = vector.load %arg11[%c0_86, %c0_87] : memref<256x128xf32, #tpu.memory_space<vmem>>, vector<256x128xf32>
    %c1024 = arith.constant 1024 : index
    %c0_88 = arith.constant 0 : index
    %108 = vector.load %arg5[%c1024, %c0_88] : memref<1152x128xbf16, #tpu.memory_space<vmem>>, vector<128x128xbf16>
    %cst_89 = arith.constant dense<0.000000e+00> : vector<256x128xf32>
    %109 = tpu.matmul %106, %108, %cst_89 {dimension_numbers = #tpu.dot_dimension_numbers<[1], [0], [0], [1], [0, 0, 1, 1], [], []>} : vector<256x128xbf16>, vector<128x128xbf16>, vector<256x128xf32> -> vector<256x128xf32>
    %110 = arith.addf %107, %109 : vector<256x128xf32>
    %c0_90 = arith.constant 0 : index
    %c0_91 = arith.constant 0 : index
    %111 = vector.load %arg11[%c0_90, %c0_91] : memref<256x128xf32, #tpu.memory_space<vmem>>, vector<256x128xf32>
    tpu.vector_store %arg11[%c0_90, %c0_91], %110 {strides = array<i32>} : memref<256x128xf32, #tpu.memory_space<vmem>>, vector<256x128xf32>,
    %c0_92 = arith.constant 0 : index
    %c0_93 = arith.constant 0 : index
    %112 = vector.load %arg11[%c0_92, %c0_93] : memref<256x128xf32, #tpu.memory_space<vmem>>, vector<256x128xf32>
    %c0_94 = arith.constant 0 : index
    %c0_95 = arith.constant 0 : index
    %113 = vector.load %arg6[%c0_94, %c0_95] : memref<1x128xf32, #tpu.memory_space<vmem>>, vector<1x128xf32>
    %114 = vector.broadcast %113 : vector<1x128xf32> to vector<256x128xf32>
    %115 = arith.addf %112, %114 : vector<256x128xf32>
    %cst_96 = arith.constant 0.000000e+00 : f32
    %116 = vector.broadcast %cst_96 : f32 to vector<256x128xf32>
    %117 = arith.maximumf %115, %116 : vector<256x128xf32>
    %118 = arith.truncf %117 : vector<256x128xf32> to vector<256x128xbf16>
    %c0_97 = arith.constant 0 : index
    %c0_98 = arith.constant 0 : index
    %119 = vector.load %arg7[%c0_97, %c0_98] : memref<128x128xbf16, #tpu.memory_space<vmem>>, vector<128x128xbf16>
    %cst_99 = arith.constant dense<0.000000e+00> : vector<256x128xf32>
    %120 = tpu.matmul %118, %119, %cst_99 {dimension_numbers = #tpu.dot_dimension_numbers<[1], [0], [0], [1], [0, 0, 1, 1], [], []>} : vector<256x128xbf16>, vector<128x128xbf16>, vector<256x128xf32> -> vector<256x128xf32>
    %c0_100 = arith.constant 0 : index
    %c0_101 = arith.constant 0 : index
    %121 = vector.load %arg8[%c0_100, %c0_101] : memref<1x128xf32, #tpu.memory_space<vmem>>, vector<1x128xf32>
    %122 = vector.broadcast %121 : vector<1x128xf32> to vector<256x128xf32>
    %123 = arith.addf %120, %122 : vector<256x128xf32>
    %124 = arith.addf %123, %1 : vector<256x128xf32>
    %cst_102 = arith.constant 0.000000e+00 : f32
    %125 = vector.broadcast %cst_102 : f32 to vector<256x128xf32>
    %126 = arith.maximumf %124, %125 : vector<256x128xf32>
    %c0_103 = arith.constant 0 : index
    %c0_104 = arith.constant 0 : index
    %c0_105 = arith.constant 0 : index
    %127 = vector.load %arg9[%c0_103, %c0_104, %c0_105] : memref<1x256x128xf32, #tpu.memory_space<vmem>>, vector<1x256x128xf32>
    %128 = vector.shape_cast %127 : vector<1x256x128xf32> to vector<256x128xf32>
    %129 = vector.shape_cast %126 : vector<256x128xf32> to vector<1x256x128xf32>
    tpu.vector_store %arg9[%c0_103, %c0_104, %c0_105], %129 {strides = array<i32>} : memref<1x256x128xf32, #tpu.memory_space<vmem>>, vector<1x256x128xf32>,
    return
  }
  func.func @transform_0(%arg0: i32) -> (i32, i32, i32) {
    %c0_i32 = arith.constant 0 : i32
    %c0_i32_0 = arith.constant 0 : i32
    %c0_i32_1 = arith.constant 0 : i32
    return %arg0, %c0_i32, %c0_i32_0 : i32, i32, i32
  }
  func.func @transform_1(%arg0: i32) -> (i32, i32) {
    %c0_i32 = arith.constant 0 : i32
    %c0_i32_0 = arith.constant 0 : i32
    %c0_i32_1 = arith.constant 0 : i32
    return %c0_i32, %c0_i32_0 : i32, i32
  }
  func.func @transform_2(%arg0: i32) -> (i32, i32) {
    %c0_i32 = arith.constant 0 : i32
    %c0_i32_0 = arith.constant 0 : i32
    %c0_i32_1 = arith.constant 0 : i32
    return %c0_i32, %c0_i32_0 : i32, i32
  }
  func.func @transform_3(%arg0: i32) -> (i32, i32) {
    %c0_i32 = arith.constant 0 : i32
    %c0_i32_0 = arith.constant 0 : i32
    %c0_i32_1 = arith.constant 0 : i32
    return %c0_i32, %c0_i32_0 : i32, i32
  }
  func.func @transform_4(%arg0: i32) -> (i32, i32) {
    %c0_i32 = arith.constant 0 : i32
    %c0_i32_0 = arith.constant 0 : i32
    %c0_i32_1 = arith.constant 0 : i32
    return %c0_i32, %c0_i32_0 : i32, i32
  }
  func.func @transform_5(%arg0: i32) -> (i32, i32) {
    %c0_i32 = arith.constant 0 : i32
    %c0_i32_0 = arith.constant 0 : i32
    %c0_i32_1 = arith.constant 0 : i32
    return %c0_i32, %c0_i32_0 : i32, i32
  }
  func.func @transform_6(%arg0: i32) -> (i32, i32) {
    %c0_i32 = arith.constant 0 : i32
    %c0_i32_0 = arith.constant 0 : i32
    %c0_i32_1 = arith.constant 0 : i32
    return %c0_i32, %c0_i32_0 : i32, i32
  }
  func.func @transform_7(%arg0: i32) -> (i32, i32) {
    %c0_i32 = arith.constant 0 : i32
    %c0_i32_0 = arith.constant 0 : i32
    %c0_i32_1 = arith.constant 0 : i32
    return %c0_i32, %c0_i32_0 : i32, i32
  }
  func.func @transform_8(%arg0: i32) -> (i32, i32, i32) {
    %c0_i32 = arith.constant 0 : i32
    %c0_i32_0 = arith.constant 0 : i32
    %c0_i32_1 = arith.constant 0 : i32
    return %arg0, %c0_i32, %c0_i32_0 : i32, i32, i32
  }
}

</mosaic_0001>

<bundles_post_ra>
// kernel: bottleneck_forward.1
= control target key start
LH: loop header
LB: loop body
LE: loop exit
PB: predicated region body
PF: predicated region fallthrough
CT: control target
= control target key end

     0   :  { %s9665_s27 = smov 0   ;;  %s13331_s0 = inlined_call_operand.vmem [shape: f32[2,256,128], index: 0, kind: input, shape index: {}]   ;;  %s13332_s1 = inlined_call_operand.vmem [shape: f32[256,9], index: 1, kind: input, shape index: {}]   ;;  %s13333_s2 = inlined_call_operand.vmem [shape: bf16[128,128], index: 2, kind: input, shape index: {}]   ;;  %s13334_s3 = inlined_call_operand.vmem [shape: f32[1,128], index: 3, kind: input, shape index: {}]   ;;  %s13335_s4 = inlined_call_operand.vmem [shape: bf16[1152,128], index: 4, kind: input, shape index: {}]   ;;  %s13336_s5 = inlined_call_operand.vmem [shape: f32[1,128], index: 5, kind: input, shape index: {}]   ;;  %s13337_s6 = inlined_call_operand.vmem [shape: bf16[128,128], index: 6, kind: input, shape index: {}]   ;;  %s13338_s7 = inlined_call_operand.vmem [shape: f32[1,128], index: 7, kind: input, shape index: {}]   ;;  %s13339_s8 = inlined_call_operand.vmem [shape: f32[2,256,128], index: 8, kind: output, shape index: {}]  }
   0x1 LB: > { %s8226_s28 = sadd.s32 4294967295, %s9610_s27   ;;  %p8230_p0 = scmp.ge.s32.totalorder %s9610_s27, 1  ;;  %s9610_s27 = sphi %s9665_s27, %s18_s27  }
   0x2   : > { %p262_p1 = scmp.lt.s32.totalorder %s9610_s27, 3 }
   0x4   : > { %p263_p2 = pnand %p8230_p0, %p262_p1 }
   0x6   : > { %266 = sbr.rel (%p263_p2) target bundleno = 1295 (0x50f), region = 52 }
   0xd   : > { %v9676_v0 = vld [vmem:[%s13332_s1 + $0x10] sm:$0xff]  ;;  %v9681_v1 = vld [vmem:[%s13332_s1] sm:$0xff]  ;;  %p9683_p3 = scmp.lt.s32.totalorder %s8226_s28, 1  ;;  %v9612_v2 = vmov 0   ;;  %v9695_v4 = vld [vmem:[%s13332_s1 + $0x18] sm:$0xff]  ;;  %vm963_vm0 = vcmask 1046528  }
   0xe   : > { %9411 = vset.pattern.permute.xlu1 %v9612_v2  ;;  %619 = vst [vmem:[#allocation2] sm:$0xff] %v9612_v2  ;;  %620 = vst [vmem:[#allocation2 + $0x8] sm:$0xf] %v9612_v2  ;;  %9410 = vset.pattern.permute.xlu0 %v9612_v2  ;;  %v9472_v3 = vld [vmem:[%s13333_s2] sm:$0xff]   ;;  %v9700_v5 = vld [vmem:[%s13332_s1 + $0x8] sm:$0xff]  ;;  %vm655_vm1 = vcmask 1043456  }
   0xf   : > { %621 = vst [vmem:[#allocation2 + $0x88] sm:$0xf0] %v9612_v2  ;;  %622 = vst [vmem:[#allocation2 + $0x90] sm:$0xff] %v9612_v2  ;;  %845 = vperm.xlu1 %9411, %v9676_v0   ;;  %837 = vperm.xlu0 %9410, %v9681_v1   ;;  %v9473_v6 = vld [vmem:[%s13333_s2 + $0x8] sm:$0xff]   ;;  %s14029_s28 = smov (!%p9683_p3, %s8226_s28), 1  ;;  %v9474_v7 = vld [vmem:[%s13333_s2 + $0x10] sm:$0xff]  }
  0x10   : > { %8594 = vmatprep.subr.bf16.mxu0 %v9472_v3  ;;  %v9717_v8 = vld [vmem:[%s13332_s1 + $0x28] sm:$0xff]  ;;  %v9722_v9 = vld [vmem:[%s13332_s1 + $0x20] sm:$0xff]  ;;  %s8328_s26 = sshll.u32 %s14029_s28, 8  ;;  %v9475_v10 = vld [vmem:[%s13333_s2 + $0x18] sm:$0xff]   ;;  %vm1158_vm2 = vsmask.f32 4352 }
  0x11   : > { %8595 = vmatpush3.bf16.msra.mxu0 %v9472_v3  ;;  %v9733_v11 = vld [vmem:[%s13332_s1 + $0x38] sm:$0xff]  ;;  %v9738_v12 = vld [vmem:[%s13332_s1 + $0x30] sm:$0xff]  ;;  %s9745_s15 = scalar_lea.vmem %s13331_s0, %s8328_s26  ;;  %v9476_v13 = vld [vmem:[%s13333_s2 + $0x20] sm:$0xff]   ;;  %vm2553_vm3 = vcmask 1040384   ;;  %vm2748_vm4 = vsmask.f32 7424  ;;  %s13234_s11 = scalar_lea.vmem %s13339_s8, %s8328_s26 }
  0x12   : > { %8596 = vmatprep.subr.bf16.mxu0 %v9473_v6  ;;  %v307_v14 = vld [vmem:[%s9745_s15] sm:$0xff]  ;;  %v308_v15 = vld [vmem:[%s9745_s15 + $0x8] sm:$0xff]  ;;  %v9772_v20 = vld [vmem:[%s13332_s1 + $0x58] sm:$0xff] }
  0x13   : > { %849 = vperm.xlu1 %9411, %v9695_v4   ;;  %841 = vperm.xlu0 %9410, %v9700_v5   ;;  %v9757_v16 = vld [vmem:[%s13332_s1 + $0x48] sm:$0xff]  ;;  %v9762_v17 = vld [vmem:[%s13332_s1 + $0x40] sm:$0xff]  ;;  %v339_v18 = vpack.c.bf16 %v308_v15, %v307_v14  ;;  %v9777_v21 = vld [vmem:[%s13332_s1 + $0x50] sm:$0xff] }
  0x14   : > { %v9477_v19 = vld [vmem:[%s13333_s2 + $0x28] sm:$0xff]   ;;  %v9478_v22 = vld [vmem:[%s13333_s2 + $0x30] sm:$0xff]   ;;  %v9792_v24 = vld [vmem:[%s13332_s1 + $0x60] sm:$0xff] }
  0x15   : > { %8597 = vmatpush3.bf16.msra.mxu0 %v9473_v6  ;;  %8610 = vmatprep.mubr.bf16.mxu0 %v339_v18  ;;  %v9787_v23 = vld [vmem:[%s13332_s1 + $0x68] sm:$0xff]  ;;  %v9479_v25 = vld [vmem:[%s13333_s2 + $0x38] sm:$0xff]   ;;  %v9807_v27 = vld [vmem:[%s13332_s1 + $0x70] sm:$0xff] }
  0x16   : > { %8598 = vmatprep.subr.bf16.mxu0 %v9474_v7  ;;  %v9802_v26 = vld [vmem:[%s13332_s1 + $0x78] sm:$0xff]  ;;  %v309_v28 = vld [vmem:[%s9745_s15 + $0x10] sm:$0xff]  ;;  %v9814_v30 = vld [vmem:[%s13332_s1 + $0x88] sm:$0xff] }
  0x17   : > { %857 = vperm.xlu1 %9411, %v9717_v8   ;;  %853 = vperm.xlu0 %9410, %v9722_v9   ;;  %v310_v29 = vld [vmem:[%s9745_s15 + $0x18] sm:$0xff]  ;;  %v9819_v31 = vld [vmem:[%s13332_s1 + $0x80] sm:$0xff]  ;;  %v312_v33 = vld [vmem:[%s9745_s15 + $0x28] sm:$0xff] }
  0x18   : > { %v311_v32 = vld [vmem:[%s9745_s15 + $0x20] sm:$0xff]  ;;  %v340_v34 = vpack.c.bf16 %v310_v29, %v309_v28  ;;  %v9828_v36 = vld [vmem:[%s13332_s1 + $0x98] sm:$0xff]  ;;  %v9833_v37 = vld [vmem:[%s13332_s1 + $0x90] sm:$0xff] }
  0x19   : > { %8599 = vmatpush3.bf16.msra.mxu0 %v9474_v7  ;;  %v341_v35 = vpack.c.bf16 %v312_v33, %v311_v32  ;;  %v313_v38 = vld [vmem:[%s9745_s15 + $0x30] sm:$0xff]  ;;  %v314_v39 = vld [vmem:[%s9745_s15 + $0x38] sm:$0xff]  ;;  %v315_v40 = vld [vmem:[%s9745_s15 + $0x40] sm:$0xff] }
  0x1a   : > { %8600 = vmatprep.subr.bf16.mxu0 %v9475_v10  ;;  %v316_v41 = vld [vmem:[%s9745_s15 + $0x48] sm:$0xff]  ;;  %v9849_v43 = vld [vmem:[%s13332_s1 + $0xa0] sm:$0xff]  ;;  %v342_v44 = vpack.c.bf16 %v314_v39, %v313_v38  ;;  %v9856_v46 = vld [vmem:[%s13332_s1 + $0xb8] sm:$0xff] }
  0x1b   : > { %865 = vperm.xlu1 %9411, %v9733_v11   ;;  %861 = vperm.xlu0 %9410, %v9738_v12   ;;  %v9844_v42 = vld [vmem:[%s13332_s1 + $0xa8] sm:$0xff]  ;;  %v343_v45 = vpack.c.bf16 %v316_v41, %v315_v40  ;;  %v9861_v47 = vld [vmem:[%s13332_s1 + $0xb0] sm:$0xff]  ;;  %v318_v49 = vld [vmem:[%s9745_s15 + $0x58] sm:$0xff] }
  0x1c   : > { %v317_v48 = vld [vmem:[%s9745_s15 + $0x50] sm:$0xff]  ;;  %v319_v50 = vld [vmem:[%s9745_s15 + $0x60] sm:$0xff]  ;;  %v320_v51 = vld [vmem:[%s9745_s15 + $0x68] sm:$0xff] }
  0x1d   : > { %8601 = vmatpush3.bf16.msra.mxu0 %v9475_v10  ;;  %v9872_v52 = vld [vmem:[%s13332_s1 + $0xc8] sm:$0xff]  ;;  %v9877_v53 = vld [vmem:[%s13332_s1 + $0xc0] sm:$0xff]  ;;  %v344_v54 = vpack.c.bf16 %v318_v49, %v317_v48  ;;  %v345_v55 = vpack.c.bf16 %v320_v51, %v319_v50  ;;  %v9884_v56 = vld [vmem:[%s13332_s1 + $0xd8] sm:$0xff]  ;;  %v9615_v51 = vmov 5  }
  0x1e   : > { %8602 = vmatprep.subr.bf16.mxu0 %v9476_v13  ;;  %v9889_v57 = vld [vmem:[%s13332_s1 + $0xd0] sm:$0xff]  ;;  %v322_v59 = vld [vmem:[%s9745_s15 + $0x78] sm:$0xff]  ;;  %v323_v60 = vld [vmem:[%s9745_s15 + $0x80] sm:$0xff] }
  0x1f   : > { %873 = vperm.xlu1 %9411, %v9757_v16   ;;  %869 = vperm.xlu0 %9410, %v9762_v17   ;;  %v321_v58 = vld [vmem:[%s9745_s15 + $0x70] sm:$0xff]  ;;  %v324_v61 = vld [vmem:[%s9745_s15 + $0x88] sm:$0xff]  ;;  %v9905_v63 = vld [vmem:[%s13332_s1 + $0xe0] sm:$0xff] }
  0x20   : > { %v9900_v62 = vld [vmem:[%s13332_s1 + $0xe8] sm:$0xff]  ;;  %v346_v2 = vpack.c.bf16 %v322_v59, %v321_v58  ;;  %v347_v3 = vpack.c.bf16 %v324_v61, %v323_v60  ;;  %v9912_v6 = vld [vmem:[%s13332_s1 + $0xf8] sm:$0xff]  ;;  %v9917_v7 = vld [vmem:[%s13332_s1 + $0xf0] sm:$0xff] }
  0x21   : > { %8603 = vmatpush3.bf16.msra.mxu0 %v9476_v13  ;;  %v325_v10 = vld [vmem:[%s9745_s15 + $0x90] sm:$0xff]  ;;  %v326_v13 = vld [vmem:[%s9745_s15 + $0x98] sm:$0xff]  ;;  %v327_v14 = vld [vmem:[%s9745_s15 + $0xa0] sm:$0xff] }
  0x22   : > { %8604 = vmatprep.subr.bf16.mxu0 %v9477_v19  ;;  %v328_v15 = vld [vmem:[%s9745_s15 + $0xa8] sm:$0xff]  ;;  %v348_v18 = vpack.c.bf16 %v326_v13, %v325_v10  ;;  %v329_v28 = vld [vmem:[%s9745_s15 + $0xb0] sm:$0xff]  ;;  %v330_v29 = vld [vmem:[%s9745_s15 + $0xb8] sm:$0xff] }
  0x23   : > { %881 = vperm.xlu1 %9411, %v9772_v20   ;;  %877 = vperm.xlu0 %9410, %v9777_v21   ;;  %v331_v32 = vld [vmem:[%s9745_s15 + $0xc0] sm:$0xff]  ;;  %v332_v33 = vld [vmem:[%s9745_s15 + $0xc8] sm:$0xff]  ;;  %v333_v38 = vld [vmem:[%s9745_s15 + $0xd0] sm:$0xff] }
  0x24   : > { %v334_v39 = vld [vmem:[%s9745_s15 + $0xd8] sm:$0xff]  ;;  %v335_v40 = vld [vmem:[%s9745_s15 + $0xe0] sm:$0xff]  ;;  %v336_v41 = vld [vmem:[%s9745_s15 + $0xe8] sm:$0xff] }
  0x25   : > { %8605 = vmatpush3.bf16.msra.mxu0 %v9477_v19  ;;  %v349_v19 = vpack.c.bf16 %v328_v15, %v327_v14  ;;  %v337_v48 = vld [vmem:[%s9745_s15 + $0xf0] sm:$0xff]  ;;  %v338_v49 = vld [vmem:[%s9745_s15 + $0xf8] sm:$0xff]  ;;  %v9484_v10 = vld [vmem:[%s13335_s4 + $0x20] sm:$0xff]  }
  0x26   : > { %8606 = vmatprep.subr.bf16.mxu0 %v9478_v22  ;;  %v354_v50 = vpack.c.bf16 %v338_v49, %v337_v48  ;;  %v9482_v58 = vld [vmem:[%s13335_s4 + $0x10] sm:$0xff]   ;;  %v9483_v61 = vld [vmem:[%s13335_s4 + $0x18] sm:$0xff]   ;;  %v9485_v15 = vld [vmem:[%s13335_s4 + $0x28] sm:$0xff]  }
  0x27   : > { %889 = vperm.xlu1 %9411, %v9787_v23   ;;  %885 = vperm.xlu0 %9410, %v9792_v24  }
  0x29   : > { %8607 = vmatpush3.bf16.msra.mxu0 %v9478_v22  ;;  %v13342_v22 = vmov 1  }
  0x2a   : > { %8608 = vmatprep.subr.bf16.mxu0 %v9479_v25 }
  0x2b   : > { %897 = vperm.xlu1 %9411, %v9802_v26   ;;  %893 = vperm.xlu0 %9410, %v9807_v27  }
  0x2d   : > { %8609 = vmatpush3.bf16.msra.mxu0 %v9479_v25  ;;  %v13340_v25 = vmov 3  }
  0x2f   : > { %905 = vperm.xlu1 %9411, %v9814_v30   ;;  %901 = vperm.xlu0 %9410, %v9819_v31  }
  0x30   : > { %8611 = vmatmul.mubr.bf16.vlgmr.msra.gmra.mrb[0].mxu0 %v340_v34  ;;  %v350_v34 = vpack.c.bf16 %v330_v29, %v329_v28  ;;  %v9486_v28 = vld [vmem:[%s13335_s4 + $0x30] sm:$0xff]  }
  0x31   : > { %8614 = vmatprep.mubr.bf16.mxu0 %v341_v35  ;;  %v351_v35 = vpack.c.bf16 %v332_v33, %v331_v32 }
  0x33   : > { %913 = vperm.xlu1 %9411, %v9828_v36   ;;  %909 = vperm.xlu0 %9410, %v9833_v37  }
  0x37   : > { %921 = vperm.xlu1 %9411, %v9844_v42   ;;  %917 = vperm.xlu0 %9410, %v9849_v43  }
  0x38   : > { %8615 = vmatmul.mubr.bf16.gmra.mrb[4].mxu0 %v342_v44  ;;  %v352_v44 = vpack.c.bf16 %v334_v39, %v333_v38 }
  0x39   : > { %8618 = vmatprep.mubr.bf16.mxu0 %v343_v45  ;;  %v353_v45 = vpack.c.bf16 %v336_v41, %v335_v40 }
  0x3b   : > { %929 = vperm.xlu1 %9411, %v9856_v46   ;;  %925 = vperm.xlu0 %9410, %v9861_v47  }
  0x3f   : > { %937 = vperm.xlu1 %9411, %v9872_v52   ;;  %933 = vperm.xlu0 %9410, %v9877_v53  }
  0x40   : > { %8619 = vmatmul.mubr.bf16.gmra.mrb[8].mxu0 %v344_v54  ;;  %v9480_v54 = vld [vmem:[%s13335_s4] sm:$0xff]  }
  0x41   : > { %8622 = vmatprep.mubr.bf16.mxu0 %v345_v55  ;;  %8642 = vmatprep.subr.bf16.mxu0 %v9480_v54  ;;  %v9481_v55 = vld [vmem:[%s13335_s4 + $0x8] sm:$0xff]  }
  0x42   : > { %8643 = vmatpush3.bf16.msra.mxu0 %v9480_v54 }
  0x43   : > { %945 = vperm.xlu1 %9411, %v9884_v56   ;;  %941 = vperm.xlu0 %9410, %v9889_v57  }
  0x44   : > { %8644 = vmatprep.subr.bf16.mxu0 %v9481_v55 }
  0x46   : > { %8645 = vmatpush3.bf16.msra.mxu0 %v9481_v55 }
  0x47   : > { %953 = vperm.xlu1 %9411, %v9900_v62   ;;  %949 = vperm.xlu0 %9410, %v9905_v63  }
  0x48   : > { %8623 = vmatmul.mubr.bf16.gmra.mrb[12].mxu0 %v346_v2  ;;  %8646 = vmatprep.subr.bf16.mxu0 %v9482_v58 }
  0x49   : > { %8626 = vmatprep.mubr.bf16.mxu0 %v347_v3 }
  0x4a   : > { %8647 = vmatpush3.bf16.msra.mxu0 %v9482_v58 }
  0x4b   : > { %961 = vperm.xlu1 %9411, %v9912_v6   ;;  %957 = vperm.xlu0 %9410, %v9917_v7  }
  0x4c   : > { %8648 = vmatprep.subr.bf16.mxu0 %v9483_v61 }
  0x4e   : > { %8649 = vmatpush3.bf16.msra.mxu0 %v9483_v61 }
  0x4f   : > { %9412 = vset.pattern.permute.xlu1 %v13342_v22  ;;  %9413 = vset.pattern.permute.xlu0 %v13340_v25 }
  0x50   : > { %1754 = vperm.xlu1 %9412, %v9700_v5   ;;  %3314 = vperm.xlu0 %9413, %v9802_v26  }
  0x51   : > { %8627 = vmatmul.mubr.bf16.gmra.mrb[16].mxu0 %v348_v18  ;;  %8650 = vmatprep.subr.bf16.mxu0 %v9484_v10 }
  0x52   : > { %8630 = vmatprep.mubr.bf16.mxu0 %v349_v19  ;;  %8651 = vmatpush3.bf16.msra.mxu0 %v9484_v10  ;;  %v9489_v10 = vld [vmem:[%s13335_s4 + $0xc8] sm:$0xff]  }
  0x53   : > { %8652 = vmatprep.subr.bf16.mxu0 %v9485_v15 }
  0x54   : > { %1759 = vperm.xlu1 %9412, %v9676_v0   ;;  %3326 = vperm.xlu0 %9413, %v9833_v37  }
  0x56   : > { %8653 = vmatpush3.bf16.msra.mxu0 %v9485_v15  ;;  %v9490_v15 = vld [vmem:[%s13335_s4 + $0xd0] sm:$0xff]  }
  0x57   : > { %8654 = vmatprep.subr.bf16.mxu0 %v9486_v28 }
  0x58   : > { %1769 = vperm.xlu1 %9412, %v9722_v9   ;;  %3334 = vperm.xlu0 %9413, %v9849_v43  }
  0x59   : > { %8631 = vmatmul.mubr.bf16.gmra.mrb[20].mxu0 %v350_v34 }
  0x5a   : > { %8634 = vmatprep.mubr.bf16.mxu0 %v351_v35  ;;  %8655 = vmatpush3.bf16.msra.mxu0 %v9486_v28  ;;  %v9487_v35 = vld [vmem:[%s13335_s4 + $0x38] sm:$0xff]  }
  0x5b   : > { %8656 = vmatprep.subr.bf16.mxu0 %v9487_v35 }
  0x5c   : > { %1779 = vperm.xlu1 %9412, %v9738_v12   ;;  %3342 = vperm.xlu0 %9413, %v9861_v47  }
  0x5e   : > { %8657 = vmatpush3.bf16.msra.mxu0 %v9487_v35 }
  0x60   : > { %9414 = vset.pattern.permute.xlu1 %v13340_v25  ;;  %3350 = vperm.xlu0 %9413, %v9877_v53  }
  0x61   : > { %8635 = vmatmul.mubr.bf16.gmra.mrb[24].mxu0 %v352_v44  ;;  %3318 = vperm.xlu1 %9414, %v9819_v31  }
  0x62   : > { %8638 = vmatprep.mubr.bf16.mxu0 %v353_v45  ;;  %v13344_v45 = vmov 6  }
  0x64   : > { %3358 = vperm.xlu0 %9413, %v9889_v57  }
  0x65   : > { %3322 = vperm.xlu1 %9414, %v9814_v30  }
  0x68   : > { %3366 = vperm.xlu0 %9413, %v9905_v63  }
  0x69   : > { %8639 = vmatmul.mubr.bf16.gmra.mrb[28].mxu0 %v354_v50  ;;  %3330 = vperm.xlu1 %9414, %v9828_v36  }
  0x6c   : > { %3374 = vperm.xlu0 %9413, %v9917_v7  }
  0x6d   : > { %3338 = vperm.xlu1 %9414, %v9844_v42  }
  0x70   : > { %9416 = vset.pattern.permute.xlu0 %v9615_v51 }
  0x71   : > { %3346 = vperm.xlu1 %9414, %v9856_v46   ;;  %4570 = vperm.xlu0 %9416, %v9681_v1  }
  0x75   : > { %3354 = vperm.xlu1 %9414, %v9872_v52   ;;  %4582 = vperm.xlu0 %9416, %v9695_v4  }
  0x79   : > { %3362 = vperm.xlu1 %9414, %v9884_v56   ;;  %4590 = vperm.xlu0 %9416, %v9717_v8  }
  0x7d   : > { %3370 = vperm.xlu1 %9414, %v9900_v62   ;;  %4598 = vperm.xlu0 %9416, %v9733_v11  }
  0x81   : > { %3378 = vperm.xlu1 %9414, %v9912_v6   ;;  %4606 = vperm.xlu0 %9416, %v9757_v16  }
  0x85   : > { %9415 = vset.pattern.permute.xlu1 %v13342_v22  ;;  %4614 = vperm.xlu0 %9416, %v9772_v20  }
  0x86   : > { %1789 = vperm.xlu1 %9415, %v9762_v17  }
  0x89   : > { %4622 = vperm.xlu0 %9416, %v9787_v23  }
  0x8a   : > { %1794 = vperm.xlu1 %9415, %v9757_v16  }
  0x8d   : > { %4630 = vperm.xlu0 %9416, %v9802_v26  }
  0x8e   : > { %1804 = vperm.xlu1 %9415, %v9772_v20   ;;  %v9982_v59 = vpop.permute.xlu1 %845  ;;  %v9984_v60 = vpop.permute.xlu0 %837 }
  0x91   : > { %4638 = vperm.xlu0 %9416, %v9814_v30  }
  0x92   : > { %1814 = vperm.xlu1 %9415, %v9787_v23   ;;  %v9991_v2 = vpop.permute.xlu1 %849  ;;  %v9993_v3 = vpop.permute.xlu0 %841 }
  0x95   : > { %4646 = vperm.xlu0 %9416, %v9828_v36  }
  0x96   : > { %9417 = vset.pattern.permute.xlu1 %v9615_v51  ;;  %v9999_v13 = vpop.permute.xlu1 %857  ;;  %v10001_v14 = vpop.permute.xlu0 %853 }
  0x97   : > { %4574 = vperm.xlu1 %9417, %v9700_v5  }
  0x99   : > { %4654 = vperm.xlu0 %9416, %v9844_v42  }
  0x9a   : > { %v10008_v18 = vpop.permute.xlu1 %865  ;;  %v10010_v19 = vpop.permute.xlu0 %861 }
  0x9b   : > { %4578 = vperm.xlu1 %9417, %v9676_v0  }
  0x9d   : > { %4662 = vperm.xlu0 %9416, %v9856_v46  }
  0x9e   : > { %v10017_v29 = vpop.permute.xlu1 %873  ;;  %v10019_v32 = vpop.permute.xlu0 %869 }
  0x9f   : > { %4586 = vperm.xlu1 %9417, %v9722_v9  }
  0xa1   : > { %4670 = vperm.xlu0 %9416, %v9872_v52  }
  0xa2   : > { %v10023_v33 = vpop.permute.xlu1 %881  ;;  %v10025_v34 = vpop.permute.xlu0 %877 }
  0xa3   : > { %4594 = vperm.xlu1 %9417, %v9738_v12  }
  0xa5   : > { %4678 = vperm.xlu0 %9416, %v9884_v56  }
  0xa6   : > { %v10032_v38 = vpop.permute.xlu1 %889  ;;  %v10034_v39 = vpop.permute.xlu0 %885 }
  0xa7   : > { %4602 = vperm.xlu1 %9417, %v9762_v17  }
  0xa9   : > { %4686 = vperm.xlu0 %9416, %v9900_v62  }
  0xaa   : > { %v10038_v52 = vpop.permute.xlu1 %897  ;;  %v10040_v40 = vpop.permute.xlu0 %893 }
  0xab   : > { %4610 = vperm.xlu1 %9417, %v9777_v21  }
  0xad   : > { %4694 = vperm.xlu0 %9416, %v9912_v6  }
  0xae   : > { %v10044_v41 = vpop.permute.xlu1 %905  ;;  %v10046_v44 = vpop.permute.xlu0 %901 }
  0xaf   : > { %4618 = vperm.xlu1 %9417, %v9792_v24  }
  0xb1   : > { %9419 = vset.pattern.permute.xlu0 %v13344_v45 }
  0xb2   : > { %v10050_v48 = vpop.permute.xlu1 %913  ;;  %5399 = vperm.xlu0 %9419, %v9700_v5   ;;  %v10053_v62 = vpop.permute.xlu0 %909 }
  0xb3   : > { %4626 = vperm.xlu1 %9417, %v9807_v27  }
  0xb6   : > { %v10056_v49 = vpop.permute.xlu1 %921  ;;  %5411 = vperm.xlu0 %9419, %v9722_v9   ;;  %v10059_v50 = vpop.permute.xlu0 %917  ;;  %v9488_v9 = vld [vmem:[%s13335_s4 + $0xc0] sm:$0xff]  }
  0xb7   : > { %4634 = vperm.xlu1 %9417, %v9819_v31   ;;  %9122 = vmatprep.subr.bf16.mxu1 %v9488_v9 }
  0xb8   : > { %9130 = vmatpush3.bf16.msra.mxu1 %v9488_v9 }
  0xb9   : > { %9123 = vmatprep.subr.bf16.mxu1 %v9489_v10 }
  0xba   : > { %v10062_v51 = vpop.permute.xlu1 %929  ;;  %5419 = vperm.xlu0 %9419, %v9738_v12   ;;  %v10065_v54 = vpop.permute.xlu0 %925 }
  0xbb   : > { %4642 = vperm.xlu1 %9417, %v9833_v37  }
  0xbc   : > { %9131 = vmatpush3.bf16.msra.mxu1 %v9489_v10  ;;  %v9491_v10 = vld [vmem:[%s13335_s4 + $0xd8] sm:$0xff]  }
  0xbd   : > { %9124 = vmatprep.subr.bf16.mxu1 %v9490_v15 }
  0xbe   : > { %v10068_v5 = vpop.permute.xlu1 %937  ;;  %5427 = vperm.xlu0 %9419, %v9762_v17   ;;  %v10071_v55 = vpop.permute.xlu0 %933 }
  0xbf   : > { %4650 = vperm.xlu1 %9417, %v9849_v43  }
  0xc0   : > { %9132 = vmatpush3.bf16.msra.mxu1 %v9490_v15  ;;  %v9492_v15 = vld [vmem:[%s13335_s4 + $0xe0] sm:$0xff]  }
  0xc1   : > { %9125 = vmatprep.subr.bf16.mxu1 %v9491_v10 }
  0xc2   : > { %v10077_v58 = vpop.permute.xlu1 %945  ;;  %5435 = vperm.xlu0 %9419, %v9777_v21   ;;  %v10080_v12 = vpop.permute.xlu0 %941 }
  0xc3   : > { %4658 = vperm.xlu1 %9417, %v9861_v47  }
  0xc4   : > { %9133 = vmatpush3.bf16.msra.mxu1 %v9491_v10 }
  0xc5   : > { %9126 = vmatprep.subr.bf16.mxu1 %v9492_v15 }
  0xc6   : > { %v10083_v61 = vpop.permute.xlu1 %953  ;;  %5443 = vperm.xlu0 %9419, %v9792_v24   ;;  %v10086_v17 = vpop.permute.xlu0 %949 }
  0xc7   : > { %4666 = vperm.xlu1 %9417, %v9877_v53  }
  0xc8   : > { %9134 = vmatpush3.bf16.msra.mxu1 %v9492_v15 }
  0xca   : > { %v10095_v28 = vpop.permute.xlu1 %961  ;;  %5451 = vperm.xlu0 %9419, %v9807_v27   ;;  %v10098_v35 = vpop.permute.xlu0 %957 }
  0xcb   : > { %13484 = vst [vmem:[#allocation4_spill] sm:$0xff] %v10095_v28  ;;  %4674 = vperm.xlu1 %9417, %v9889_v57  }
  0xce   : > { %5459 = vperm.xlu0 %9419, %v9819_v31  }
  0xcf   : > { %4682 = vperm.xlu1 %9417, %v9905_v63   ;;  %v10103_v9 = vpop.permute.xlu1 %1754  ;;  %v10105_v25 = vpop.permute.xlu0 %3314  ;;  %v13488_v63 = vmov 6  }
  0xd0   : > { %13485 = vst [vmem:[#allocation5_spill] sm:$0xff] %v10103_v9  ;;  %13486 = vst [vmem:[#allocation6_spill] sm:$0xff] %v10105_v25 }
  0xd2   : > { %5467 = vperm.xlu0 %9419, %v9833_v37  }
  0xd3   : > { %4690 = vperm.xlu1 %9417, %v9917_v7   ;;  %v10109_v22 = vpop.permute.xlu1 %1759  ;;  %v10111_v45 = vpop.permute.xlu0 %3326 }
  0xd4   : > { %13487 = vst [vmem:[#allocation7_spill] sm:$0xff] %v10109_v22 }
  0xd6   : > { %5475 = vperm.xlu0 %9419, %v9849_v43  }
  0xd7   : > { %9418 = vset.pattern.permute.xlu1 %v13488_v63  ;;  %v10118_v9 = vpop.permute.xlu1 %1769  ;;  %v10120_v25 = vpop.permute.xlu0 %3334 }
  0xd8   : > { %13489 = vst [vmem:[#allocation8_spill] sm:$0xff] %v10118_v9  ;;  %5395 = vperm.xlu1 %9418, %v9681_v1  }
  0xda   : > { %5487 = vperm.xlu0 %9419, %v9856_v46  }
  0xdb   : > { %v10124_v37 = vpop.permute.xlu1 %1779  ;;  %v10126_v7 = vpop.permute.xlu0 %3342 }
  0xdc   : > { %13490 = vst [vmem:[#allocation9_spill] sm:$0xff] %v10124_v37  ;;  %5403 = vperm.xlu1 %9418, %v9676_v0   ;;  %v9493_v0 = vld [vmem:[%s13335_s4 + $0xe8] sm:$0xff]  }
  0xdd   : > { %9127 = vmatprep.subr.bf16.mxu1 %v9493_v0 }
  0xde   : > { %5503 = vperm.xlu0 %9419, %v9884_v56   ;;  %9135 = vmatpush3.bf16.msra.mxu1 %v9493_v0  ;;  %v13494_v56 = vmov 1  }
  0xdf   : > { %v10133_v9 = vpop.permute.xlu0 %3350 }
  0xe0   : > { %13491 = vst [vmem:[#allocation10_spill] sm:$0xff] %v10133_v9  ;;  %5407 = vperm.xlu1 %9418, %v9695_v4   ;;  %v10136_v10 = vpop.permute.xlu1 %3318 }
  0xe2   : > { %5519 = vperm.xlu0 %9419, %v9912_v6  }
  0xe3   : > { %v10142_v37 = vpop.permute.xlu0 %3358 }
  0xe4   : > { %13492 = vst [vmem:[#allocation11_spill] sm:$0xff] %v10142_v37  ;;  %5415 = vperm.xlu1 %9418, %v9717_v8   ;;  %v10145_v22 = vpop.permute.xlu1 %3322  ;;  %v9494_v37 = vld [vmem:[%s13335_s4 + $0xf0] sm:$0xff]  }
  0xe5   : > { %13493 = vst [vmem:[#allocation12_spill] sm:$0xff] %v10145_v22  ;;  %9128 = vmatprep.subr.bf16.mxu1 %v9494_v37 }
  0xe6   : > { %9426 = vset.pattern.permute.xlu0 %v13494_v56  ;;  %9136 = vmatpush3.bf16.msra.mxu1 %v9494_v37 }
  0xe7   : > { %1749 = vperm.xlu0 %9426, %v9681_v1   ;;  %v10149_v15 = vpop.permute.xlu0 %3366 }
  0xe8   : > { %13495 = vst [vmem:[#allocation13_spill] sm:$0xff] %v10149_v15  ;;  %5423 = vperm.xlu1 %9418, %v9733_v11   ;;  %v10152_v6 = vpop.permute.xlu1 %3330 }
  0xe9   : > { %13496 = vst [vmem:[#allocation14_spill] sm:$0xff] %v10152_v6  ;;  %v9495_v6 = vld [vmem:[%s13335_s4 + $0xf8] sm:$0xff]  }
  0xea   : > { %9129 = vmatprep.subr.bf16.mxu1 %v9495_v6 }
  0xeb   : > { %1764 = vperm.xlu0 %9426, %v9695_v4   ;;  %v10158_v9 = vpop.permute.xlu0 %3374  ;;  %9137 = vmatpush3.bf16.msra.mxu1 %v9495_v6 }
  0xec   : > { %13497 = vst [vmem:[#allocation15_spill] sm:$0xff] %v10158_v9  ;;  %5431 = vperm.xlu1 %9418, %v9757_v16   ;;  %v10161_v0 = vpop.permute.xlu1 %3338  ;;  %v965_v9 = vrot.slane %v9993_v3, 1 }
  0xed   : > { %13498 = vst [vmem:[#allocation16_spill] sm:$0xff] %v10161_v0 }
  0xef   : > { %1774 = vperm.xlu0 %9426, %v9717_v8  }
  0xf0   : > { %5439 = vperm.xlu1 %9418, %v9772_v20   ;;  %v10165_v1 = vpop.permute.xlu1 %3346  ;;  %v10167_v15 = vpop.permute.xlu0 %4570 }
  0xf1   : > { %13499 = vst [vmem:[#allocation17_spill] sm:$0xff] %v10165_v1  ;;  %13500 = vst [vmem:[#allocation18_spill] sm:$0xff] %v10167_v15 }
  0xf3   : > { %1784 = vperm.xlu0 %9426, %v9733_v11   ;;  %v9496_v11 = vld [vmem:[%s13335_s4 + $0x100] sm:$0xff]  }
  0xf4   : > { %5447 = vperm.xlu1 %9418, %v9787_v23   ;;  %v10174_v4 = vpop.permute.xlu1 %3354  ;;  %v10176_v16 = vpop.permute.xlu0 %4582  ;;  %8834 = vmatprep.subr.bf16.mxu1 %v9496_v11 }
  0xf5   : > { %13501 = vst [vmem:[#allocation19_spill] sm:$0xff] %v10174_v4  ;;  %13502 = vst [vmem:[#allocation20_spill] sm:$0xff] %v10176_v16 }
  0xf7   : > { %1799 = vperm.xlu0 %9426, %v9777_v21   ;;  %v10197_v21 = vld [vmem:[%s13335_s4 + $0x40] sm:$0xff]  }
  0xf8   : > { %5455 = vperm.xlu1 %9418, %v9802_v26   ;;  %v10180_v8 = vpop.permute.xlu1 %3362  ;;  %v10182_v20 = vpop.permute.xlu0 %4590  ;;  %8690 = vmatprep.subr.bf16.mxu0 %v10197_v21 }
  0xf9   : > { %13503 = vst [vmem:[#allocation21_spill] sm:$0xff] %v10180_v8  ;;  %13504 = vst [vmem:[#allocation22_spill] sm:$0xff] %v10182_v20 }
  0xfb   : > { %1809 = vperm.xlu0 %9426, %v9792_v24   ;;  %v10207_v24 = vld [vmem:[%s13334_s3] ss:$0 sm:$0xff] }
  0xfc   : > { %5463 = vperm.xlu1 %9418, %v9814_v30   ;;  %v10189_v23 = vpop.permute.xlu1 %3370  ;;  %v10191_v37 = vpop.permute.xlu0 %4598  ;;  %v753_v30 = vld [vmem:[#allocation2] sm:$0xf8] }
  0xfd   : > { %13505 = vst [vmem:[#allocation23_spill] sm:$0xff] %v10189_v23  ;;  %13506 = vst [vmem:[#allocation24_spill] sm:$0xff] %v10191_v37  ;;  %v770_v1 = vunpack.c.l.bf16 %v753_v30 }
  0xff   : > { %1819 = vperm.xlu0 %9426, %v9807_v27  }
 0x100   : > { %5471 = vperm.xlu1 %9418, %v9828_v36   ;;  %v10200_v6 = vpop.permute.xlu1 %3378  ;;  %v10202_v11 = vpop.permute.xlu0 %4606 }
 0x101   : > { %13507 = vst [vmem:[#allocation25_spill] sm:$0xff] %v10200_v6  ;;  %13508 = vst [vmem:[#allocation26_spill] sm:$0xff] %v10202_v11  ;;  %v964_v11 = vrot.slane %v9984_v60, 1 }
 0x103   : > { %1829 = vperm.xlu0 %9426, %v9819_v31   ;;  %v8612_v27 = vpop.f32.mrb[0].mxu0 }
 0x104   : > { %v469_v37 = vadd.f32 %v8612_v27, %v10207_v24  ;;  %5479 = vperm.xlu1 %9418, %v9844_v42   ;;  %v460_v23 = vpop.f32.mrb[1].mxu0  ;;  %v10213_v20 = vpop.permute.xlu0 %4614 }
 0x105   : > { %13509 = vst [vmem:[#allocation27_spill] sm:$0xff] %v10213_v20  ;;  %v461_v6 = vadd.f32 %v10207_v24, %v460_v23  ;;  %v10217_v8 = vpop.permute.xlu1 %1789  ;;  %v8613_v16 = vpop.f32.mrb[2].mxu0  ;;  %v771_v20 = vunpack.c.h.bf16 %v753_v30  ;;  %v969_v30 = vrot.slane %v9991_v2, 1 }
 0x106   : > { %13510 = vst [vmem:[#allocation28_spill] sm:$0xff] %v10217_v8  ;;  %v589_v4 = vmax.f32 %v469_v37, 0.0  ;;  %v472_v15 = vadd.f32 %v8613_v16, %v10207_v24  ;;  %v463_v31 = vpop.f32.mrb[3].mxu0  ;;  %v966_v37 = vsel %vm963_vm0, %v964_v11, %v965_v9 }
 0x107   : > { %v587_v27 = vmax.f32 %v461_v6, 0.0  ;;  %v464_v42 = vadd.f32 %v10207_v24, %v463_v31  ;;  %1844 = vperm.xlu0 %9426, %v9828_v36   ;;  %v967_v6 = vrot.slane %v9982_v59, 1  ;;  %v1060_v31 = vmul.f32 %v964_v11, %v770_v1 }
 0x108   : > { %v590_v60 = vmax.f32 %v472_v15, 0.0  ;;  %9420 = vset.pattern.permute.xlu1 %v13494_v56  ;;  %v10224_v23 = vpop.permute.xlu0 %4622  ;;  %v971_v59 = vrot.slane %v10001_v14, 1  ;;  %v975_v11 = vrot.slane %v10010_v19, 1  ;;  %v979_v14 = vrot.slane %v10019_v32, 1 }
 0x109   : > { %13511 = vst [vmem:[#allocation29_spill] sm:$0xff] %v10224_v23  ;;  %v588_v8 = vmax.f32 %v464_v42, 0.0  ;;  %1824 = vperm.xlu1 %9420, %v9802_v26   ;;  %v10228_v16 = vpop.permute.xlu1 %1794  ;;  %v1061_v23 = vmul.f32 %v966_v37, %v771_v20  ;;  %v977_v20 = vrot.slane %v10008_v18, 1  ;;  %v981_v18 = vrot.slane %v10017_v29, 1 }
 0x10a   : > { %13512 = vst [vmem:[#allocation30_spill] sm:$0xff] %v10228_v16  ;;  %v10230_v3 = vpack.c.bf16 %v590_v60, %v589_v4  ;;  %v973_v4 = vrot.slane %v9999_v13, 1  ;;  %v10262_v32 = vsel %vm963_vm0, %v967_v6, %v969_v30 }
 0x10b   : > { %v623_v36 = vpack.c.bf16 %v588_v8, %v587_v27  ;;  %1849 = vperm.xlu0 %9426, %v9849_v43   ;;  %v8616_v15 = vpop.f32.mrb[4].mxu0 }
 0x10c   : > { %v13359_v0 = vrot.slane %v10230_v3, 4  ;;  %v485_v42 = vadd.f32 %v8616_v15, %v10207_v24  ;;  %v476_v26 = vpop.f32.mrb[5].mxu0  ;;  %v10237_v22 = vpop.permute.xlu0 %4630  ;;  %v10275_v29 = vsel %vm963_vm0, %v971_v59, %v973_v4 }
 0x10d   : > { %13513 = vst [vmem:[#allocation31_spill] sm:$0xff] %v10237_v22  ;;  %v656_v1 = vrot.slane %v623_v36, 4  ;;  %v477_v8 = vadd.f32 %v10207_v24, %v476_v26  ;;  %9421 = vset.pattern.permute.xlu1 %v13488_v63  ;;  %v10243_v43 = vpop.permute.xlu1 %1804  ;;  %v8617_v2 = vpop.f32.mrb[6].mxu0 }
 0x10e   : > { %13514 = vst [vmem:[#allocation32_spill] sm:$0xff] %v10243_v43  ;;  %v593_v27 = vmax.f32 %v485_v42, 0.0  ;;  %v488_v60 = vadd.f32 %v8617_v2, %v10207_v24  ;;  %5483 = vperm.xlu1 %9421, %v9861_v47   ;;  %v479_v13 = vpop.f32.mrb[7].mxu0  ;;  %v10265_v42 = vsel %vm963_vm0, %v965_v9, %v967_v6  ;;  %v10284_v9 = vsel %vm963_vm0, %v975_v11, %v977_v20 }
 0x10f   : > { %v10253_v37 = vsel %vm655_vm1, %v656_v1, %v13359_v0  ;;  %704 = vst [vmem:[#allocation2 + $0x8] sm:$0xf0] %v656_v1  ;;  %v591_v36 = vmax.f32 %v477_v8, 0.0  ;;  %v480_v15 = vadd.f32 %v10207_v24, %v479_v13  ;;  %1864 = vperm.xlu0 %9426, %v9856_v46   ;;  %v10269_v8 = vpack.c.bf16 %v1061_v23, %v1060_v31 }
 0x110   : > { %13515 = vst [vmem:[#allocation33_spill] sm:$0xff] %v10253_v37  ;;  %705 = vst [vmem:[#allocation2 + $0x10] sm:$0xff] %v10253_v37  ;;  %v594_v19 = vmax.f32 %v488_v60, 0.0  ;;  %v10259_v47 = vpop.permute.xlu0 %4638  ;;  %v10272_v46 = vsel %vm963_vm0, %v969_v30, %v971_v59  ;;  %v10281_v60 = vsel %vm963_vm0, %v973_v4, %v975_v11  ;;  %v10287_v6 = vsel %vm963_vm0, %v977_v20, %v979_v14  ;;  %v10293_v30 = vld [vmem:[%s13332_s1 + $0xc8] sm:$0xff] }
 0x111   : > { %13516 = vst [vmem:[#allocation34_spill] sm:$0xff] %v10259_v47  ;;  %v592_v26 = vmax.f32 %v480_v15, 0.0  ;;  %v10267_v1 = vpop.permute.xlu1 %1814  ;;  %v985_v20 = vrot.slane %v10023_v33, 1  ;;  %v983_v13 = vrot.slane %v10025_v34, 1  ;;  %v991_v34 = vrot.slane %v10040_v40, 1 }
 0x112   : > { %13517 = vst [vmem:[#allocation35_spill] sm:$0xff] %v10267_v1  ;;  %v10277_v2 = vpack.c.bf16 %v594_v19, %v593_v27  ;;  %5491 = vperm.xlu1 %9421, %v9877_v53   ;;  %v10296_v53 = vsel %vm963_vm0, %v979_v14, %v981_v18  ;;  %v989_v19 = vrot.slane %v10032_v38, 1  ;;  %v1163_v43 = vshll.u32 %v10269_v8, 16 }
 0x113   : > { %v625_v23 = vpack.c.bf16 %v592_v26, %v591_v36  ;;  %1879 = vperm.xlu0 %9426, %v9889_v57   ;;  %v8620_v31 = vpop.f32.mrb[8].mxu0  ;;  %v10305_v57 = vld [vmem:[%s13332_s1 + $0xe0] sm:$0xff]  ;;  %v987_v26 = vrot.slane %v10034_v39, 1  ;;  %v10348_v16 = vsel %vm963_vm0, %v981_v18, %v983_v13 }
 0x114   : > { %v501_v59 = vadd.f32 %v8620_v31, %v10207_v24  ;;  %v492_v11 = vpop.f32.mrb[9].mxu0  ;;  %v10300_v27 = vpop.permute.xlu0 %4646  ;;  %v13521_v38 = vrot.slane %v10277_v2, 4 }
 0x115   : > { %13518 = vst [vmem:[#allocation36_spill] sm:$0xff] %v10300_v27  ;;  %v659_v36 = vrot.slane %v625_v23, 4  ;;  %v493_v14 = vadd.f32 %v10207_v24, %v492_v11  ;;  %v8621_v15 = vpop.f32.mrb[10].mxu0  ;;  %v13520_v23 = vrot.slane %v10230_v3, 4 }
 0x116   : > { %v597_v31 = vmax.f32 %v501_v59, 0.0  ;;  %v504_v4 = vadd.f32 %v8621_v15, %v10207_v24  ;;  %5495 = vperm.xlu1 %9421, %v10293_v30   ;;  %v10314_v0 = vpop.permute.xlu1 %4574  ;;  %v495_v1 = vpop.f32.mrb[11].mxu0 }
 0x117   : > { %13519 = vst [vmem:[#allocation37_spill] sm:$0xff] %v10314_v0  ;;  %v10321_v11 = vsel %vm655_vm1, %v13520_v23, %v659_v36  ;;  %v10326_v39 = vsel %vm655_vm1, %v659_v36, %v13521_v38  ;;  %1889 = vperm.xlu0 %9426, %v10305_v57   ;;  %v496_v15 = vadd.f32 %v10207_v24, %v495_v1  ;;  %v10338_v23 = vld [vmem:[%s13332_s1 + $0x88] sm:$0xff]  ;;  %v1746_v36 = vld [vmem:[%s13332_s1 + $0xf8] sm:$0xff]  ;;  %v1160_v38 = vshrl.u32 %v10269_v8, 16 }
 0x118   : > { %706 = vst [vmem:[#allocation2 + $0x18] sm:$0xff] %v10321_v11  ;;  %707 = vst [vmem:[#allocation2 + $0x20] sm:$0xff] %v10326_v39  ;;  %v598_v59 = vmax.f32 %v504_v4, 0.0  ;;  %v4456_v40 = vrot.slane %v10321_v11, 4  ;;  %v10333_v3 = vpop.permute.xlu0 %4654  ;;  %v595_v33 = vmax.f32 %v493_v14, 0.0  ;;  %v13364_v4 = vrot.slane %v10253_v37, 4 }
 0x119   : > { %13522 = vst [vmem:[#allocation38_spill] sm:$0xff] %v10333_v3  ;;  %v10351_v3 = vsel %vm963_vm0, %v983_v13, %v985_v20  ;;  %v774_v14 = vunpack.c.l.bf16 %v10253_v37  ;;  %v596_v47 = vmax.f32 %v496_v15, 0.0  ;;  %v13525_v8 = vrot.slane %v10326_v39, 4 }
 0x11a   : > { %v10353_v27 = vpack.c.bf16 %v598_v59, %v597_v31  ;;  %9422 = vset.pattern.permute.xlu1 %v13494_v56  ;;  %v10356_v0 = vpop.permute.xlu1 %4578  ;;  %v10362_v1 = vsel %vm655_vm1, %v13364_v4, %v4456_v40  ;;  %v775_v31 = vunpack.c.h.bf16 %v10253_v37  ;;  %v10372_v59 = vsel %vm963_vm0, %v985_v20, %v987_v26 }
 0x11b   : > { %13523 = vst [vmem:[#allocation39_spill] sm:$0xff] %v10356_v0  ;;  %13524 = vst [vmem:[#allocation40_spill] sm:$0xff] %v10362_v1  ;;  %1834 = vperm.xlu1 %9422, %v10338_v23   ;;  %1904 = vperm.xlu0 %9426, %v1746_v36   ;;  %v8624_v18 = vpop.f32.mrb[12].mxu0  ;;  %v10368_v13 = vsel %vm655_vm1, %v4456_v40, %v13525_v8  ;;  %v10375_v15 = vsel %vm963_vm0, %v987_v26, %v989_v19  ;;  %v13530_v1 = vrot.slane %v10038_v52, 1  ;;  %v10390_v40 = vld [vmem:[%s13332_s1 + $0x90] sm:$0xff] }
 0x11c   : > { %13526 = vst [vmem:[#allocation41_spill] sm:$0xff] %v10368_v13  ;;  %13527 = vst [vmem:[#allocation42_spill] sm:$0xff] %v10372_v59  ;;  %v10378_v4 = vsel %vm963_vm0, %v989_v19, %v991_v34  ;;  %v508_v0 = vpop.f32.mrb[13].mxu0  ;;  %v10385_v22 = vpop.permute.xlu0 %4662  ;;  %v627_v26 = vpack.c.bf16 %v596_v47, %v595_v33  ;;  %v2394_v19 = vld [vmem:[%s13332_s1 + $0x8] sm:$0xff]  ;;  %v10396_v13 = vrot.slane %v1160_v38, 3  ;;  %v517_v37 = vadd.f32 %v8624_v18, %v10207_v24 }
 0x11d   : > { %13528 = vst [vmem:[#allocation43_spill] sm:$0xff] %v10375_v15  ;;  %13529 = vst [vmem:[#allocation44_spill] sm:$0xff] %v10378_v4  ;;  %v10383_v36 = vsel %vm963_vm0, %v991_v34, %v13530_v1  ;;  %v8625_v8 = vpop.f32.mrb[14].mxu0  ;;  %v10398_v34 = vrot.slane %v1163_v43, 4  ;;  %v997_v1 = vrot.slane %v10044_v41, 1  ;;  %v13370_v38 = vmov 2  }
 0x11e   : > { %13531 = vst [vmem:[#allocation45_spill] sm:$0xff] %v10383_v36  ;;  %13532 = vst [vmem:[#allocation46_spill] sm:$0xff] %v10385_v22  ;;  %v995_v22 = vrot.slane %v10046_v44, 1  ;;  %v509_v36 = vadd.f32 %v10207_v24, %v508_v0  ;;  %v10404_v4 = vpop.permute.xlu1 %4586  ;;  %v511_v47 = vpop.f32.mrb[15].mxu0  ;;  %v663_v33 = vrot.slane %v627_v26, 4  ;;  %v520_v20 = vadd.f32 %v8625_v8, %v10207_v24  ;;  %v754_v8 = vld [vmem:[#allocation2 + $0x8] sm:$0xff] }
 0x11f   : > { %13533 = vst [vmem:[#allocation47_spill] sm:$0xff] %v10404_v4  ;;  %1839 = vperm.xlu1 %9422, %v10390_v40   ;;  %9430 = vset.pattern.permute.xlu0 %v13370_v38  ;;  %v1064_v43 = vmul.f32 %v10272_v46, %v774_v14  ;;  %v1065_v41 = vmul.f32 %v10275_v29, %v775_v31  ;;  %v1001_v44 = vrot.slane %v10050_v48, 1  ;;  %v999_v18 = vrot.slane %v10053_v62, 1 }
 0x120   : > { %v601_v4 = vmax.f32 %v517_v37, 0.0  ;;  %2431 = vperm.xlu0 %9430, %v2394_v19   ;;  %v10414_v26 = vpop.permute.xlu0 %4670  ;;  %v1003_v15 = vrot.slane %v10059_v50, 1  ;;  %v13535_v59 = vrot.slane %v10277_v2, 4  ;;  %v13536_v46 = vrot.slane %v10353_v27, 4  ;;  %v10430_v37 = vld [vmem:[%s13332_s1 + $0xd0] sm:$0xff]  ;;  %v2398_v50 = vld [vmem:[%s13332_s1 + $0x28] sm:$0xff] }
 0x121   : > { %13534 = vst [vmem:[#allocation48_spill] sm:$0xff] %v10414_v26  ;;  %v602_v62 = vmax.f32 %v520_v20, 0.0  ;;  %v599_v29 = vmax.f32 %v509_v36, 0.0  ;;  %v512_v2 = vadd.f32 %v10207_v24, %v511_v47  ;;  %v13538_v20 = vrot.slane %v10038_v52, 1 }
 0x122   : > { %v10420_v38 = vsel %vm655_vm1, %v13535_v59, %v663_v33  ;;  %v10425_v48 = vsel %vm655_vm1, %v663_v33, %v13536_v46  ;;  %v10438_v14 = vpop.permute.xlu1 %4594  ;;  %v772_v46 = vunpack.c.l.bf16 %v754_v8  ;;  %v1095_v36 = vpack.c.bf16 %v1065_v41, %v1064_v43 }
 0x123   : > { %708 = vst [vmem:[#allocation2 + $0x28] sm:$0xff] %v10420_v38  ;;  %709 = vst [vmem:[#allocation2 + $0x30] sm:$0xff] %v10425_v48  ;;  %v4460_v31 = vrot.slane %v10420_v38, 4  ;;  %v10446_v19 = vsel %vm963_vm0, %v13538_v20, %v995_v22  ;;  %v10448_v33 = vpack.c.bf16 %v602_v62, %v601_v4  ;;  %9423 = vset.pattern.permute.xlu1 %v13488_v63  ;;  %v600_v0 = vmax.f32 %v512_v2, 0.0 }
 0x124   : > { %13537 = vst [vmem:[#allocation49_spill] sm:$0xff] %v10438_v14  ;;  %v10452_v47 = vsel %vm963_vm0, %v995_v22, %v997_v1  ;;  %v13539_v26 = vrot.slane %v10326_v39, 4  ;;  %v8628_v59 = vpop.f32.mrb[16].mxu0  ;;  %5499 = vperm.xlu1 %9423, %v10430_v37   ;;  %2447 = vperm.xlu0 %9430, %v2398_v50   ;;  %v773_v52 = vunpack.c.h.bf16 %v754_v8  ;;  %v10460_v4 = vpop.permute.xlu0 %4678  ;;  %v10463_v62 = vsel %vm963_vm0, %v997_v1, %v999_v18  ;;  %v2402_v8 = vld [vmem:[%s13332_s1 + $0x48] sm:$0xff] }
 0x125   : > { %13541 = vst [vmem:[#allocation51_spill] sm:$0xff] %v10460_v4  ;;  %13542 = vst [vmem:[#allocation52_spill] sm:$0xff] %v10463_v62  ;;  %v10466_v43 = vsel %vm963_vm0, %v999_v18, %v1001_v44  ;;  %v10469_v22 = vsel %vm963_vm0, %v1001_v44, %v1003_v15  ;;  %v13545_v41 = vrot.slane %v10056_v49, 1  ;;  %v524_v2 = vpop.f32.mrb[17].mxu0  ;;  %v1009_v50 = vrot.slane %v10062_v51, 1 }
 0x126   : > { %v10457_v14 = vsel %vm655_vm1, %v13539_v26, %v4460_v31  ;;  %13543 = vst [vmem:[#allocation53_spill] sm:$0xff] %v10466_v43  ;;  %13544 = vst [vmem:[#allocation54_spill] sm:$0xff] %v10469_v22  ;;  %v13375_v1 = vrot.slane %v10448_v33, 4  ;;  %v629_v20 = vpack.c.bf16 %v600_v0, %v599_v29  ;;  %v533_v18 = vadd.f32 %v8628_v59, %v10207_v24  ;;  %v8629_v4 = vpop.f32.mrb[18].mxu0  ;;  %v10482_v44 = vpop.permute.xlu1 %4602 }
 0x127   : > { %13540 = vst [vmem:[#allocation50_spill] sm:$0xff] %v10457_v14  ;;  %v10474_v26 = vsel %vm963_vm0, %v1003_v15, %v13545_v41  ;;  %13547 = vst [vmem:[#allocation56_spill] sm:$0xff] %v10482_v44  ;;  %v1007_v14 = vrot.slane %v10065_v54, 1  ;;  %v1013_v15 = vrot.slane %v10068_v5, 1  ;;  %v1062_v41 = vmul.f32 %v10265_v42, %v772_v46  ;;  %v527_v22 = vpop.f32.mrb[19].mxu0  ;;  %v10498_v46 = vld [vmem:[%s13332_s1 + $0xe8] sm:$0xff] }
 0x128   : > { %13546 = vst [vmem:[#allocation55_spill] sm:$0xff] %v10474_v26  ;;  %v1177_v26 = vshrl.u32 %v1095_v36, 16  ;;  %v667_v43 = vrot.slane %v629_v20, 4  ;;  %v605_v62 = vmax.f32 %v533_v18, 0.0  ;;  %v1063_v51 = vmul.f32 %v10262_v32, %v773_v52  ;;  %5507 = vperm.xlu1 %9423, %v10305_v57   ;;  %2463 = vperm.xlu0 %9430, %v2402_v8   ;;  %v10490_v29 = vpop.permute.xlu0 %4686  ;;  %v2403_v32 = vld [vmem:[%s13332_s1 + $0x50] sm:$0xff] }
 0x129   : > { %v536_v0 = vadd.f32 %v8629_v4, %v10207_v24  ;;  %13548 = vst [vmem:[#allocation57_spill] sm:$0xff] %v10490_v29  ;;  %v1011_v54 = vrot.slane %v10071_v55, 1  ;;  %v1015_v5 = vrot.slane %v10080_v12, 1  ;;  %v1180_v59 = vshll.u32 %v1095_v36, 16 }
 0x12a   : > { %v4462_v42 = vrot.slane %v10425_v48, 4  ;;  %v13549_v57 = vrot.slane %v10353_v27, 4  ;;  %v10511_v55 = vsel %vm655_vm1, %v667_v43, %v13375_v1  ;;  %v1094_v12 = vpack.c.bf16 %v1063_v51, %v1062_v41  ;;  %v10513_v4 = vpop.permute.xlu1 %4610 }
 0x12b   : > { %v606_v36 = vmax.f32 %v536_v0, 0.0  ;;  %13550 = vst [vmem:[#allocation58_spill] sm:$0xff] %v10513_v4  ;;  %v13551_v8 = vrot.slane %v10056_v49, 1  ;;  %711 = vst [vmem:[#allocation2 + $0x40] sm:$0xff] %v10511_v55  ;;  %v525_v27 = vadd.f32 %v10207_v24, %v524_v2  ;;  %v1179_v18 = vrot.slane %v1177_v26, 3 }
 0x12c   : > { %v10506_v52 = vsel %vm655_vm1, %v13549_v57, %v667_v43  ;;  %v10524_v57 = vsel %vm655_vm1, %v4460_v31, %v4462_v42  ;;  %v1168_v43 = vshrl.u32 %v1094_v12, 16  ;;  %v1171_v41 = vshll.u32 %v1094_v12, 16  ;;  %v8632_v1 = vpop.f32.mrb[20].mxu0  ;;  %5511 = vperm.xlu1 %9423, %v10498_v46   ;;  %2467 = vperm.xlu0 %9430, %v2403_v32   ;;  %v10529_v49 = vpop.permute.xlu0 %4694 }
 0x12d   : > { %v10518_v20 = vsel %vm963_vm0, %v13551_v8, %v1007_v14  ;;  %710 = vst [vmem:[#allocation2 + $0x38] sm:$0xff] %v10506_v52  ;;  %13552 = vst [vmem:[#allocation59_spill] sm:$0xff] %v10524_v57  ;;  %v10526_v51 = vpack.c.bf16 %v606_v36, %v605_v62  ;;  %v1182_v0 = vrot.slane %v1180_v59, 4  ;;  %v10532_v8 = vsel %vm963_vm0, %v1007_v14, %v1009_v50  ;;  %v540_v62 = vpop.f32.mrb[21].mxu0  ;;  %v2406_v59 = vld [vmem:[%s13332_s1 + $0x68] sm:$0xff] }
 0x12e   : > { %13553 = vst [vmem:[#allocation60_spill] sm:$0xff] %v10529_v49  ;;  %v10535_v2 = vsel %vm963_vm0, %v1009_v50, %v1011_v54  ;;  %v10538_v31 = vsel %vm963_vm0, %v1011_v54, %v1013_v15  ;;  %v1017_v26 = vrot.slane %v10077_v58, 1  ;;  %v10545_v32 = vsel %vm963_vm0, %v1013_v15, %v1015_v5  ;;  %v8633_v49 = vpop.f32.mrb[22].mxu0  ;;  %v10548_v50 = vpop.permute.xlu1 %4618  ;;  %v10553_v54 = vld [vmem:[%s13332_s1 + $0xa8] sm:$0xff] }
 0x12f   : > { %v1019_v12 = vrot.slane %v10086_v17, 1  ;;  %v1170_v14 = vrot.slane %v1168_v43, 3  ;;  %v1173_v36 = vrot.slane %v1171_v41, 4  ;;  %13554 = vst [vmem:[#allocation61_spill] sm:$0xff] %v10548_v50  ;;  %v1021_v58 = vrot.slane %v10083_v61, 1  ;;  %v543_v57 = vpop.f32.mrb[23].mxu0 }
 0x130   : > { %v603_v29 = vmax.f32 %v525_v27, 0.0  ;;  %v528_v4 = vadd.f32 %v10207_v24, %v527_v22  ;;  %v4464_v15 = vrot.slane %v10506_v52, 4  ;;  %v1023_v17 = vrot.slane %v10098_v35, 1  ;;  %9424 = vset.pattern.permute.xlu1 %v13494_v56  ;;  %2479 = vperm.xlu0 %9430, %v2406_v59  }
 0x131   : > { %v1174_v43 = vor.u32 %v1173_v36, %v1170_v14  ;;  %v10559_v41 = vor.u32 %v1182_v0, %v1179_v18  ;;  %v549_v50 = vadd.f32 %v8632_v1, %v10207_v24  ;;  %v10564_v44 = vsel %vm963_vm0, %v1015_v5, %v1017_v26  ;;  %1854 = vperm.xlu1 %9424, %v10553_v54   ;;  %v10571_v35 = vpop.permute.xlu0 %5399  ;;  %v2407_v1 = vld [vmem:[%s13332_s1 + $0x70] sm:$0xff] }
 0x132   : > { %v604_v27 = vmax.f32 %v528_v4, 0.0  ;;  %v10568_v22 = vsel %vm655_vm1, %v4462_v42, %v4464_v15  ;;  %13556 = vst [vmem:[#allocation63_spill] sm:$0xff] %v10571_v35  ;;  %v10577_v18 = vsel %vm963_vm0, %v1017_v26, %v1019_v12  ;;  %v13557_v5 = vor.u32 %v10398_v34, %v10396_v13  ;;  %v10586_v59 = vpop.permute.xlu1 %4626  ;;  %v10591_v14 = vld [vmem:[%s13332_s1 + $0xb0] sm:$0xff]  ;;  %v9499_v26 = vld [vmem:[%s13335_s4 + $0x48] sm:$0xff]  }
 0x133   : > { %13555 = vst [vmem:[#allocation62_spill] sm:$0xff] %v10568_v22  ;;  %v1184_v42 = vsel %vm1158_vm2, %v1174_v43, %v10559_v41  ;;  %v541_v4 = vadd.f32 %v10207_v24, %v540_v62  ;;  %13558 = vst [vmem:[#allocation64_spill] sm:$0xff] %v10586_v59  ;;  %v609_v36 = vmax.f32 %v549_v50, 0.0  ;;  %v10599_v62 = vsel %vm963_vm0, %v1019_v12, %v1021_v58 }
 0x134   : > { %v1175_v0 = vsel %vm1158_vm2, %v13557_v5, %v1174_v43  ;;  %v631_v34 = vpack.c.bf16 %v604_v27, %v603_v29  ;;  %v552_v43 = vadd.f32 %v8633_v49, %v10207_v24  ;;  %13559 = vst [vmem:[#allocation65_spill] sm:$0xff] %v10599_v62  ;;  %v10602_v5 = vsel %vm963_vm0, %v1021_v58, %v1023_v17  ;;  %v8636_v59 = vpop.f32.mrb[24].mxu0 }
 0x135   : > { %8658 = vmatprep.mubr.bf16.mxu0 %v1175_v0  ;;  %13560 = vst [vmem:[#allocation66_spill] sm:$0xff] %v10602_v5  ;;  %v776_v61 = vunpack.c.l.bf16 %v10321_v11  ;;  %v777_v35 = vunpack.c.h.bf16 %v10321_v11  ;;  %2483 = vperm.xlu0 %9430, %v2407_v1   ;;  %v13561_v0 = vrot.slane %v10095_v28, 1  ;;  %v4466_v12 = vrot.slane %v10511_v55, 4  ;;  %v10612_v27 = vpop.f32.mrb[25].mxu0  ;;  %v10615_v58 = vpop.permute.xlu0 %5411 }
 0x136   : > { %8659 = vmatmul.mubr.bf16.vlgmr.msra.gmra.mrb[32].mxu0 %v1184_v42  ;;  %v671_v50 = vrot.slane %v631_v34, 4  ;;  %v610_v49 = vmax.f32 %v552_v43, 0.0  ;;  %1859 = vperm.xlu1 %9424, %v10591_v14   ;;  %13563 = vst [vmem:[#allocation68_spill] sm:$0xff] %v10615_v58  ;;  %v607_v11 = vmax.f32 %v541_v4, 0.0  ;;  %v10623_v34 = vpop.permute.xlu1 %4634  ;;  %v9501_v43 = vld [vmem:[%s13335_s4 + $0x50] sm:$0xff]   ;;  %v13565_v13 = vrot.slane %v10448_v33, 4 }
 0x137   : > { %v10609_v29 = vsel %vm963_vm0, %v1023_v17, %v13561_v0  ;;  %8691 = vmatpush3.bf16.msra.mxu0 %v10197_v21  ;;  %v1066_v1 = vmul.f32 %v10281_v60, %v776_v61  ;;  %v1067_v42 = vmul.f32 %v10284_v9, %v777_v35  ;;  %v544_v17 = vadd.f32 %v10207_v24, %v543_v57  ;;  %v10621_v0 = vpop.f32.mrb[26].mxu0  ;;  %v10648_v4 = vld [vmem:[%s13332_s1 + $0xf0] sm:$0xff]  ;;  %v13568_v33 = vld [vmem:[#allocation6_spill] sm:$0xff]  ;;  %v13571_v58 = vld [vmem:[#allocation12_spill] sm:$0xff] }
 0x138   : > { %13562 = vst [vmem:[#allocation67_spill] sm:$0xff] %v10609_v29  ;;  %13564 = vst [vmem:[#allocation69_spill] sm:$0xff] %v10623_v34  ;;  %8692 = vmatprep.subr.bf16.mxu0 %v9499_v26  ;;  %v10631_v21 = vsel %vm655_vm1, %v13565_v13, %v671_v50  ;;  %v13566_v60 = vrot.slane %v10526_v51, 4  ;;  %v10638_v57 = vpack.c.bf16 %v610_v49, %v609_v36  ;;  %v10643_v35 = vpop.f32.mrb[27].mxu0  ;;  %v10662_v34 = vld [vmem:[#allocation2] sm:$0xf0] }
 0x139   : > { %v10641_v61 = vsel %vm655_vm1, %v4464_v15, %v4466_v12  ;;  %712 = vst [vmem:[#allocation2 + $0x48] sm:$0xff] %v10631_v21  ;;  %v1096_v36 = vpack.c.bf16 %v1067_v42, %v1066_v1  ;;  %2495 = vperm.xlu0 %9430, %v10338_v23   ;;  %v608_v49 = vmax.f32 %v544_v17, 0.0  ;;  %v10660_v13 = vpop.permute.xlu0 %5419  ;;  %13570 = vst [vmem:[#allocation72_spill] sm:$0xff] %v10662_v34  ;;  %v3413_v28 = vrot.slane %v13571_v58, 1 }
 0x13a   : > { %v10636_v9 = vsel %vm655_vm1, %v671_v50, %v13566_v60  ;;  %13567 = vst [vmem:[#allocation70_spill] sm:$0xff] %v10641_v61  ;;  %v3411_v50 = vrot.slane %v10136_v10, 1  ;;  %v778_v60 = vunpack.c.l.bf16 %v10326_v39  ;;  %9425 = vset.pattern.permute.xlu1 %v13488_v63  ;;  %13569 = vst [vmem:[#allocation71_spill] sm:$0xff] %v10660_v13  ;;  %v10667_v15 = vpop.permute.xlu1 %4642  ;;  %v9503_v63 = vld [vmem:[%s13335_s4 + $0x58] sm:$0xff]   ;;  %v4468_v58 = vrot.slane %v10631_v21, 4  ;;  %v13573_v13 = vld [vmem:[#allocation10_spill] sm:$0xff] }
 0x13b   : > { %713 = vst [vmem:[#allocation2 + $0x50] sm:$0xff] %v10636_v9  ;;  %8693 = vmatpush3.bf16.msra.mxu0 %v9499_v26  ;;  %v1186_v42 = vshrl.u32 %v1096_v36, 16  ;;  %v1189_v23 = vshll.u32 %v1096_v36, 16  ;;  %5515 = vperm.xlu1 %9425, %v10648_v4   ;;  %13572 = vst [vmem:[#allocation12_spill] sm:$0xff] %v10667_v15  ;;  %v633_v10 = vpack.c.bf16 %v608_v49, %v607_v11  ;;  %v779_v26 = vunpack.c.h.bf16 %v10326_v39  ;;  %v1739_v15 = vld [vmem:[%s13332_s1 + $0xc0] sm:$0xff] }
 0x13c   : > { %8694 = vmatprep.subr.bf16.mxu0 %v9501_v43  ;;  %v1068_v17 = vmul.f32 %v10287_v6, %v778_v60  ;;  %v10676_v5 = vpop.f32.mrb[28].mxu0  ;;  %v10685_v6 = vsel %vm655_vm1, %v4466_v12, %v4468_v58  ;;  %v565_v60 = vadd.f32 %v8636_v59, %v10207_v24  ;;  %v10698_v11 = vsel %vm963_vm0, %v3411_v50, %v3413_v28 }
 0x13d   : > { %v1188_v29 = vrot.slane %v1186_v42, 3  ;;  %v1191_v36 = vrot.slane %v1189_v23, 4  ;;  %2499 = vperm.xlu0 %9430, %v10390_v40   ;;  %v675_v49 = vrot.slane %v633_v10, 4  ;;  %v1069_v39 = vmul.f32 %v10296_v53, %v779_v26  ;;  %13574 = vst [vmem:[#allocation10_spill] sm:$0xff] %v10685_v6  ;;  %v10688_v42 = vpop.f32.mrb[29].mxu0  ;;  %v10690_v23 = vpop.permute.xlu0 %5427  ;;  %v13577_v10 = vld [vmem:[#allocation11_spill] sm:$0xff] }
 0x13e   : > { %13575 = vst [vmem:[#allocation73_spill] sm:$0xff] %v10690_v23  ;;  %v13576_v40 = vrot.slane %v13568_v33, 1  ;;  %v10701_v12 = vpop.f32.mrb[30].mxu0  ;;  %v10704_v59 = vpop.permute.xlu1 %4650  ;;  %v13579_v33 = vld [vmem:[#allocation14_spill] sm:$0xff]  ;;  %v13580_v23 = vrot.slane %v10526_v51, 4  ;;  %v13584_v51 = vld [vmem:[#allocation16_spill] sm:$0xff] }
 0x13f   : > { %8695 = vmatpush3.bf16.msra.mxu0 %v9501_v43  ;;  %v1192_v26 = vor.u32 %v1191_v36, %v1188_v29  ;;  %9427 = vset.pattern.permute.xlu1 %v13494_v56  ;;  %13578 = vst [vmem:[#allocation11_spill] sm:$0xff] %v10704_v59  ;;  %v9505_v43 = vld [vmem:[%s13335_s4 + $0x60] sm:$0xff]   ;;  %v13581_v29 = vrot.slane %v10638_v57, 4  ;;  %v1097_v53 = vpack.c.bf16 %v1069_v39, %v1068_v17  ;;  %v10720_v34 = vpop.f32.mrb[31].mxu0  ;;  %v13582_v59 = vrot.slane %v10111_v45, 1 }
 0x140   : > { %v10695_v1 = vsel %vm963_vm0, %v13576_v40, %v3411_v50  ;;  %8696 = vmatprep.subr.bf16.mxu0 %v9503_v63  ;;  %v3417_v40 = vrot.slane %v13579_v33, 1  ;;  %v10713_v50 = vsel %vm655_vm1, %v13580_v23, %v675_v49  ;;  %1869 = vperm.xlu1 %9427, %v1739_v15   ;;  %v13583_v33 = vld [vmem:[#allocation13_spill] sm:$0xff]  ;;  %v3421_v22 = vrot.slane %v13584_v51, 1 }
 0x141   : > { %v10718_v36 = vsel %vm655_vm1, %v675_v49, %v13581_v29  ;;  %v10725_v6 = vsel %vm963_vm0, %v3413_v28, %v13582_v59  ;;  %v1193_v23 = vsel %vm1158_vm2, %v10559_v41, %v1192_v26  ;;  %714 = vst [vmem:[#allocation2 + $0x58] sm:$0xff] %v10713_v50  ;;  %2511 = vperm.xlu0 %9430, %v10553_v54   ;;  %v1195_v15 = vshrl.u32 %v1097_v53, 16  ;;  %v10736_v39 = vpop.permute.xlu0 %5435 }
 0x142   : > { %715 = vst [vmem:[#allocation2 + $0x60] sm:$0xff] %v10718_v36  ;;  %8662 = vmatprep.mubr.bf16.mxu0 %v1193_v23  ;;  %v1198_v17 = vshll.u32 %v1097_v53, 16  ;;  %v613_v49 = vmax.f32 %v565_v60, 0.0  ;;  %v568_v28 = vadd.f32 %v10621_v0, %v10207_v24  ;;  %13585 = vst [vmem:[#allocation14_spill] sm:$0xff] %v10736_v39  ;;  %v557_v59 = vadd.f32 %v10207_v24, %v10612_v27  ;;  %v10743_v54 = vpop.permute.xlu1 %4658  ;;  %v9507_v60 = vld [vmem:[%s13335_s4 + $0x68] sm:$0xff]  }
 0x143   : > { %8697 = vmatpush3.bf16.msra.mxu0 %v9503_v63  ;;  %v780_v41 = vunpack.c.l.bf16 %v10420_v38  ;;  %v781_v29 = vunpack.c.h.bf16 %v10420_v38  ;;  %v4470_v51 = vrot.slane %v10636_v9, 4  ;;  %13586 = vst [vmem:[#allocation13_spill] sm:$0xff] %v10743_v54  ;;  %v13587_v0 = vrot.slane %v10111_v45, 1  ;;  %v1742_v45 = vld [vmem:[%s13332_s1 + $0xd8] sm:$0xff] }
 0x144   : > { %8698 = vmatprep.subr.bf16.mxu0 %v9505_v43  ;;  %v1197_v53 = vrot.slane %v1195_v15, 3  ;;  %v1200_v27 = vrot.slane %v1198_v17, 4  ;;  %v614_v23 = vmax.f32 %v568_v28, 0.0  ;;  %1874 = vperm.xlu1 %9427, %v10293_v30   ;;  %v13588_v38 = vrot.slane %v10120_v25, 1  ;;  %v13590_v15 = vld [vmem:[#allocation15_spill] sm:$0xff]  ;;  %v13591_v17 = vld [vmem:[#allocation17_spill] sm:$0xff] }
 0x145   : > { %v10751_v63 = vsel %vm963_vm0, %v13587_v0, %v3417_v40  ;;  %v1070_v39 = vmul.f32 %v10348_v16, %v780_v41  ;;  %v1071_v54 = vmul.f32 %v10351_v3, %v781_v29  ;;  %v10762_v62 = vsel %vm655_vm1, %v4468_v58, %v4470_v51  ;;  %2515 = vperm.xlu0 %9430, %v10591_v14   ;;  %v2418_v16 = vld [vmem:[%s13332_s1 + $0xc8] sm:$0xff] }
 0x146   : > { %v10757_v61 = vsel %vm963_vm0, %v3417_v40, %v13588_v38  ;;  %13589 = vst [vmem:[#allocation16_spill] sm:$0xff] %v10762_v62  ;;  %v3425_v28 = vrot.slane %v13591_v17, 1  ;;  %v1201_v0 = vor.u32 %v1200_v27, %v1197_v53  ;;  %v10770_v40 = vpack.c.bf16 %v614_v23, %v613_v49  ;;  %v10772_v38 = vpop.permute.xlu0 %5443  ;;  %v10784_v53 = vpop.permute.xlu1 %4666  ;;  %v9509_v49 = vld [vmem:[%s13335_s4 + $0x70] sm:$0xff]   ;;  %v13628_v62 = vld [vmem:[#allocation24_spill] sm:$0xff] }
 0x147   : > { %13592 = vst [vmem:[#allocation15_spill] sm:$0xff] %v10772_v38  ;;  %8699 = vmatpush3.bf16.msra.mxu0 %v9505_v43  ;;  %v13593_v3 = vrot.slane %v10120_v25, 1  ;;  %v611_v58 = vmax.f32 %v557_v59, 0.0  ;;  %v1098_v41 = vpack.c.bf16 %v1071_v54, %v1070_v39  ;;  %v560_v29 = vadd.f32 %v10207_v24, %v10643_v35  ;;  %13594 = vst [vmem:[#allocation17_spill] sm:$0xff] %v10784_v53  ;;  %v13596_v25 = vld [vmem:[#allocation18_spill] sm:$0xff]  ;;  %v13597_v17 = vld [vmem:[#allocation19_spill] sm:$0xff] }
 0x148   : > { %8700 = vmatprep.subr.bf16.mxu0 %v9507_v60  ;;  %v13595_v27 = vrot.slane %v10126_v7, 1  ;;  %v3429_v59 = vrot.slane %v13597_v17, 1  ;;  %v1202_v39 = vsel %vm1158_vm2, %v1192_v26, %v1201_v0  ;;  %1884 = vperm.xlu1 %9427, %v1742_v45   ;;  %v782_v30 = vunpack.c.l.bf16 %v10425_v48  ;;  %v10811_v45 = vld [vmem:[%s13332_s1] sm:$0xff]  ;;  %v13604_v17 = vld [vmem:[#allocation20_spill] sm:$0xff] }
 0x149   : > { %v10780_v14 = vsel %vm963_vm0, %v13593_v3, %v3421_v22  ;;  %8663 = vmatmul.mubr.bf16.gmra.mrb[36].mxu0 %v1202_v39  ;;  %v1204_v35 = vshrl.u32 %v1098_v41, 16  ;;  %v1207_v54 = vshll.u32 %v1098_v41, 16  ;;  %v612_v3 = vmax.f32 %v560_v29, 0.0  ;;  %2527 = vperm.xlu0 %9430, %v2418_v16   ;;  %13600 = vst [vmem:[#allocation19_spill] sm:$0xff] %v10811_v45  ;;  %v13601_v29 = vld [vmem:[#allocation42_spill] sm:$0xff] }
 0x14a   : > { %v10792_v43 = vsel %vm963_vm0, %v3421_v22, %v13595_v27  ;;  %v13598_v38 = vmov %v13595_v27  ;;  %v783_v27 = vunpack.c.h.bf16 %v10425_v48  ;;  %v10806_v26 = vpop.permute.xlu0 %5451  ;;  %v10814_v39 = vpop.permute.xlu1 %4674  ;;  %v9511_v48 = vld [vmem:[%s13335_s4 + $0x78] sm:$0xff]   ;;  %v13603_v23 = vrot.slane %v13573_v13, 1 }
 0x14b   : > { %v10801_v53 = vsel %vm963_vm0, %v13598_v38, %v3425_v28  ;;  %13599 = vst [vmem:[#allocation18_spill] sm:$0xff] %v10806_v26  ;;  %8701 = vmatpush3.bf16.msra.mxu0 %v9507_v60  ;;  %v1206_v16 = vrot.slane %v1204_v35, 3  ;;  %v1209_v41 = vrot.slane %v1207_v54, 4  ;;  %v635_v7 = vpack.c.bf16 %v612_v3, %v611_v58  ;;  %13602 = vst [vmem:[#allocation42_spill] sm:$0xff] %v10814_v39  ;;  %v13605_v60 = vld [vmem:[#allocation43_spill] sm:$0xff] }
 0x14c   : > { %v1072_v38 = vmul.f32 %v13601_v29, %v782_v30  ;;  %8702 = vmatprep.subr.bf16.mxu0 %v9509_v49  ;;  %v10822_v22 = vsel %vm963_vm0, %v3425_v28, %v13603_v23  ;;  %v1073_v35 = vmul.f32 %v13605_v60, %v783_v27  ;;  %v13606_v58 = vrot.slane %v10713_v50, 4 }
 0x14d   : > { %v13608_v54 = vmov 2   ;;  %v13609_v3 = vmov %v13603_v23  ;;  %v13610_v39 = vrot.slane %v13577_v10, 1  ;;  %v1210_v23 = vor.u32 %v1209_v41, %v1206_v16  ;;  %2531 = vperm.xlu0 %9430, %v10430_v37   ;;  %v13614_v16 = vld [vmem:[#allocation22_spill] sm:$0xff] }
 0x14e   : > { %v10829_v30 = vsel %vm655_vm1, %v4470_v51, %v13606_v58  ;;  %9428 = vset.pattern.permute.xlu1 %v13608_v54  ;;  %v10835_v29 = vsel %vm963_vm0, %v13609_v3, %v3429_v59  ;;  %v679_v26 = vrot.slane %v635_v7, 4  ;;  %v13611_v51 = vld [vmem:[#allocation21_spill] sm:$0xff]  ;;  %v1099_v60 = vpack.c.bf16 %v1073_v35, %v1072_v38  ;;  %v10849_v3 = vpop.permute.xlu0 %5459  ;;  %v13618_v35 = vld [vmem:[#allocation23_spill] sm:$0xff] }
 0x14f   : > { %13607 = vst [vmem:[#allocation20_spill] sm:$0xff] %v10829_v30  ;;  %v10840_v28 = vsel %vm963_vm0, %v3429_v59, %v13610_v39  ;;  %2427 = vperm.xlu1 %9428, %v10811_v45   ;;  %v3433_v27 = vrot.slane %v13611_v51, 1  ;;  %v581_v13 = vadd.f32 %v10676_v5, %v10207_v24  ;;  %v584_v58 = vadd.f32 %v10701_v12, %v10207_v24  ;;  %v10854_v59 = vld [vmem:[%s13332_s1 + $0x10] sm:$0xff]  ;;  %v10868_v39 = vpop.permute.xlu1 %4682 }
 0x150   : > { %13612 = vst [vmem:[#allocation43_spill] sm:$0xff] %v10849_v3  ;;  %13613 = vst [vmem:[#allocation21_spill] sm:$0xff] %v10854_v59  ;;  %8703 = vmatpush3.bf16.msra.mxu0 %v9509_v49  ;;  %v1211_v37 = vsel %vm1158_vm2, %v1201_v0, %v1210_v23  ;;  %v13615_v7 = vrot.slane %v10638_v57, 4  ;;  %v13616_v5 = vrot.slane %v10770_v40, 4  ;;  %v3437_v51 = vrot.slane %v13618_v35, 1 }
 0x151   : > { %13617 = vst [vmem:[#allocation22_spill] sm:$0xff] %v10868_v39  ;;  %8704 = vmatprep.subr.bf16.mxu0 %v9511_v48  ;;  %8666 = vmatprep.mubr.bf16.mxu0 %v1211_v37  ;;  %v1213_v0 = vshrl.u32 %v1099_v60, 16  ;;  %v1216_v57 = vshll.u32 %v1099_v60, 16  ;;  %v617_v49 = vmax.f32 %v581_v13, 0.0  ;;  %v618_v41 = vmax.f32 %v584_v58, 0.0  ;;  %v13624_v58 = vld [vmem:[#allocation44_spill] sm:$0xff] }
 0x152   : > { %v10861_v38 = vsel %vm655_vm1, %v13615_v7, %v679_v26  ;;  %v10866_v12 = vsel %vm655_vm1, %v679_v26, %v13616_v5  ;;  %v573_v7 = vadd.f32 %v10207_v24, %v10688_v42  ;;  %v784_v26 = vunpack.c.l.bf16 %v10506_v52  ;;  %2543 = vperm.xlu0 %9430, %v10498_v46   ;;  %v10885_v39 = vpop.permute.xlu0 %5467  ;;  %v10890_v42 = vld [vmem:[%s13332_s1 + $0x18] sm:$0xff] }
 0x153   : > { %716 = vst [vmem:[#allocation2 + $0x68] sm:$0xff] %v10861_v38  ;;  %717 = vst [vmem:[#allocation2 + $0x70] sm:$0xff] %v10866_v12  ;;  %v785_v5 = vunpack.c.h.bf16 %v10506_v52  ;;  %2435 = vperm.xlu1 %9428, %v10854_v59   ;;  %v13619_v37 = vrot.slane %v13577_v10, 1  ;;  %v1215_v3 = vrot.slane %v1213_v0, 3  ;;  %v1218_v60 = vrot.slane %v1216_v57, 4  ;;  %v13625_v57 = vld [vmem:[#allocation45_spill] sm:$0xff]  ;;  %v10901_v59 = vpop.permute.xlu1 %4690 }
 0x154   : > { %v4474_v13 = vrot.slane %v10718_v36, 4  ;;  %13621 = vst [vmem:[#allocation74_spill] sm:$0xff] %v10885_v39  ;;  %13622 = vst [vmem:[#allocation75_spill] sm:$0xff] %v10890_v42  ;;  %8705 = vmatpush3.bf16.msra.mxu0 %v9511_v48  ;;  %v13623_v52 = vrot.slane %v13583_v33, 1  ;;  %v10897_v10 = vpack.c.bf16 %v618_v41, %v617_v49  ;;  %v1074_v0 = vmul.f32 %v13624_v58, %v784_v26  ;;  %v13631_v41 = vld [vmem:[#allocation25_spill] sm:$0xff] }
 0x155   : > { %v10882_v35 = vsel %vm963_vm0, %v13619_v37, %v3433_v27  ;;  %v1075_v37 = vmul.f32 %v13625_v57, %v785_v5  ;;  %13626 = vst [vmem:[#allocation44_spill] sm:$0xff] %v10901_v59  ;;  %v1219_v45 = vor.u32 %v1218_v60, %v1215_v3  ;;  %v13400_v49 = vrot.slane %v13631_v41, 1  ;;  %v4419_v33 = vld [vmem:[#allocation2 + $0x8] sm:$0xf0] }
 0x156   : > { %13620 = vst [vmem:[#allocation23_spill] sm:$0xff] %v10882_v35  ;;  %v10895_v46 = vsel %vm963_vm0, %v3433_v27, %v13623_v52  ;;  %v13627_v39 = vmov %v13623_v52  ;;  %v13629_v35 = vrot.slane %v10713_v50, 4  ;;  %v615_v26 = vmax.f32 %v573_v7, 0.0  ;;  %2547 = vperm.xlu0 %9430, %v10648_v4   ;;  %v10923_v58 = vpop.permute.xlu0 %5475 }
 0x157   : > { %v10906_v30 = vsel %vm963_vm0, %v13627_v39, %v3437_v51  ;;  %v685_v5 = vrot.slane %v10897_v10, 4  ;;  %v1100_v52 = vpack.c.bf16 %v1075_v37, %v1074_v0  ;;  %2439 = vperm.xlu1 %9428, %v10890_v42   ;;  %v1220_v39 = vsel %vm1158_vm2, %v1210_v23, %v1219_v45  ;;  %13632 = vst [vmem:[#allocation24_spill] sm:$0xff] %v10923_v58  ;;  %v13634_v0 = vld [vmem:[#allocation26_spill] sm:$0xff] }
 0x158   : > { %v10912_v27 = vsel %vm655_vm1, %v13629_v35, %v4474_v13  ;;  %v576_v3 = vadd.f32 %v10207_v24, %v10720_v34  ;;  %v786_v60 = vunpack.c.l.bf16 %v10511_v55  ;;  %v787_v35 = vunpack.c.h.bf16 %v10511_v55  ;;  %8667 = vmatmul.mubr.bf16.gmra.mrb[40].mxu0 %v1220_v39  ;;  %v1744_v24 = vld [vmem:[%s13332_s1 + $0xe8] sm:$0xff]  ;;  %v10942_v39 = vpop.permute.xlu1 %5395 }
 0x159   : > { %13630 = vst [vmem:[#allocation45_spill] sm:$0xff] %v10912_v27  ;;  %v13633_v7 = vrot.slane %v13590_v15, 1  ;;  %720 = vst [vmem:[#allocation2 + $0x88] sm:$0xf] %v685_v5  ;;  %v1222_v37 = vshrl.u32 %v1100_v52, 16  ;;  %v1225_v23 = vshll.u32 %v1100_v52, 16  ;;  %v789_v27 = vunpack.c.h.bf16 %v10631_v21 }
 0x15a   : > { %v10937_v55 = vld [vmem:[%s13332_s1 + $0x8] sm:$0xff]  ;;  %v616_v34 = vmax.f32 %v576_v3, 0.0  ;;  %v1076_v48 = vmul.f32 %v10446_v19, %v786_v60  ;;  %13635 = vst [vmem:[#allocation26_spill] sm:$0xff] %v10942_v39  ;;  %v13636_v52 = vrot.slane %v13590_v15, 1  ;;  %v4453_v58 = vrot.slane %v4419_v33, 4  ;;  %v10958_v15 = vpop.permute.xlu0 %5487 }
 0x15b   : > { %v10928_v10 = vsel %vm963_vm0, %v3437_v51, %v13633_v7  ;;  %v1077_v51 = vmul.f32 %v10452_v47, %v787_v35  ;;  %v4476_v7 = vrot.slane %v10861_v38, 4  ;;  %v1224_v59 = vrot.slane %v1222_v37, 3  ;;  %9429 = vset.pattern.permute.xlu1 %v13494_v56  ;;  %v13638_v47 = vld [vmem:[#allocation27_spill] sm:$0xff]  ;;  %13640 = vst [vmem:[#allocation76_spill] sm:$0xff] %v10958_v15 }
 0x15c   : > { %v10949_v57 = vsel %vm963_vm0, %v13636_v52, %v13400_v49  ;;  %v1227_v42 = vrot.slane %v1225_v23, 4  ;;  %v13637_v19 = vmov 3   ;;  %v637_v60 = vpack.c.bf16 %v616_v34, %v615_v26  ;;  %1894 = vperm.xlu1 %9429, %v1744_v24   ;;  %v13641_v52 = vld [vmem:[#allocation29_spill] sm:$0xff]  ;;  %v10964_v34 = vpop.permute.xlu1 %5403 }
 0x15d   : > { %9458 = vset.pattern.permute.xlu0 %v13637_v19  ;;  %v1101_v35 = vpack.c.bf16 %v1077_v51, %v1076_v48  ;;  %v10955_v39 = vsel %vm655_vm1, %v4474_v13, %v4476_v7  ;;  %v788_v56 = vunpack.c.l.bf16 %v10631_v21  ;;  %13644 = vst [vmem:[#allocation29_spill] sm:$0xff] %v10964_v34  ;;  %v10969_v13 = vld [vmem:[%s13332_s1 + $0x28] sm:$0xff]  ;;  %v13646_v24 = vld [vmem:[#allocation33_spill] sm:$0xff]  ;;  %v13651_v21 = vld [vmem:[#allocation52_spill] sm:$0xff] }
 0x15e   : > { %13639 = vst [vmem:[#allocation27_spill] sm:$0xff] %v10955_v39  ;;  %3258 = vperm.xlu0 %9458, %v10937_v55   ;;  %v1228_v49 = vor.u32 %v1227_v42, %v1224_v59  ;;  %v683_v3 = vrot.slane %v637_v60, 4  ;;  %13645 = vst [vmem:[#allocation77_spill] sm:$0xff] %v10969_v13  ;;  %v13647_v51 = vrot.slane %v13646_v24, 4  ;;  %v13648_v23 = vld [vmem:[#allocation37_spill] sm:$0xff]  ;;  %v13649_v60 = vrot.slane %v10770_v40, 4 }
 0x15f   : > { %v1231_v26 = vshrl.u32 %v1101_v35, 16  ;;  %v1234_v48 = vshll.u32 %v1101_v35, 16  ;;  %v13652_v24 = vld [vmem:[#allocation53_spill] sm:$0xff] }
 0x160   : > { %v4455_v33 = vsel %vm655_vm1, %v4453_v58, %v13647_v51  ;;  %v1229_v42 = vsel %vm1158_vm2, %v1219_v45, %v1228_v49  ;;  %v10980_v35 = vsel %vm655_vm1, %v13649_v60, %v683_v3  ;;  %v10983_v15 = vsel %vm655_vm1, %v683_v3, %v685_v5  ;;  %1899 = vperm.xlu1 %9429, %v10648_v4   ;;  %v10986_v58 = vpop.permute.xlu0 %5503  ;;  %v11003_v60 = vld [vmem:[%s13332_s1 + $0x20] sm:$0xff] }
 0x161   : > { %8670 = vmatprep.mubr.bf16.mxu0 %v1229_v42  ;;  %v1233_v34 = vrot.slane %v1231_v26, 3  ;;  %v1236_v39 = vrot.slane %v1234_v48, 4  ;;  %13650 = vst [vmem:[#allocation33_spill] sm:$0xff] %v10986_v58  ;;  %718 = vst [vmem:[#allocation2 + $0x78] sm:$0xff] %v10980_v35  ;;  %v1078_v45 = vmul.f32 %v13651_v21, %v788_v56  ;;  %v1079_v40 = vmul.f32 %v13652_v24, %v789_v27  ;;  %v10998_v48 = vpop.permute.xlu1 %5407  ;;  %v13663_v21 = vld [vmem:[#allocation38_spill] sm:$0xff] }
 0x162   : > { %719 = vst [vmem:[#allocation2 + $0x80] sm:$0xff] %v10983_v15  ;;  %v3205_v51 = vunpack.c.l.bf16 %v10636_v9  ;;  %v3206_v42 = vunpack.c.h.bf16 %v10636_v9  ;;  %3274 = vperm.xlu0 %9458, %v10969_v13   ;;  %v3492_v3 = vmul.f32 %v10695_v1, %v788_v56  ;;  %v3493_v4 = vmul.f32 %v10698_v11, %v789_v27  ;;  %13653 = vst [vmem:[#allocation37_spill] sm:$0xff] %v10998_v48 }
 0x163   : > { %v1237_v5 = vor.u32 %v1236_v39, %v1233_v34  ;;  %v4478_v26 = vrot.slane %v10866_v12, 4  ;;  %13654 = vst [vmem:[#allocation52_spill] sm:$0xff] %v11003_v60  ;;  %v1102_v59 = vpack.c.bf16 %v1079_v40, %v1078_v45  ;;  %v4503_v34 = vunpack.c.l.bf16 %v4455_v33  ;;  %v13660_v40 = vld [vmem:[#allocation39_spill] sm:$0xff] }
 0x164   : > { %v3494_v9 = vmul.f32 %v10725_v6, %v3205_v51  ;;  %v3495_v39 = vmul.f32 %v10751_v63, %v3206_v42  ;;  %v3517_v11 = vpack.c.bf16 %v3493_v4, %v3492_v3  ;;  %9431 = vset.pattern.permute.xlu1 %v13608_v54  ;;  %v11013_v56 = vpop.permute.xlu0 %5519  ;;  %v4504_v58 = vunpack.c.h.bf16 %v4455_v33  ;;  %v11027_v33 = vld [vmem:[%s13332_s1 + $0x30] sm:$0xff] }
 0x165   : > { %v1238_v1 = vsel %vm1158_vm2, %v1228_v49, %v1237_v5  ;;  %v11010_v27 = vsel %vm655_vm1, %v4476_v7, %v4478_v26  ;;  %13657 = vst [vmem:[#allocation78_spill] sm:$0xff] %v11013_v56  ;;  %v1240_v48 = vshrl.u32 %v1102_v59, 16  ;;  %v1243_v24 = vshll.u32 %v1102_v59, 16  ;;  %2443 = vperm.xlu1 %9431, %v11003_v60   ;;  %v11022_v13 = vpop.permute.xlu1 %5415 }
 0x166   : > { %13656 = vst [vmem:[#allocation53_spill] sm:$0xff] %v11010_v27  ;;  %8671 = vmatmul.mubr.bf16.gmra.mrb[44].mxu0 %v1238_v1  ;;  %v3518_v45 = vpack.c.bf16 %v3495_v39, %v3494_v9  ;;  %v13658_v6 = vrot.slane %v13648_v23, 7  ;;  %v13659_v63 = vrot.slane %v13596_v25, 7  ;;  %v4699_v7 = vrot.slane %v13660_v40, 7  ;;  %13661 = vst [vmem:[#allocation39_spill] sm:$0xff] %v11022_v13 }
 0x167   : > { %v3646_v3 = vshrl.u32 %v3517_v11, 16  ;;  %v3649_v4 = vshll.u32 %v3517_v11, 16  ;;  %v1242_v59 = vrot.slane %v1240_v48, 3  ;;  %v1245_v9 = vrot.slane %v1243_v24, 4  ;;  %v13665_v48 = vld [vmem:[#allocation54_spill] sm:$0xff] }
 0x168   : > { %v4698_v49 = vsel %vm2553_vm3, %v13659_v63, %v13658_v6  ;;  %v3655_v39 = vshrl.u32 %v3518_v45, 16  ;;  %v3658_v1 = vshll.u32 %v3518_v45, 16  ;;  %v13662_v56 = vmov %v13659_v63  ;;  %v11033_v37 = vpop.permute.xlu0 %1749  ;;  %v13666_v45 = vld [vmem:[#allocation55_spill] sm:$0xff] }
 0x169   : > { %v4792_v27 = vmul.f32 %v13662_v56, %v4503_v34  ;;  %v3648_v63 = vrot.slane %v3646_v3, 3  ;;  %v3651_v40 = vrot.slane %v3649_v4, 4  ;;  %v4793_v41 = vmul.f32 %v4698_v49, %v4504_v58  ;;  %2451 = vperm.xlu1 %9431, %v11027_v33   ;;  %v11040_v34 = vpop.permute.xlu1 %5423  ;;  %v11045_v58 = vld [vmem:[%s13332_s1 + $0x38] sm:$0xff] }
 0x16a   : > { %v1246_v11 = vor.u32 %v1245_v9, %v1242_v59  ;;  %v3657_v19 = vrot.slane %v3655_v39, 3  ;;  %v3660_v13 = vrot.slane %v3658_v1, 4  ;;  %v1080_v24 = vmul.f32 %v3205_v51, %v13665_v48  ;;  %v13667_v56 = vld [vmem:[#allocation40_spill] sm:$0xff]  ;;  %v13670_v48 = vld [vmem:[#allocation47_spill] sm:$0xff] }
 0x16b   : > { %v11035_v54 = vor.u32 %v3651_v40, %v3648_v63  ;;  %v1081_v60 = vmul.f32 %v3206_v42, %v13666_v45  ;;  %v4480_v25 = vrot.slane %v10980_v35, 4  ;;  %v4505_v49 = vunpack.c.l.bf16 %v13667_v56 }
 0x16c   : > { %v13668_v3 = vmov %v13658_v6  ;;  %v1247_v59 = vsel %vm1158_vm2, %v1237_v5, %v1246_v11  ;;  %v11052_v51 = vor.u32 %v3660_v13, %v3657_v19  ;;  %v792_v39 = vunpack.c.l.bf16 %v10713_v50  ;;  %v11068_v13 = vpop.permute.xlu0 %1764 }
 0x16d   : > { %13664 = vst [vmem:[#allocation38_spill] sm:$0xff] %v11035_v54  ;;  %v4700_v4 = vsel %vm2553_vm3, %v13668_v3, %v4699_v7  ;;  %8674 = vmatprep.mubr.bf16.mxu0 %v1247_v59  ;;  %v1103_v42 = vpack.c.bf16 %v1081_v60, %v1080_v24  ;;  %v11055_v9 = vsel %vm655_vm1, %v4478_v26, %v4480_v25  ;;  %v793_v1 = vunpack.c.h.bf16 %v10713_v50  ;;  %v11073_v24 = vpop.permute.xlu1 %5431 }
 0x16e   : > { %v4506_v63 = vunpack.c.h.bf16 %v13667_v56  ;;  %v13669_v40 = vrot.slane %v13604_v17, 7  ;;  %v4703_v45 = vrot.slane %v13670_v48, 7  ;;  %v3662_v19 = vsel %vm1158_vm2, %v11035_v54, %v11052_v51  ;;  %2455 = vperm.xlu1 %9431, %v11045_v58   ;;  %v13673_v56 = vld [vmem:[#allocation41_spill] sm:$0xff] }
 0x16f   : > { %v11070_v5 = vpack.c.bf16 %v4793_v41, %v4792_v27  ;;  %8818 = vmatprep.mubr.bf16.mxu1 %v3662_v19  ;;  %v1249_v50 = vshrl.u32 %v1103_v42, 16  ;;  %v1252_v26 = vshll.u32 %v1103_v42, 16  ;;  %v1082_v60 = vmul.f32 %v10518_v20, %v792_v39 }
 0x170   : > { %v4702_v23 = vsel %vm2553_vm3, %v4699_v7, %v13669_v40  ;;  %v11075_v7 = vmul.f32 %v4700_v4, %v4505_v49  ;;  %v4507_v3 = vunpack.c.l.bf16 %v13673_v56  ;;  %v1083_v59 = vmul.f32 %v10532_v8, %v793_v1  ;;  %v11089_v8 = vpop.permute.xlu0 %1774 }
 0x171   : > { %13671 = vst [vmem:[#allocation54_spill] sm:$0xff] %v11070_v5  ;;  %v3496_v40 = vmul.f32 %v10757_v61, %v792_v39  ;;  %v1251_v48 = vrot.slane %v1249_v50, 3  ;;  %v1254_v6 = vrot.slane %v1252_v26, 4  ;;  %v3497_v41 = vmul.f32 %v10780_v14, %v793_v1  ;;  %v11097_v50 = vpop.permute.xlu1 %5439  ;;  %v13678_v5 = vld [vmem:[#allocation50_spill] sm:$0xff] }
 0x172   : > { %13672 = vst [vmem:[#allocation55_spill] sm:$0xff] %v11075_v7  ;;  %v13411_v27 = vrot.slane %v10983_v15, 4  ;;  %v4508_v42 = vunpack.c.h.bf16 %v13673_v56  ;;  %v13674_v20 = vrot.slane %v13604_v17, 7  ;;  %v13675_v49 = vrot.slane %v13614_v16, 7 }
 0x173   : > { %v1104_v54 = vpack.c.bf16 %v1083_v59, %v1082_v60  ;;  %v1255_v61 = vor.u32 %v1254_v6, %v1251_v48  ;;  %v3519_v39 = vpack.c.bf16 %v3497_v41, %v3496_v40  ;;  %v794_v1 = vunpack.c.l.bf16 %v10718_v36  ;;  %v13677_v60 = vld [vmem:[#allocation49_spill] sm:$0xff] }
 0x174   : > { %v4704_v19 = vsel %vm2553_vm3, %v13674_v20, %v4703_v45  ;;  %v4706_v4 = vsel %vm2553_vm3, %v4703_v45, %v13675_v49  ;;  %v11094_v14 = vsel %vm655_vm1, %v4480_v25, %v13411_v27  ;;  %v11099_v17 = vmul.f32 %v4702_v23, %v4506_v63  ;;  %v11104_v27 = vpop.permute.xlu0 %1784 }
 0x175   : > { %v1258_v26 = vshrl.u32 %v1104_v54, 16  ;;  %v1261_v56 = vshll.u32 %v1104_v54, 16  ;;  %v795_v45 = vunpack.c.h.bf16 %v10718_v36  ;;  %v4707_v59 = vrot.slane %v13677_v60, 7  ;;  %v11108_v36 = vpop.permute.xlu1 %5447 }
 0x176   : > { %13676 = vst [vmem:[#allocation40_spill] sm:$0xff] %v11099_v17  ;;  %v1256_v6 = vsel %vm1158_vm2, %v1246_v11, %v1255_v61  ;;  %v3664_v40 = vshrl.u32 %v3519_v39, 16  ;;  %v3667_v48 = vshll.u32 %v3519_v39, 16  ;;  %v4796_v41 = vmul.f32 %v4704_v19, %v4507_v3 }
 0x177   : > { %v4797_v20 = vmul.f32 %v4706_v4, %v4508_v42  ;;  %8675 = vmatmul.mubr.bf16.gmra.mrb[48].mxu0 %v1256_v6  ;;  %v1260_v25 = vrot.slane %v1258_v26, 3  ;;  %v1263_v49 = vrot.slane %v1261_v56, 4  ;;  %v4509_v63 = vunpack.c.l.bf16 %v13678_v5 }
 0x178   : > { %v3666_v23 = vrot.slane %v3664_v40, 3  ;;  %v3669_v17 = vrot.slane %v3667_v48, 4  ;;  %v1084_v54 = vmul.f32 %v10535_v2, %v794_v1  ;;  %v1085_v11 = vmul.f32 %v10538_v31, %v795_v45  ;;  %v9498_v31 = vld [vmem:[%s13335_s4 + $0x108] sm:$0xff]  }
 0x179   : > { %v1264_v60 = vor.u32 %v1263_v49, %v1260_v25  ;;  %v3498_v39 = vmul.f32 %v10792_v43, %v794_v1  ;;  %v3499_v3 = vmul.f32 %v10801_v53, %v795_v45  ;;  %v4510_v42 = vunpack.c.h.bf16 %v13678_v5  ;;  %v11125_v43 = vpop.permute.xlu0 %1799  ;;  %v13682_v5 = vld [vmem:[#allocation46_spill] sm:$0xff]  ;;  %v13683_v45 = vld [vmem:[#allocation48_spill] sm:$0xff] }
 0x17a   : > { %v13679_v19 = vrot.slane %v13614_v16, 7  ;;  %v13680_v26 = vrot.slane %v13628_v62, 7  ;;  %v3670_v2 = vor.u32 %v3669_v17, %v3666_v23  ;;  %v1105_v40 = vpack.c.bf16 %v1085_v11, %v1084_v54  ;;  %v11133_v17 = vpop.permute.xlu1 %5455 }
 0x17b   : > { %v1265_v6 = vsel %vm1158_vm2, %v1255_v61, %v1264_v60  ;;  %v3520_v48 = vpack.c.bf16 %v3499_v3, %v3498_v39  ;;  %v796_v53 = vunpack.c.l.bf16 %v10861_v38  ;;  %v11127_v16 = vpack.c.bf16 %v4797_v20, %v4796_v41  ;;  %13684 = vst [vmem:[#allocation41_spill] sm:$0xff] %v11133_v17  ;;  %v9560_v41 = vld [vmem:[%s13335_s4 + $0x100] sm:$0xff]   ;;  %v13691_v17 = vld [vmem:[#allocation58_spill] sm:$0xff] }
 0x17c   : > { %v4708_v4 = vsel %vm2553_vm3, %v13679_v19, %v4707_v59  ;;  %v4710_v56 = vsel %vm2553_vm3, %v4707_v59, %v13680_v26  ;;  %8678 = vmatprep.mubr.bf16.mxu0 %v1265_v6  ;;  %v3671_v61 = vsel %vm1158_vm2, %v11052_v51, %v3670_v2  ;;  %v1267_v59 = vshrl.u32 %v1105_v40, 16 }
 0x17d   : > { %13681 = vst [vmem:[#allocation47_spill] sm:$0xff] %v11127_v16  ;;  %8819 = vmatmul.mubr.bf16.vlgmr.msra.gmra.mrb[0].mxu1 %v3671_v61  ;;  %v1270_v49 = vshll.u32 %v1105_v40, 16  ;;  %v3673_v23 = vshrl.u32 %v3520_v48, 16  ;;  %v3676_v54 = vshll.u32 %v3520_v48, 16  ;;  %v11135_v11 = vmul.f32 %v4708_v4, %v4509_v63  ;;  %v9500_v63 = vld [vmem:[%s13335_s4 + $0x110] sm:$0xff]   ;;  %v13687_v4 = vld [vmem:[#allocation56_spill] sm:$0xff] }
 0x17e   : > { %v11137_v39 = vmul.f32 %v4710_v56, %v4510_v42  ;;  %8835 = vmatpush3.bf16.msra.mxu1 %v9560_v41  ;;  %v797_v20 = vunpack.c.h.bf16 %v10861_v38  ;;  %v1086_v51 = vmul.f32 %v10545_v32, %v796_v53  ;;  %v1269_v3 = vrot.slane %v1267_v59, 3  ;;  %v11147_v42 = vpop.permute.xlu0 %1809  ;;  %v13688_v40 = vld [vmem:[#allocation51_spill] sm:$0xff]  ;;  %v11153_v32 = vpop.permute.xlu1 %5463  ;;  %v11394_v16 = vld [vmem:[%s13332_s1 + $0xa0] sm:$0xff] }
 0x17f   : > { %13685 = vst [vmem:[#allocation49_spill] sm:$0xff] %v11135_v11  ;;  %v1272_v19 = vrot.slane %v1270_v49, 4  ;;  %v3675_v26 = vrot.slane %v3673_v23, 3  ;;  %v3678_v6 = vrot.slane %v3676_v54, 4  ;;  %8836 = vmatprep.subr.bf16.mxu1 %v9498_v31  ;;  %v4711_v56 = vrot.slane %v13687_v4, 7  ;;  %13689 = vst [vmem:[#allocation46_spill] sm:$0xff] %v11153_v32 }
 0x180   : > { %13686 = vst [vmem:[#allocation50_spill] sm:$0xff] %v11137_v39  ;;  %v1087_v61 = vmul.f32 %v10564_v44, %v797_v20  ;;  %v3500_v38 = vmul.f32 %v10822_v22, %v796_v53  ;;  %v13690_v59 = vld [vmem:[#allocation59_spill] sm:$0xff]  ;;  %v3501_v41 = vmul.f32 %v10835_v29, %v797_v20  ;;  %v798_v4 = vunpack.c.l.bf16 %v10866_v12  ;;  %v9502_v29 = vld [vmem:[%s13335_s4 + $0x118] sm:$0xff]  }
 0x181   : > { %v4511_v49 = vunpack.c.l.bf16 %v13690_v59  ;;  %v1273_v23 = vor.u32 %v1272_v19, %v1269_v3  ;;  %v3679_v54 = vor.u32 %v3678_v6, %v3675_v26  ;;  %v4512_v25 = vunpack.c.h.bf16 %v13690_v59  ;;  %v13692_v3 = vld [vmem:[#allocation65_spill] sm:$0xff]  ;;  %v13694_v6 = vld [vmem:[#allocation23_spill] sm:$0xff] }
 0x182   : > { %8837 = vmatpush3.bf16.msra.mxu1 %v9498_v31  ;;  %v1106_v1 = vpack.c.bf16 %v1087_v61, %v1086_v51  ;;  %v799_v48 = vunpack.c.h.bf16 %v10866_v12  ;;  %v4715_v44 = vrot.slane %v13691_v17, 7  ;;  %v3521_v32 = vpack.c.bf16 %v3501_v41, %v3500_v38  ;;  %v11166_v20 = vpop.permute.xlu0 %1819  ;;  %v11170_v19 = vpop.permute.xlu1 %5471 }
 0x183   : > { %v1274_v22 = vsel %vm1158_vm2, %v1264_v60, %v1273_v23  ;;  %v3680_v53 = vsel %vm1158_vm2, %v3670_v2, %v3679_v54  ;;  %8838 = vmatprep.subr.bf16.mxu1 %v9500_v63  ;;  %v1088_v12 = vmul.f32 %v10577_v18, %v798_v4  ;;  %13693 = vst [vmem:[#allocation48_spill] sm:$0xff] %v11170_v19  ;;  %v13695_v38 = vrot.slane %v13628_v62, 7 }
 0x184   : > { %8679 = vmatmul.mubr.bf16.gmra.mrb[52].mxu0 %v1274_v22  ;;  %8822 = vmatprep.mubr.bf16.mxu1 %v3680_v53  ;;  %v1276_v31 = vshrl.u32 %v1106_v1, 16  ;;  %v1279_v51 = vshll.u32 %v1106_v1, 16  ;;  %v1089_v17 = vmul.f32 %v13692_v3, %v799_v48  ;;  %v3682_v60 = vshrl.u32 %v3521_v32, 16 }
 0x185   : > { %v3685_v2 = vshll.u32 %v3521_v32, 16  ;;  %v3502_v26 = vmul.f32 %v10840_v28, %v798_v4  ;;  %v3503_v61 = vmul.f32 %v13694_v6, %v799_v48  ;;  %v4712_v59 = vsel %vm2553_vm3, %v13695_v38, %v4711_v56  ;;  %v9504_v28 = vld [vmem:[%s13335_s4 + $0x120] sm:$0xff]  }
 0x186   : > { %v1278_v41 = vrot.slane %v1276_v31, 3  ;;  %v1281_v22 = vrot.slane %v1279_v51, 4  ;;  %v1107_v53 = vpack.c.bf16 %v1089_v17, %v1088_v12  ;;  %8839 = vmatpush3.bf16.msra.mxu1 %v9500_v63  ;;  %v13696_v18 = vrot.slane %v13634_v0, 7  ;;  %v11183_v48 = vpop.permute.xlu0 %1829  ;;  %v11188_v51 = vpop.permute.xlu1 %5479  ;;  %v769_v0 = vld [vmem:[#allocation2 + $0x80] ss:$16 sps:$4 sm:$0xff]  }
 0x187   : > { %v3684_v3 = vrot.slane %v3682_v60, 3  ;;  %v3687_v19 = vrot.slane %v3685_v2, 4  ;;  %v3522_v39 = vpack.c.bf16 %v3503_v61, %v3502_v26  ;;  %8840 = vmatprep.subr.bf16.mxu1 %v9502_v29  ;;  %13698 = vst [vmem:[#allocation56_spill] sm:$0xff] %v11188_v51 }
 0x188   : > { %v4714_v1 = vsel %vm2553_vm3, %v4711_v56, %v13696_v18  ;;  %v13697_v62 = vmov %v13696_v18  ;;  %v1282_v4 = vor.u32 %v1281_v22, %v1278_v41  ;;  %v1285_v63 = vshrl.u32 %v1107_v53, 16  ;;  %v13699_v56 = vld [vmem:[#allocation62_spill] sm:$0xff] }
 0x189   : > { %v4716_v32 = vsel %vm2553_vm3, %v13697_v62, %v4715_v44  ;;  %v1288_v31 = vshll.u32 %v1107_v53, 16  ;;  %v4513_v12 = vunpack.c.l.bf16 %v13699_v56  ;;  %v3688_v17 = vor.u32 %v3687_v19, %v3684_v3 }
 0x18a   : > { %v3691_v60 = vshrl.u32 %v3522_v39, 16  ;;  %v3694_v2 = vshll.u32 %v3522_v39, 16  ;;  %v4514_v26 = vunpack.c.h.bf16 %v13699_v56  ;;  %v1283_v6 = vsel %vm1158_vm2, %v1273_v23, %v1282_v4  ;;  %8841 = vmatpush3.bf16.msra.mxu1 %v9502_v29  ;;  %v11197_v19 = vpop.permute.xlu0 %1844 }
 0x18b   : > { %v1287_v61 = vrot.slane %v1285_v63, 3  ;;  %v1290_v38 = vrot.slane %v1288_v31, 4  ;;  %v13700_v18 = vrot.slane %v13638_v47, 7  ;;  %8682 = vmatprep.mubr.bf16.mxu0 %v1283_v6  ;;  %v3689_v22 = vsel %vm1158_vm2, %v3679_v54, %v3688_v17  ;;  %8842 = vmatprep.subr.bf16.mxu1 %v9504_v28  ;;  %v13703_v63 = vld [vmem:[#allocation61_spill] sm:$0xff] }
 0x18c   : > { %v3693_v53 = vrot.slane %v3691_v60, 3  ;;  %v3696_v62 = vrot.slane %v3694_v2, 4  ;;  %v11199_v39 = vmul.f32 %v4712_v59, %v4511_v49  ;;  %v11201_v3 = vmul.f32 %v4714_v1, %v4512_v25  ;;  %8823 = vmatmul.mubr.bf16.gmra.mrb[4].mxu1 %v3689_v22  ;;  %v11213_v49 = vpop.permute.xlu1 %1824  ;;  %v13706_v1 = vld [vmem:[#allocation57_spill] sm:$0xff]  ;;  %v13709_v22 = vld [vmem:[#allocation67_spill] sm:$0xff] }
 0x18d   : > { %v4718_v41 = vsel %vm2553_vm3, %v4715_v44, %v13700_v18  ;;  %v11203_v23 = vor.u32 %v1290_v38, %v1287_v61  ;;  %v800_v29 = vunpack.c.l.bf16 %v10980_v35  ;;  %v9506_v44 = vld [vmem:[%s13335_s4 + $0x128] sm:$0xff]   ;;  %v4719_v54 = vrot.slane %v13703_v63, 7 }
 0x18e   : > { %13701 = vst [vmem:[#allocation51_spill] sm:$0xff] %v11199_v39  ;;  %13702 = vst [vmem:[#allocation59_spill] sm:$0xff] %v11201_v3  ;;  %v11210_v31 = vor.u32 %v3696_v62, %v3693_v53  ;;  %v801_v56 = vunpack.c.h.bf16 %v10980_v35  ;;  %v802_v60 = vunpack.c.l.bf16 %v769_v0  ;;  %v11215_v25 = vmul.f32 %v4716_v32, %v4513_v12  ;;  %8843 = vmatpush3.bf16.msra.mxu1 %v9504_v28  ;;  %v13707_v61 = vld [vmem:[#allocation70_spill] sm:$0xff]  ;;  %v9508_v32 = vld [vmem:[%s13335_s4 + $0x130] sm:$0xff]   ;;  %v11230_v12 = vpop.permute.xlu0 %1849 }
 0x18f   : > { %v11217_v59 = vmul.f32 %v4718_v41, %v4514_v26  ;;  %v1292_v6 = vsel %vm1158_vm2, %v1282_v4, %v11203_v23  ;;  %v4515_v38 = vunpack.c.l.bf16 %v13707_v61  ;;  %v13708_v35 = vld [vmem:[#allocation66_spill] sm:$0xff]  ;;  %13710 = vst [vmem:[#allocation23_spill] sm:$0xff] %v11230_v12  ;;  %v3504_v4 = vmul.f32 %v10895_v46, %v800_v29  ;;  %v13711_v26 = vld [vmem:[#allocation4_spill] sm:$0xff]  ;;  %8844 = vmatprep.subr.bf16.mxu1 %v9506_v44 }
 0x190   : > { %13704 = vst [vmem:[#allocation58_spill] sm:$0xff] %v11215_v25  ;;  %8683 = vmatmul.mubr.bf16.gmra.mrb[56].mxu0 %v1292_v6  ;;  %v3698_v18 = vsel %vm1158_vm2, %v3688_v17, %v11210_v31  ;;  %v1090_v0 = vmul.f32 %v13708_v35, %v800_v29  ;;  %v1091_v53 = vmul.f32 %v13709_v22, %v801_v56  ;;  %v13712_v41 = vrot.slane %v13711_v26, 1  ;;  %v11382_v12 = vld [vmem:[#allocation2 + $0x18] sm:$0xff] }
 0x191   : > { %13705 = vst [vmem:[#allocation65_spill] sm:$0xff] %v11217_v59  ;;  %8826 = vmatprep.mubr.bf16.mxu1 %v3698_v18  ;;  %v3505_v28 = vmul.f32 %v10906_v30, %v801_v56  ;;  %v3217_v17 = vunpack.c.l.bf16 %v10983_v15  ;;  %v4516_v63 = vunpack.c.h.bf16 %v13707_v61  ;;  %v13713_v6 = vrot.slane %v13638_v47, 7  ;;  %v11251_v47 = vld [vmem:[%s13335_s4 + $0x80] sm:$0xff]  }
 0x192   : > { %v1092_v62 = vmul.f32 %v13712_v41, %v802_v60  ;;  %v1108_v22 = vpack.c.bf16 %v1091_v53, %v1090_v0  ;;  %v3218_v2 = vunpack.c.h.bf16 %v10983_v15  ;;  %v13714_v18 = vrot.slane %v13641_v52, 7  ;;  %8845 = vmatpush3.bf16.msra.mxu1 %v9506_v44  ;;  %v11246_v60 = vpop.permute.xlu1 %5483  ;;  %8738 = vmatprep.subr.bf16.mxu0 %v11251_v47 }
 0x193   : > { %v4720_v35 = vsel %vm2553_vm3, %v13713_v6, %v4719_v54  ;;  %v3523_v30 = vpack.c.bf16 %v3505_v28, %v3504_v4  ;;  %v3506_v56 = vmul.f32 %v10928_v10, %v3217_v17  ;;  %13715 = vst [vmem:[#allocation62_spill] sm:$0xff] %v11246_v60  ;;  %8846 = vmatprep.subr.bf16.mxu1 %v9508_v32  ;;  %v11257_v4 = vpop.permute.xlu0 %1864  ;;  %v13416_v41 = vmov 7  }
 0x194   : > { %v4722_v46 = vsel %vm2553_vm3, %v4719_v54, %v13714_v18  ;;  %v1109_v29 = vpack.c.bf16 %v1092_v62, %v1092_v62  ;;  %v1294_v61 = vshrl.u32 %v1108_v22, 16  ;;  %v1297_v0 = vshll.u32 %v1108_v22, 16  ;;  %v9510_v54 = vld [vmem:[%s13335_s4 + $0x138] sm:$0xff]   ;;  %13716 = vst [vmem:[#allocation61_spill] sm:$0xff] %v11257_v4  ;;  %9461 = vset.pattern.permute.xlu0 %v13416_v41  ;;  %9432 = vset.pattern.permute.xlu1 %v13416_v41  ;;  %v13718_v22 = vld [vmem:[#allocation19_spill] sm:$0xff] }
 0x195   : > { %v3507_v53 = vmul.f32 %v10949_v57, %v3218_v2  ;;  %v3700_v10 = vshrl.u32 %v3523_v30, 16  ;;  %v3703_v44 = vshll.u32 %v3523_v30, 16  ;;  %v13717_v62 = vld [vmem:[#allocation64_spill] sm:$0xff]  ;;  %6305 = vperm.xlu0 %9461, %v13718_v22   ;;  %6310 = vperm.xlu1 %9432, %v10937_v55   ;;  %v11267_v59 = vmul.f32 %v4720_v35, %v4515_v38  ;;  %v13723_v55 = vld [vmem:[#allocation10_spill] sm:$0xff] }
 0x196   : > { %v1303_v28 = vshrl.u32 %v1109_v29, 16  ;;  %v1306_v26 = vshll.u32 %v1109_v29, 16  ;;  %v4723_v17 = vrot.slane %v13717_v62, 7  ;;  %v1296_v6 = vrot.slane %v1294_v61, 3  ;;  %8847 = vmatpush3.bf16.msra.mxu1 %v9508_v32  ;;  %v11264_v29 = vpop.permute.xlu1 %5491  ;;  %v11277_v32 = vld [vmem:[%s13335_s4 + $0x140] sm:$0xff]  }
 0x197   : > { %v1299_v57 = vrot.slane %v1297_v0, 4  ;;  %v3524_v2 = vpack.c.bf16 %v3507_v53, %v3506_v56  ;;  %v3702_v18 = vrot.slane %v3700_v10, 3  ;;  %v3705_v60 = vrot.slane %v3703_v44, 4  ;;  %13719 = vst [vmem:[#allocation57_spill] sm:$0xff] %v11264_v29  ;;  %13720 = vst [vmem:[#allocation70_spill] sm:$0xff] %v11267_v59  ;;  %8848 = vmatprep.subr.bf16.mxu1 %v9510_v54  ;;  %v11269_v56 = vpop.permute.xlu0 %1879 }
 0x198   : > { %v1305_v51 = vrot.slane %v1303_v28, 3  ;;  %v1308_v30 = vrot.slane %v1306_v26, 4  ;;  %13721 = vst [vmem:[#allocation66_spill] sm:$0xff] %v11269_v56  ;;  %v11271_v0 = vmul.f32 %v4722_v46, %v4516_v63  ;;  %v4517_v53 = vunpack.c.l.bf16 %v13723_v55  ;;  %v13724_v28 = vld [vmem:[#allocation69_spill] sm:$0xff]  ;;  %v11283_v63 = vld [vmem:[#allocation2 + $0x8] sm:$0xff]  ;;  %v13736_v56 = vld [vmem:[#allocation16_spill] sm:$0xff] }
 0x199   : > { %v1300_v41 = vor.u32 %v1299_v57, %v1296_v6  ;;  %v3709_v62 = vshrl.u32 %v3524_v2, 16  ;;  %v3712_v61 = vshll.u32 %v3524_v2, 16  ;;  %v3706_v10 = vor.u32 %v3705_v60, %v3702_v18  ;;  %v3186_v57 = vld [vmem:[#allocation2 + $0x88] sm:$0xf]  ;;  %v13725_v2 = vld [vmem:[#allocation52_spill] sm:$0xff] }
 0x19a   : > { %13722 = vst [vmem:[#allocation67_spill] sm:$0xff] %v11271_v0  ;;  %v1309_v44 = vor.u32 %v1308_v30, %v1305_v51  ;;  %v4727_v38 = vrot.slane %v13724_v28, 7  ;;  %6325 = vperm.xlu0 %9461, %v13725_v2   ;;  %v13726_v46 = vmov 2   ;;  %v13727_v51 = vld [vmem:[#allocation60_spill] sm:$0xff]  ;;  %v13728_v22 = vrot.slane %v13641_v52, 7  ;;  %8849 = vmatpush3.bf16.msra.mxu1 %v9510_v54  ;;  %v13731_v2 = vld [vmem:[#allocation63_spill] sm:$0xff] }
 0x19b   : > { %v1301_v35 = vsel %vm1158_vm2, %v11203_v23, %v1300_v41  ;;  %v3711_v26 = vrot.slane %v3709_v62, 3  ;;  %v3714_v6 = vrot.slane %v3712_v61, 4  ;;  %9433 = vset.pattern.permute.xlu1 %v13726_v46  ;;  %v3707_v30 = vsel %vm1158_vm2, %v11210_v31, %v3706_v10  ;;  %v11296_v62 = vld [vmem:[%s13332_s1 + $0x40] sm:$0xff]  ;;  %v11298_v61 = vpop.permute.xlu1 %5495  ;;  %v13732_v60 = vld [vmem:[#allocation12_spill] sm:$0xff]  ;;  %v11305_v31 = vpop.permute.xlu0 %1889  ;;  %8882 = vmatprep.subr.bf16.mxu1 %v11277_v32 }
 0x19c   : > { %v4724_v18 = vsel %vm2553_vm3, %v13728_v22, %v4723_v17  ;;  %8686 = vmatprep.mubr.bf16.mxu0 %v1301_v35  ;;  %v1310_v23 = vsel %vm1158_vm2, %v1300_v41, %v1309_v44  ;;  %13729 = vst [vmem:[#allocation4_spill] sm:$0xff] %v11296_v62  ;;  %13730 = vst [vmem:[#allocation64_spill] sm:$0xff] %v11298_v61  ;;  %v4518_v28 = vunpack.c.h.bf16 %v13723_v55  ;;  %v4731_v22 = vrot.slane %v13732_v60, 7  ;;  %v13734_v41 = vld [vmem:[#allocation31_spill] sm:$0xff] }
 0x19d   : > { %8827 = vmatmul.mubr.bf16.gmra.mrb[8].mxu1 %v3707_v30  ;;  %8687 = vmatmul.mubr.bf16.gmra.mrb[60].mxu0 %v1310_v23  ;;  %v11303_v35 = vor.u32 %v3714_v6, %v3711_v26  ;;  %13733 = vst [vmem:[#allocation19_spill] sm:$0xff] %v11305_v31  ;;  %v13735_v44 = vrot.slane %v13734_v41, 7  ;;  %v4519_v54 = vunpack.c.l.bf16 %v13736_v56  ;;  %v3219_v0 = vunpack.c.l.bf16 %v3186_v57  ;;  %v13739_v57 = vld [vmem:[#allocation34_spill] sm:$0xff]  ;;  %v13741_v23 = vld [vmem:[#allocation20_spill] sm:$0xff]  ;;  %v1602_v41 = vld [vmem:[#allocation2 + $0x10] sm:$0xff] }
 0x19e   : > { %v1635_v61 = vrot.slane %v11283_v63, 4  ;;  %2459 = vperm.xlu1 %9433, %v11296_v62   ;;  %v11314_v55 = vmul.f32 %v4724_v18, %v4517_v53  ;;  %v4520_v26 = vunpack.c.h.bf16 %v13736_v56  ;;  %6345 = vperm.xlu0 %9461, %v11296_v62   ;;  %v13740_v30 = vrot.slane %v13739_v57, 7  ;;  %v13742_v18 = vld [vmem:[#allocation25_spill] sm:$0xff] }
 0x19f   : > { %v4726_v29 = vsel %vm2553_vm3, %v4723_v17, %v13735_v44  ;;  %v13738_v6 = vmov %v13735_v44  ;;  %v3716_v17 = vsel %vm1158_vm2, %v3706_v10, %v11303_v35  ;;  %v4521_v44 = vunpack.c.l.bf16 %v13741_v23  ;;  %13770 = vst [vmem:[#allocation25_spill] sm:$0xff] %v11394_v16 }
 0x1a0   : > { %13737 = vst [vmem:[#allocation10_spill] sm:$0xff] %v11314_v55  ;;  %v4728_v60 = vsel %vm2553_vm3, %v13738_v6, %v4727_v38  ;;  %v4730_v63 = vsel %vm2553_vm3, %v4727_v38, %v13740_v30  ;;  %v4522_v53 = vunpack.c.h.bf16 %v13741_v23  ;;  %8830 = vmatprep.mubr.bf16.mxu1 %v3716_v17  ;;  %v13743_v56 = vrot.slane %v13742_v18, 1  ;;  %v11333_v6 = vld [vmem:[%s13332_s1 + $0x60] sm:$0xff]  ;;  %v13748_v17 = vld [vmem:[#allocation72_spill] sm:$0xff]  ;;  %v11346_v18 = vpop.permute.xlu1 %1834 }
 0x1a1   : > { %v11335_v10 = vmul.f32 %v4726_v29, %v4518_v28  ;;  %v13745_v31 = vmov %v13740_v30  ;;  %v13746_v30 = vld [vmem:[#allocation36_spill] sm:$0xff]  ;;  %v13749_v59 = vrot.slane %v13748_v17, 4  ;;  %v11350_v25 = vmul.f32 %v4728_v60, %v4519_v54  ;;  %v13759_v60 = vld [vmem:[#allocation71_spill] sm:$0xff]  ;;  %v13765_v28 = vld [vmem:[#allocation73_spill] sm:$0xff] }
 0x1a2   : > { %v3508_v52 = vmul.f32 %v13743_v56, %v3219_v0  ;;  %v4732_v38 = vsel %vm2553_vm3, %v13745_v31, %v4731_v22  ;;  %v13747_v55 = vrot.slane %v13746_v30, 7  ;;  %v11348_v56 = vpop.permute.xlu0 %1904  ;;  %v13752_v29 = vld [vmem:[#allocation68_spill] sm:$0xff]  ;;  %v13754_v31 = vmov 7   ;;  %6365 = vperm.xlu0 %9461, %v11333_v6  }
 0x1a3   : > { %13744 = vst [vmem:[#allocation69_spill] sm:$0xff] %v11335_v10  ;;  %v1636_v0 = vsel %vm655_vm1, %v13749_v59, %v1635_v61  ;;  %13750 = vst [vmem:[#allocation52_spill] sm:$0xff] %v11348_v56  ;;  %v13753_v10 = vld [vmem:[#allocation11_spill] sm:$0xff]  ;;  %9434 = vset.pattern.permute.xlu1 %v13754_v31  ;;  %v11355_v39 = vmul.f32 %v4730_v63, %v4520_v26  ;;  %v1637_v17 = vrot.slane %v1602_v41, 4  ;;  %v13756_v59 = vld [vmem:[#allocation21_spill] sm:$0xff] }
 0x1a4   : > { %v4734_v23 = vsel %vm2553_vm3, %v4731_v22, %v13747_v55  ;;  %13751 = vst [vmem:[#allocation63_spill] sm:$0xff] %v11350_v25  ;;  %v4735_v57 = vrot.slane %v13753_v10, 7  ;;  %v3525_v3 = vpack.c.bf16 %v3508_v52, %v3508_v52  ;;  %v1683_v22 = vunpack.c.l.bf16 %v1636_v0  ;;  %6315 = vperm.xlu1 %9434, %v13756_v59   ;;  %v13760_v56 = vld [vmem:[#allocation45_spill] sm:$0xff]  ;;  %v11372_v59 = vpop.permute.xlu1 %1839 }
 0x1a5   : > { %13755 = vst [vmem:[#allocation12_spill] sm:$0xff] %v11355_v39  ;;  %v1684_v55 = vunpack.c.h.bf16 %v1636_v0  ;;  %v11359_v4 = vmul.f32 %v4732_v38, %v4521_v44  ;;  %v11361_v54 = vmul.f32 %v4734_v23, %v4522_v53  ;;  %v4523_v10 = vunpack.c.l.bf16 %v13760_v56  ;;  %v11368_v52 = vld [vmem:[%s13332_s1 + $0x80] sm:$0xff] }
 0x1a6   : > { %13761 = vst [vmem:[#allocation34_spill] sm:$0xff] %v11368_v52  ;;  %v3718_v26 = vshrl.u32 %v3525_v3, 16  ;;  %v3721_v63 = vshll.u32 %v3525_v3, 16  ;;  %v1907_v41 = vmul.f32 %v11033_v37, %v1683_v22  ;;  %v13762_v0 = vld [vmem:[#allocation5_spill] sm:$0xff]  ;;  %v13763_v44 = vrot.slane %v13746_v30, 7  ;;  %v11384_v37 = vpop.permute.xlu0 %2431  ;;  %6385 = vperm.xlu0 %9461, %v11368_v52   ;;  %v11452_v52 = vld [vmem:[#allocation2 + $0x28] sm:$0xff] }
 0x1a7   : > { %13757 = vst [vmem:[#allocation31_spill] sm:$0xff] %v11359_v4  ;;  %13758 = vst [vmem:[#allocation16_spill] sm:$0xff] %v11361_v54  ;;  %v1908_v39 = vmul.f32 %v13762_v0, %v1684_v55  ;;  %v13764_v38 = vrot.slane %v13663_v21, 7  ;;  %v13766_v4 = vld [vmem:[#allocation13_spill] sm:$0xff]  ;;  %v4015_v3 = vld [vmem:[#allocation2 + $0x8] sm:$0xf0]  ;;  %v1638_v30 = vsel %vm655_vm1, %v1635_v61, %v1637_v17 }
 0x1a8   : > { %v4736_v53 = vsel %vm2553_vm3, %v13763_v44, %v4735_v57  ;;  %v4739_v25 = vrot.slane %v13766_v4, 7  ;;  %13767 = vst [vmem:[#allocation20_spill] sm:$0xff] %v11384_v37  ;;  %v3720_v22 = vrot.slane %v3718_v26, 3  ;;  %v3723_v55 = vrot.slane %v3721_v63, 4  ;;  %v13768_v44 = vld [vmem:[#allocation75_spill] sm:$0xff]  ;;  %v11401_v37 = vld [vmem:[#allocation2 + $0x20] sm:$0xff]  ;;  %v11405_v7 = vpop.permute.xlu1 %5499 }
 0x1a9   : > { %v4738_v23 = vsel %vm2553_vm3, %v4735_v57, %v13764_v38  ;;  %v1939_v0 = vpack.c.bf16 %v1908_v39, %v1907_v41  ;;  %6320 = vperm.xlu1 %9434, %v13768_v44   ;;  %v4524_v57 = vunpack.c.h.bf16 %v13760_v56  ;;  %v13769_v38 = vld [vmem:[#allocation17_spill] sm:$0xff]  ;;  %v1685_v11 = vunpack.c.l.bf16 %v1638_v30  ;;  %v13772_v41 = vld [vmem:[#allocation27_spill] sm:$0xff]  ;;  %13774 = vst [vmem:[#allocation72_spill] sm:$0xff] %v11405_v7 }
 0x1aa   : > { %v4743_v54 = vrot.slane %v13769_v38, 7  ;;  %v1686_v4 = vunpack.c.h.bf16 %v1638_v30  ;;  %v11396_v26 = vmul.f32 %v4736_v53, %v4523_v10  ;;  %v3724_v39 = vor.u32 %v3723_v55, %v3720_v22  ;;  %v13773_v38 = vld [vmem:[#allocation7_spill] sm:$0xff]  ;;  %6405 = vperm.xlu0 %9461, %v11394_v16  }
 0x1ab   : > { %8706 = vmatprep.mubr.bf16.mxu0 %v1939_v0  ;;  %v4097_v61 = vrot.slane %v4015_v3, 4  ;;  %v4100_v63 = vrot.slane %v11382_v12, 4  ;;  %v4525_v44 = vunpack.c.l.bf16 %v13772_v41  ;;  %v4526_v56 = vunpack.c.h.bf16 %v13772_v41 }
 0x1ac   : > { %13771 = vst [vmem:[#allocation36_spill] sm:$0xff] %v11396_v26  ;;  %v1909_v30 = vmul.f32 %v13773_v38, %v1685_v11  ;;  %v1910_v62 = vmul.f32 %v11068_v13, %v1686_v4  ;;  %v13775_v10 = vrot.slane %v13663_v21, 7  ;;  %v13776_v3 = vrot.slane %v13682_v5, 7  ;;  %v11420_v13 = vld [vmem:[%s13332_s1 + $0x58] sm:$0xff]  ;;  %v11422_v11 = vpop.permute.xlu0 %2447  ;;  %v13778_v21 = vld [vmem:[#allocation53_spill] sm:$0xff]  ;;  %v9523_v5 = vld [vmem:[%s13335_s4 + $0x88] sm:$0xff]  }
 0x1ad   : > { %v3725_v55 = vsel %vm1158_vm2, %v11303_v35, %v3724_v39  ;;  %v4099_v0 = vsel %vm655_vm1, %v4097_v61, %v1637_v17  ;;  %13777 = vst [vmem:[#allocation68_spill] sm:$0xff] %v11422_v11  ;;  %v4527_v4 = vunpack.c.l.bf16 %v13778_v21  ;;  %v4101_v35 = vsel %vm655_vm1, %v1637_v17, %v4100_v63  ;;  %v6295_v39 = vld [vmem:[%s13332_s1 + $0xc0] sm:$0xff]  ;;  %v13780_v61 = vld [vmem:[#allocation42_spill] sm:$0xff]  ;;  %9435 = vset.pattern.permute.xlu1 %v13726_v46 }
 0x1ae   : > { %v4740_v53 = vsel %vm2553_vm3, %v13775_v10, %v4739_v25  ;;  %v4742_v22 = vsel %vm2553_vm3, %v4739_v25, %v13776_v3  ;;  %v13779_v41 = vmov %v13776_v3  ;;  %8831 = vmatmul.mubr.bf16.gmra.mrb[12].mxu1 %v3725_v55  ;;  %v1940_v38 = vpack.c.bf16 %v1910_v62, %v1909_v30  ;;  %v13783_v30 = vld [vmem:[#allocation14_spill] sm:$0xff]  ;;  %2471 = vperm.xlu1 %9435, %v11420_v13  }
 0x1af   : > { %v4744_v25 = vsel %vm2553_vm3, %v13779_v41, %v4743_v54  ;;  %v4747_v10 = vrot.slane %v13780_v61, 7  ;;  %8850 = vmatprep.mubr.bf16.mxu1 %v4099_v0  ;;  %v1687_v3 = vunpack.c.l.bf16 %v4101_v35  ;;  %v1688_v7 = vunpack.c.h.bf16 %v4101_v35  ;;  %v11445_v0 = vpop.permute.xlu1 %5507  ;;  %6425 = vperm.xlu0 %9461, %v6295_v39  }
 0x1b0   : > { %v1641_v11 = vrot.slane %v11401_v37, 4  ;;  %v11438_v62 = vmul.f32 %v4738_v23, %v4524_v57  ;;  %v11440_v17 = vmul.f32 %v4740_v53, %v4525_v44  ;;  %v4528_v41 = vunpack.c.h.bf16 %v13778_v21  ;;  %8707 = vmatmul.mubr.bf16.vlgmr.msra.gmra.mrb[32].mxu0 %v1940_v38  ;;  %13784 = vst [vmem:[#allocation71_spill] sm:$0xff] %v11445_v0  ;;  %v13787_v23 = vld [vmem:[#allocation8_spill] sm:$0xff]  ;;  %v13789_v21 = vld [vmem:[#allocation15_spill] sm:$0xff]  ;;  %v11472_v39 = vpop.permute.xlu0 %2463  ;;  %v13794_v38 = vld [vmem:[#allocation22_spill] sm:$0xff] }
 0x1b1   : > { %v11447_v61 = vmul.f32 %v4742_v22, %v4526_v56  ;;  %v13786_v26 = vrot.slane %v13683_v45, 7  ;;  %v1911_v57 = vmul.f32 %v13787_v23, %v1687_v3  ;;  %v1912_v44 = vmul.f32 %v11089_v8, %v1688_v7  ;;  %v11460_v0 = vld [vmem:[#allocation2 + $0x30] sm:$0xff]  ;;  %8739 = vmatpush3.bf16.msra.mxu0 %v11251_v47  ;;  %v11470_v8 = vld [vmem:[#allocation2 + $0x88] sm:$0x1f]  ;;  %13791 = vst [vmem:[#allocation13_spill] sm:$0xff] %v11472_v39 }
 0x1b2   : > { %13781 = vst [vmem:[#allocation11_spill] sm:$0xff] %v11438_v62  ;;  %13782 = vst [vmem:[#allocation21_spill] sm:$0xff] %v11440_v17  ;;  %v11456_v53 = vmul.f32 %v4744_v25, %v4527_v4  ;;  %v4529_v55 = vunpack.c.l.bf16 %v11055_v9  ;;  %v1642_v56 = vsel %vm655_vm1, %v4100_v63, %v1641_v11  ;;  %8740 = vmatprep.subr.bf16.mxu0 %v9523_v5  ;;  %v11479_v47 = vrot.slane %v11452_v52, 4  ;;  %v9513_v45 = vld [vmem:[%s13335_s4 + $0x148] sm:$0xff]  }
 0x1b3   : > { %13785 = vst [vmem:[#allocation45_spill] sm:$0xff] %v11447_v61  ;;  %v4746_v16 = vsel %vm2553_vm3, %v4743_v54, %v13786_v26  ;;  %v6298_v54 = vld [vmem:[%s13332_s1 + $0xd8] sm:$0xff]  ;;  %v4748_v7 = vsel %vm2553_vm3, %v13786_v26, %v4747_v10  ;;  %13790 = vst [vmem:[#allocation73_spill] sm:$0xff] %v11470_v8  ;;  %v1941_v22 = vpack.c.bf16 %v1912_v44, %v1911_v57  ;;  %v1689_v4 = vunpack.c.l.bf16 %v1642_v56  ;;  %v13796_v44 = vld [vmem:[#allocation9_spill] sm:$0xff] }
 0x1b4   : > { %13788 = vst [vmem:[#allocation5_spill] sm:$0xff] %v11456_v53  ;;  %v1690_v25 = vunpack.c.h.bf16 %v1642_v56  ;;  %v11474_v3 = vmul.f32 %v4746_v16, %v4528_v41  ;;  %v4751_v53 = vrot.slane %v13794_v38, 7  ;;  %13795 = vst [vmem:[#allocation17_spill] sm:$0xff] %v11479_v47  ;;  %9436 = vset.pattern.permute.xlu1 %v13754_v31  ;;  %v4530_v57 = vunpack.c.h.bf16 %v11055_v9  ;;  %6440 = vperm.xlu0 %9461, %v6298_v54   ;;  %v11489_v38 = vpop.permute.xlu1 %5511  ;;  %v13808_v17 = vld [vmem:[#allocation26_spill] sm:$0xff] }
 0x1b5   : > { %v1913_v26 = vmul.f32 %v13796_v44, %v1689_v4  ;;  %8710 = vmatprep.mubr.bf16.mxu0 %v1941_v22  ;;  %v1645_v41 = vrot.slane %v11460_v0, 4  ;;  %13797 = vst [vmem:[#allocation27_spill] sm:$0xff] %v11489_v38  ;;  %v13798_v23 = vrot.slane %v13688_v40, 7  ;;  %v4105_v9 = vsel %vm655_vm1, %v1641_v11, %v11479_v47  ;;  %v13800_v4 = vld [vmem:[#allocation77_spill] sm:$0xff]  ;;  %v9514_v44 = vld [vmem:[%s13335_s4 + $0x150] sm:$0xff]   ;;  %8741 = vmatpush3.bf16.msra.mxu0 %v9523_v5  ;;  %v11528_v38 = vpop.permute.xlu0 %2467  ;;  %v13807_v5 = vld [vmem:[#allocation44_spill] sm:$0xff] }
 0x1b6   : > { %13792 = vst [vmem:[#allocation75_spill] sm:$0xff] %v11474_v3  ;;  %v1914_v16 = vmul.f32 %v11104_v27, %v1690_v25  ;;  %v11494_v3 = vmul.f32 %v4748_v7, %v4529_v55  ;;  %8851 = vmatmul.mubr.bf16.vlgmr.msra.gmra.mrb[16].mxu1 %v4101_v35  ;;  %6330 = vperm.xlu1 %9436, %v13800_v4   ;;  %v11500_v27 = vld [vmem:[#allocation2 + $0x38] sm:$0xff]  ;;  %v1691_v25 = vunpack.c.l.bf16 %v4105_v9  ;;  %v6299_v55 = vld [vmem:[%s13332_s1 + $0xe0] sm:$0xff]  ;;  %v4531_v11 = vunpack.c.l.bf16 %v11094_v14 }
 0x1b7   : > { %v4750_v39 = vsel %vm2553_vm3, %v4747_v10, %v13798_v23  ;;  %8854 = vmatprep.mubr.bf16.mxu1 %v1642_v56  ;;  %v11504_v54 = vsel %vm655_vm1, %v11479_v47, %v1645_v41  ;;  %v1692_v10 = vunpack.c.h.bf16 %v4105_v9  ;;  %8883 = vmatpush3.bf16.msra.mxu1 %v11277_v32  ;;  %v4532_v35 = vunpack.c.h.bf16 %v11094_v14  ;;  %v9525_v32 = vld [vmem:[%s13335_s4 + $0x90] sm:$0xff]   ;;  %v13804_v4 = vld [vmem:[#allocation28_spill] sm:$0xff]  ;;  %13806 = vst [vmem:[#allocation42_spill] sm:$0xff] %v11528_v38 }
 0x1b8   : > { %13799 = vst [vmem:[#allocation7_spill] sm:$0xff] %v11494_v3  ;;  %v1942_v22 = vpack.c.bf16 %v1914_v16, %v1913_v26  ;;  %13801 = vst [vmem:[#allocation53_spill] sm:$0xff] %v11504_v54  ;;  %v13802_v7 = vmov %v13798_v23  ;;  %8884 = vmatprep.subr.bf16.mxu1 %v9513_v45  ;;  %v13803_v26 = vrot.slane %v13706_v1, 7  ;;  %v5311_v16 = vld [vmem:[#allocation2 + $0x10] sm:$0xf8]  ;;  %v13427_v40 = vunpack.c.h.bf16 %v11504_v54  ;;  %v13805_v23 = vld [vmem:[#allocation30_spill] sm:$0xff]  ;;  %6445 = vperm.xlu0 %9461, %v6299_v55   ;;  %v11551_v55 = vpop.permute.xlu1 %1854 }
 0x1b9   : > { %v4752_v56 = vsel %vm2553_vm3, %v13802_v7, %v4751_v53  ;;  %v1915_v7 = vmul.f32 %v13804_v4, %v1691_v25  ;;  %v1916_v61 = vmul.f32 %v13805_v23, %v1692_v10  ;;  %v11530_v47 = vmul.f32 %v4750_v39, %v4530_v57  ;;  %8742 = vmatprep.subr.bf16.mxu0 %v9525_v32 }
 0x1ba   : > { %v4754_v14 = vsel %vm2553_vm3, %v4751_v53, %v13803_v26  ;;  %8711 = vmatmul.mubr.bf16.gmra.mrb[36].mxu0 %v1942_v22  ;;  %v4755_v3 = vrot.slane %v13807_v5, 7  ;;  %v5521_v62 = vrot.slane %v13808_v17, 1  ;;  %v1647_v63 = vrot.slane %v11500_v27, 4  ;;  %9437 = vset.pattern.permute.xlu1 %v13726_v46  ;;  %v13809_v53 = vld [vmem:[#allocation43_spill] sm:$0xff]  ;;  %v6302_v17 = vld [vmem:[%s13332_s1 + $0xf8] sm:$0xff] }
 0x1bb   : > { %v13810_v22 = vrot.slane %v11470_v8, 4  ;;  %v13811_v25 = vrot.slane %v10983_v15, 4  ;;  %v13812_v39 = vunpack.c.l.bf16 %v11504_v54  ;;  %v1943_v23 = vpack.c.bf16 %v1916_v61, %v1915_v7  ;;  %2475 = vperm.xlu1 %9437, %v11333_v6   ;;  %8885 = vmatpush3.bf16.msra.mxu1 %v9513_v45  ;;  %v11560_v61 = vld [vmem:[#allocation2 + $0x40] sm:$0xff]  ;;  %v13814_v7 = vld [vmem:[#allocation32_spill] sm:$0xff] }
 0x1bc   : > { %v11553_v4 = vmul.f32 %v4752_v56, %v4531_v11  ;;  %v11555_v15 = vmul.f32 %v4754_v14, %v4532_v35  ;;  %v5328_v5 = vunpack.c.l.bf16 %v5311_v16  ;;  %8886 = vmatprep.subr.bf16.mxu1 %v9514_v44  ;;  %v1918_v6 = vmul.f32 %v13814_v7, %v13427_v40  ;;  %8743 = vmatpush3.bf16.msra.mxu0 %v9525_v32  ;;  %v9527_v32 = vld [vmem:[%s13335_s4 + $0x98] sm:$0xff]  }
 0x1bd   : > { %v11542_v10 = vsel %vm655_vm1, %v13811_v25, %v13810_v22  ;;  %v1917_v57 = vmul.f32 %v11125_v43, %v13812_v39  ;;  %v11558_v22 = vsel %vm655_vm1, %v1645_v41, %v1647_v63  ;;  %v5329_v43 = vunpack.c.h.bf16 %v5311_v16  ;;  %8714 = vmatprep.mubr.bf16.mxu0 %v1943_v23  ;;  %6460 = vperm.xlu0 %9461, %v6302_v17   ;;  %v9515_v39 = vld [vmem:[%s13335_s4 + $0x158] sm:$0xff]   ;;  %v13817_v23 = vld [vmem:[#allocation74_spill] sm:$0xff]  ;;  %v11590_v17 = vpop.permute.xlu0 %2479 }
 0x1be   : > { %13813 = vst [vmem:[#allocation14_spill] sm:$0xff] %v11558_v22  ;;  %v13429_v45 = vunpack.c.l.bf16 %v11558_v22  ;;  %v13428_v11 = vunpack.c.h.bf16 %v11558_v22  ;;  %v4533_v35 = vunpack.c.l.bf16 %v11542_v10  ;;  %v13815_v41 = vmov %v13803_v26  ;;  %8855 = vmatmul.mubr.bf16.gmra.mrb[20].mxu1 %v4105_v9  ;;  %v13818_v9 = vld [vmem:[#allocation35_spill] sm:$0xff]  ;;  %13819 = vst [vmem:[#allocation8_spill] sm:$0xff] %v11590_v17  ;;  %8744 = vmatprep.subr.bf16.mxu0 %v9527_v32 }
 0x1bf   : > { %v4756_v56 = vsel %vm2553_vm3, %v13815_v41, %v4755_v3  ;;  %v13816_v14 = vrot.slane %v13731_v2, 1  ;;  %v1649_v25 = vrot.slane %v11560_v61, 4  ;;  %v1944_v7 = vpack.c.bf16 %v1918_v6, %v1917_v57  ;;  %8858 = vmatprep.mubr.bf16.mxu1 %v11504_v54  ;;  %9438 = vset.pattern.permute.xlu1 %v13754_v31  ;;  %v13821_v6 = vld [vmem:[#allocation37_spill] sm:$0xff] }
 0x1c0   : > { %v1919_v41 = vmul.f32 %v11147_v42, %v13429_v45  ;;  %v4534_v40 = vunpack.c.h.bf16 %v11542_v10  ;;  %v13820_v26 = vrot.slane %v13727_v51, 7  ;;  %v5526_v1 = vrot.slane %v13821_v6, 1  ;;  %6335 = vperm.xlu1 %9438, %v11027_v33   ;;  %8887 = vmatpush3.bf16.msra.mxu1 %v9514_v44  ;;  %v11604_v10 = vpop.permute.xlu1 %1859  ;;  %v13824_v6 = vld [vmem:[#allocation39_spill] sm:$0xff]  ;;  %v11610_v51 = vld [vmem:[#allocation2 + $0x48] sm:$0xff]  ;;  %v6949_v33 = vld [vmem:[%s13332_s1] sm:$0xff] }
 0x1c1   : > { %v5523_v16 = vsel %vm963_vm0, %v5521_v62, %v13816_v14  ;;  %v1920_v14 = vmul.f32 %v13818_v9, %v13428_v11  ;;  %v11600_v42 = vsel %vm655_vm1, %v1647_v63, %v1649_v25  ;;  %v5617_v9 = vmul.f32 %v5521_v62, %v5328_v5  ;;  %8888 = vmatprep.subr.bf16.mxu1 %v9515_v39  ;;  %v9516_v62 = vld [vmem:[%s13335_s4 + $0x160] sm:$0xff]  }
 0x1c2   : > { %v4758_v57 = vsel %vm2553_vm3, %v4755_v3, %v13820_v26  ;;  %13822 = vst [vmem:[#allocation15_spill] sm:$0xff] %v11600_v42  ;;  %v5618_v11 = vmul.f32 %v5523_v16, %v5329_v43  ;;  %v13433_v17 = vunpack.c.l.bf16 %v11600_v42  ;;  %8715 = vmatmul.mubr.bf16.gmra.mrb[40].mxu0 %v1944_v7  ;;  %v11606_v54 = vmul.f32 %v4756_v56, %v4533_v35  ;;  %v13823_v3 = vld [vmem:[#allocation29_spill] sm:$0xff]  ;;  %v13825_v16 = vld [vmem:[#allocation24_spill] sm:$0xff] }
 0x1c3   : > { %v1945_v45 = vpack.c.bf16 %v1920_v14, %v1919_v41  ;;  %v5524_v26 = vrot.slane %v13823_v3, 1  ;;  %v5530_v38 = vrot.slane %v13824_v6, 1  ;;  %v13434_v63 = vunpack.c.h.bf16 %v11600_v42  ;;  %8745 = vmatpush3.bf16.msra.mxu0 %v9527_v32  ;;  %v9529_v35 = vld [vmem:[%s13335_s4 + $0xa0] sm:$0xff]   ;;  %v11631_v14 = vld [vmem:[#allocation2 + $0x50] sm:$0xff]  ;;  %v11643_v6 = vpop.permute.xlu0 %2483 }
 0x1c4   : > { %v5331_v44 = vunpack.c.h.bf16 %v11382_v12  ;;  %v1921_v5 = vmul.f32 %v11166_v20, %v13433_v17  ;;  %v1651_v43 = vrot.slane %v11610_v51, 4  ;;  %v11627_v56 = vmul.f32 %v4758_v57, %v4534_v40  ;;  %6340 = vperm.xlu1 %9438, %v11045_v58   ;;  %8889 = vmatpush3.bf16.msra.mxu1 %v9515_v39  ;;  %13827 = vst [vmem:[#allocation9_spill] sm:$0xff] %v11643_v6  ;;  %v13910_v17 = vld [vmem:[#allocation46_spill] sm:$0xff] }
 0x1c5   : > { %8718 = vmatprep.mubr.bf16.mxu0 %v1945_v45  ;;  %v5527_v41 = vsel %vm963_vm0, %v5524_v26, %v5526_v1  ;;  %v1922_v20 = vmul.f32 %v11213_v49, %v13434_v63  ;;  %v13435_v45 = vmov 8   ;;  %v11638_v32 = vpack.c.bf16 %v5618_v11, %v5617_v9  ;;  %8890 = vmatprep.subr.bf16.mxu1 %v9516_v62 }
 0x1c6   : > { %9464 = vset.pattern.permute.xlu0 %v13435_v45  ;;  %v5330_v40 = vunpack.c.l.bf16 %v11382_v12  ;;  %v5333_v57 = vunpack.c.h.bf16 %v11401_v37  ;;  %v13829_v49 = vrot.slane %v13731_v2, 1  ;;  %v13830_v58 = vrot.slane %v13752_v29, 1  ;;  %8859 = vmatmul.mubr.bf16.gmra.mrb[24].mxu1 %v11558_v22  ;;  %v11664_v2 = vld [vmem:[%s13332_s1 + $0x78] sm:$0xff] }
 0x1c7   : > { %13826 = vst [vmem:[#allocation22_spill] sm:$0xff] %v11638_v32  ;;  %6983 = vperm.xlu0 %9464, %v6949_v33   ;;  %v1946_v12 = vpack.c.bf16 %v1922_v20, %v1921_v5  ;;  %v5332_v9 = vunpack.c.l.bf16 %v11401_v37  ;;  %v5620_v33 = vmul.f32 %v5527_v41, %v5331_v44  ;;  %v5334_v39 = vunpack.c.l.bf16 %v11452_v52  ;;  %8862 = vmatprep.mubr.bf16.mxu1 %v11600_v42  ;;  %v11671_v37 = vpop.permute.xlu1 %5515 }
 0x1c8   : > { %v5525_v63 = vsel %vm963_vm0, %v13829_v49, %v5524_v26  ;;  %v5531_v11 = vsel %vm963_vm0, %v13830_v58, %v5530_v38  ;;  %v11658_v7 = vsel %vm655_vm1, %v1649_v25, %v1651_v43  ;;  %v11669_v26 = vld [vmem:[%s13335_s4 + $0x168] sm:$0xff]   ;;  %13832 = vst [vmem:[#allocation28_spill] sm:$0xff] %v11671_v37  ;;  %8746 = vmatprep.subr.bf16.mxu0 %v9529_v35  ;;  %v13834_v41 = vrot.slane %v13759_v60, 1 }
 0x1c9   : > { %13831 = vst [vmem:[#allocation77_spill] sm:$0xff] %v11658_v7  ;;  %v9531_v25 = vld [vmem:[%s13335_s4 + $0xa8] sm:$0xff]   ;;  %v13833_v44 = vmov %v13830_v58  ;;  %v5534_v49 = vrot.slane %v11040_v34, 1  ;;  %v13441_v58 = vunpack.c.l.bf16 %v11658_v7  ;;  %9439 = vset.pattern.permute.xlu1 %v13726_v46  ;;  %8747 = vmatpush3.bf16.msra.mxu0 %v9529_v35  ;;  %v5619_v45 = vmul.f32 %v5525_v63, %v5330_v40  ;;  %v9533_v34 = vld [vmem:[%s13335_s4 + $0xb0] sm:$0xff]  }
 0x1ca   : > { %v5529_v5 = vsel %vm963_vm0, %v5526_v1, %v13833_v44  ;;  %v5533_v20 = vsel %vm963_vm0, %v5530_v38, %v13834_v41  ;;  %v5622_v3 = vmul.f32 %v5531_v11, %v5333_v57  ;;  %v5538_v42 = vrot.slane %v11073_v24, 1  ;;  %8719 = vmatmul.mubr.bf16.gmra.mrb[44].mxu0 %v1946_v12  ;;  %v9561_v38 = vld [vmem:[%s13332_s1 + $0x28] sm:$0xff]  ;;  %2487 = vperm.xlu1 %9439, %v11664_v2  }
 0x1cb   : > { %v13835_v37 = vrot.slane %v11631_v14, 4  ;;  %7003 = vperm.xlu0 %9464, %v9561_v38   ;;  %8891 = vmatpush3.bf16.msra.mxu1 %v9516_v62  ;;  %v11702_v57 = vpack.c.bf16 %v5620_v33, %v5619_v45  ;;  %v5623_v11 = vmul.f32 %v5533_v20, %v5334_v39  ;;  %v5335_v12 = vunpack.c.h.bf16 %v11452_v52  ;;  %v6280_v52 = vld [vmem:[%s13332_s1 + $0x48] sm:$0xff] }
 0x1cc   : > { %8892 = vmatprep.subr.bf16.mxu1 %v11669_v26  ;;  %8748 = vmatprep.subr.bf16.mxu0 %v9531_v25  ;;  %v13839_v44 = vmov %v13834_v41  ;;  %v5337_v38 = vunpack.c.h.bf16 %v11460_v0  ;;  %v1923_v62 = vmul.f32 %v11183_v48, %v13441_v58  ;;  %v13440_v45 = vunpack.c.h.bf16 %v11658_v7  ;;  %v9562_v48 = vld [vmem:[%s13332_s1 + $0x38] sm:$0xff]  ;;  %v4031_v24 = vld [vmem:[#allocation2 + $0x88] sm:$0xf] }
 0x1cd   : > { %v11689_v29 = vsel %vm655_vm1, %v1651_v43, %v13835_v37  ;;  %v5621_v43 = vmul.f32 %v5529_v5, %v5332_v9  ;;  %v11706_v37 = vpop.permute.xlu0 %2495  ;;  %v5535_v41 = vsel %vm963_vm0, %v13839_v44, %v5534_v49  ;;  %8749 = vmatpush3.bf16.msra.mxu0 %v9531_v25  ;;  %v5336_v33 = vunpack.c.l.bf16 %v11460_v0  ;;  %v11734_v25 = vpop.permute.xlu1 %1869 }
 0x1ce   : > { %13836 = vst [vmem:[#allocation30_spill] sm:$0xff] %v11689_v29  ;;  %v13439_v40 = vunpack.c.h.bf16 %v11689_v29  ;;  %13838 = vst [vmem:[#allocation44_spill] sm:$0xff] %v11706_v37  ;;  %v13840_v60 = vrot.slane %v13765_v28, 1  ;;  %8750 = vmatprep.subr.bf16.mxu0 %v9533_v34  ;;  %v5542_v0 = vrot.slane %v11097_v50, 1  ;;  %8863 = vmatmul.mubr.bf16.gmra.mrb[28].mxu1 %v11658_v7  ;;  %v13442_v44 = vunpack.c.l.bf16 %v11689_v29  ;;  %v11751_v50 = vld [vmem:[%s13335_s4 + $0xb8] sm:$0xff]   ;;  %v13866_v7 = vld [vmem:[#allocation41_spill] sm:$0xff] }
 0x1cf   : > { %v11719_v9 = vpack.c.bf16 %v5622_v3, %v5621_v43  ;;  %7011 = vperm.xlu0 %9464, %v9562_v48   ;;  %v9518_v3 = vld [vmem:[%s13335_s4 + $0x170] sm:$0xff]   ;;  %v11737_v43 = vld [vmem:[#allocation2 + $0x58] sm:$0xff]  ;;  %9440 = vset.pattern.permute.xlu1 %v13754_v31  ;;  %v13842_v48 = vrot.slane %v13783_v30, 1  ;;  %v5340_v1 = vunpack.c.l.bf16 %v11560_v61 }
 0x1d0   : > { %v5537_v39 = vsel %vm963_vm0, %v5534_v49, %v13840_v60  ;;  %v13841_v5 = vmov %v13840_v60  ;;  %v1926_v28 = vmul.f32 %v11197_v19, %v13439_v40  ;;  %v1924_v49 = vmul.f32 %v11346_v18, %v13440_v45  ;;  %v11757_v40 = vld [vmem:[#allocation2 + $0x60] sm:$0xff]  ;;  %8866 = vmatprep.mubr.bf16.mxu1 %v11689_v29  ;;  %6350 = vperm.xlu1 %9440, %v6280_v52   ;;  %v13882_v37 = vld [vmem:[#allocation59_spill] sm:$0xff] }
 0x1d1   : > { %v5539_v20 = vsel %vm963_vm0, %v13841_v5, %v5538_v42  ;;  %v5624_v60 = vmul.f32 %v5535_v41, %v5335_v12  ;;  %v5338_v5 = vunpack.c.l.bf16 %v11500_v27  ;;  %v5541_v19 = vsel %vm963_vm0, %v5538_v42, %v13842_v48  ;;  %8893 = vmatpush3.bf16.msra.mxu1 %v11669_v26  ;;  %8751 = vmatpush3.bf16.msra.mxu0 %v9533_v34 }
 0x1d2   : > { %v1655_v18 = vrot.slane %v11737_v43, 4  ;;  %v5626_v45 = vmul.f32 %v5539_v20, %v5337_v38  ;;  %v13443_v58 = vrot.slane %v11757_v40, 4  ;;  %v1947_v63 = vpack.c.bf16 %v1924_v49, %v1923_v62  ;;  %8894 = vmatprep.subr.bf16.mxu1 %v9518_v3  ;;  %v11770_v38 = vpop.permute.xlu0 %2499  ;;  %8752 = vmatprep.subr.bf16.mxu0 %v11751_v50 }
 0x1d3   : > { %v1925_v12 = vmul.f32 %v11372_v59, %v13442_v44  ;;  %v5625_v41 = vmul.f32 %v5537_v39, %v5336_v33  ;;  %v5339_v48 = vunpack.c.h.bf16 %v11500_v27  ;;  %7027 = vperm.xlu0 %9464, %v11420_v13   ;;  %13843 = vst [vmem:[#allocation26_spill] sm:$0xff] %v11770_v38  ;;  %v13844_v62 = vrot.slane %v13783_v30, 1  ;;  %v13856_v44 = vld [vmem:[#allocation54_spill] sm:$0xff] }
 0x1d4   : > { %v13845_v59 = vrot.slane %v13789_v21, 1  ;;  %v5546_v34 = vrot.slane %v11108_v36, 1  ;;  %8722 = vmatprep.mubr.bf16.mxu0 %v1947_v63  ;;  %v11781_v39 = vpack.c.bf16 %v5624_v60, %v5623_v11  ;;  %v5627_v20 = vmul.f32 %v5541_v19, %v5338_v5  ;;  %9441 = vset.pattern.permute.xlu1 %v13726_v46  ;;  %v9519_v36 = vld [vmem:[%s13335_s4 + $0x178] sm:$0xff]   ;;  %v11794_v63 = vpop.permute.xlu1 %1874  ;;  %v11805_v5 = vld [vmem:[#allocation2 + $0x70] sm:$0xff]  ;;  %v13852_v19 = vld [vmem:[#allocation34_spill] sm:$0xff] }
 0x1d5   : > { %v5543_v52 = vsel %vm963_vm0, %v13844_v62, %v5542_v0  ;;  %v1948_v33 = vpack.c.bf16 %v1926_v28, %v1925_v12  ;;  %v13847_v49 = vrot.slane %v11631_v14, 4  ;;  %v11788_v62 = vld [vmem:[#allocation2 + $0x68] sm:$0xff]  ;;  %v5341_v11 = vunpack.c.h.bf16 %v11560_v61  ;;  %13851 = vst [vmem:[#allocation37_spill] sm:$0xff] %v11805_v5  ;;  %2491 = vperm.xlu1 %9441, %v13852_v19   ;;  %8895 = vmatpush3.bf16.msra.mxu1 %v9518_v3  ;;  %v13855_v61 = vld [vmem:[#allocation40_spill] sm:$0xff] }
 0x1d6   : > { %v5545_v26 = vsel %vm963_vm0, %v5542_v0, %v13845_v59  ;;  %13846 = vst [vmem:[#allocation43_spill] sm:$0xff] %v11781_v39  ;;  %v11796_v0 = vpack.c.bf16 %v5626_v45, %v5625_v41  ;;  %v11803_v60 = vsel %vm655_vm1, %v1655_v18, %v13443_v58  ;;  %v5628_v12 = vmul.f32 %v5543_v52, %v5339_v48  ;;  %v13854_v45 = vld [vmem:[#allocation55_spill] sm:$0xff]  ;;  %v13858_v28 = vld [vmem:[#allocation18_spill] sm:$0xff]  ;;  %v13860_v3 = vld [vmem:[#allocation4_spill] sm:$0xff]  ;;  %v11835_v19 = vpop.permute.xlu0 %2511 }
 0x1d7   : > { %v11786_v30 = vsel %vm655_vm1, %v13847_v49, %v1655_v18  ;;  %13850 = vst [vmem:[#allocation35_spill] sm:$0xff] %v11803_v60  ;;  %8723 = vmatmul.mubr.bf16.gmra.mrb[48].mxu0 %v1948_v33  ;;  %v11808_v59 = vmul.f32 %v5545_v26, %v5340_v1  ;;  %v13853_v49 = vmov 3   ;;  %v4826_v41 = vpack.c.bf16 %v13855_v61, %v13854_v45  ;;  %v11827_v52 = vld [vmem:[%s13335_s4 + $0x180] sm:$0xff]   ;;  %13861 = vst [vmem:[#allocation29_spill] sm:$0xff] %v11835_v19  ;;  %v13862_v61 = vld [vmem:[#allocation47_spill] sm:$0xff] }
 0x1d8   : > { %13848 = vst [vmem:[#allocation32_spill] sm:$0xff] %v11786_v30  ;;  %13849 = vst [vmem:[#allocation74_spill] sm:$0xff] %v11796_v0  ;;  %9470 = vset.pattern.permute.xlu0 %v13853_v49  ;;  %v4893_v35 = vshll.u32 %v13856_v44, 16  ;;  %v13857_v27 = vrot.slane %v13789_v21, 1  ;;  %v13859_v42 = vrot.slane %v13858_v28, 1  ;;  %8867 = vmatmul.mubr.bf16.gmra.mrb[0].mxu1 %v11786_v30  ;;  %v1659_v1 = vrot.slane %v11788_v62, 4  ;;  %v11845_v19 = vpop.permute.xlu1 %1884 }
 0x1d9   : > { %3286 = vperm.xlu0 %9470, %v13860_v3   ;;  %8870 = vmatprep.mubr.bf16.mxu1 %v11803_v60  ;;  %v4891_v26 = vshrl.u32 %v13856_v44, 16  ;;  %v4906_v3 = vshll.u32 %v13862_v61, 16  ;;  %v13863_v21 = vld [vmem:[#allocation49_spill] sm:$0xff]  ;;  %v13864_v48 = vld [vmem:[#allocation50_spill] sm:$0xff]  ;;  %v11843_v29 = vpack.c.bf16 %v5628_v12, %v5627_v20  ;;  %v4902_v38 = vshrl.u32 %v4826_v41, 16 }
 0x1da   : > { %v5547_v18 = vsel %vm963_vm0, %v13857_v27, %v5546_v34  ;;  %v5549_v33 = vsel %vm963_vm0, %v5546_v34, %v13859_v42  ;;  %v3230_v42 = vld [vmem:[%s13332_s1 + $0x50] sm:$0xff]  ;;  %v4895_v34 = vrot.slane %v4893_v35, 1  ;;  %v4898_v27 = vshll.u32 %v4826_v41, 16  ;;  %8896 = vmatprep.subr.bf16.mxu1 %v9519_v36  ;;  %9442 = vset.pattern.permute.xlu1 %v13754_v31  ;;  %v11859_v20 = vld [vmem:[%s13332_s1 + $0x68] sm:$0xff] }
 0x1db   : > { %v4828_v58 = vpack.c.bf16 %v13864_v48, %v13863_v21  ;;  %8753 = vmatpush3.bf16.msra.mxu0 %v11751_v50  ;;  %13865 = vst [vmem:[#allocation39_spill] sm:$0xff] %v11843_v29  ;;  %6355 = vperm.xlu1 %9442, %v3230_v42   ;;  %v11847_v45 = vmul.f32 %v5547_v18, %v5341_v11  ;;  %v13867_v6 = vrot.slane %v11757_v40, 4  ;;  %v4908_v50 = vrot.slane %v4906_v3, 1  ;;  %v13871_v48 = vld [vmem:[#allocation23_spill] sm:$0xff] }
 0x1dc   : > { %v4896_v44 = vor.u32 %v4895_v34, %v4891_v26  ;;  %v4900_v35 = vrot.slane %v4898_v27, 1  ;;  %8897 = vmatpush3.bf16.msra.mxu1 %v9519_v36  ;;  %v4910_v12 = vshrl.u32 %v13862_v61, 16  ;;  %v13870_v18 = vunpack.c.l.bf16 %v11786_v30  ;;  %v13873_v26 = vld [vmem:[#allocation61_spill] sm:$0xff]  ;;  %v11882_v61 = vld [vmem:[#allocation2 + $0x78] sm:$0xff] }
 0x1dd   : > { %v11853_v22 = vsel %vm655_vm1, %v13867_v6, %v1659_v1  ;;  %3294 = vperm.xlu0 %9470, %v3230_v42   ;;  %8930 = vmatprep.subr.bf16.mxu1 %v11827_v52  ;;  %v4914_v41 = vshll.u32 %v4828_v58, 16  ;;  %v11868_v6 = vld [vmem:[%s13335_s4 + $0xc0] sm:$0xff]   ;;  %v13872_v42 = vunpack.c.h.bf16 %v11803_v60  ;;  %13876 = vst [vmem:[#allocation40_spill] sm:$0xff] %v11882_v61  ;;  %v13452_v3 = vunpack.c.h.bf16 %v11786_v30  ;;  %v11918_v30 = vld [vmem:[%s13332_s1 + $0x70] sm:$0xff] }
 0x1de   : > { %13868 = vst [vmem:[#allocation24_spill] sm:$0xff] %v11853_v22  ;;  %v11862_v36 = vsel %vm2748_vm4, %v4896_v44, %v4900_v35  ;;  %v4904_v11 = vor.u32 %v4902_v38, %v4900_v35  ;;  %13869 = vst [vmem:[#allocation34_spill] sm:$0xff] %v11868_v6  ;;  %8786 = vmatprep.subr.bf16.mxu0 %v11868_v6  ;;  %v1927_v21 = vmul.f32 %v13871_v48, %v13870_v18  ;;  %v11885_v44 = vld [vmem:[#allocation2 + $0x80] sm:$0xff]  ;;  %v13901_v39 = vmov 8  }
 0x1df   : > { %v1930_v34 = vmul.f32 %v13873_v26, %v13872_v42  ;;  %v13874_v38 = vrot.slane %v11805_v5, 4  ;;  %13877 = vst [vmem:[#allocation54_spill] sm:$0xff] %v11885_v44  ;;  %6360 = vperm.xlu1 %9442, %v11420_v13   ;;  %v4912_v18 = vor.u32 %v4910_v12, %v4908_v50  ;;  %v4916_v48 = vrot.slane %v4914_v41, 1  ;;  %v11892_v26 = vpop.permute.xlu0 %2515  ;;  %v13883_v12 = vld [vmem:[#allocation58_spill] sm:$0xff]  ;;  %v13884_v41 = vld [vmem:[#allocation65_spill] sm:$0xff] }
 0x1e0   : > { %v11889_v35 = vsel %vm2748_vm4, %v4904_v11, %v4908_v50  ;;  %13878 = vst [vmem:[#allocation18_spill] sm:$0xff] %v11892_v26  ;;  %8871 = vmatmul.mubr.bf16.gmra.mrb[4].mxu1 %v11853_v22  ;;  %v1928_v13 = vmul.f32 %v11551_v55, %v13452_v3  ;;  %v13881_v11 = vld [vmem:[#allocation51_spill] sm:$0xff]  ;;  %v4830_v42 = vpack.c.bf16 %v13884_v41, %v13883_v12  ;;  %v13885_v26 = vunpack.c.l.bf16 %v11610_v51 }
 0x1e1   : > { %v11880_v27 = vsel %vm655_vm1, %v1659_v1, %v13874_v38  ;;  %v13879_v1 = vshrl.u32 %v11719_v9, 16  ;;  %3306 = vperm.xlu0 %9470, %v11859_v20   ;;  %v4829_v50 = vpack.c.bf16 %v13882_v37, %v13881_v11  ;;  %v11921_v55 = vsel %vm2748_vm4, %v4912_v18, %v4916_v48  ;;  %v11926_v37 = vld [vmem:[%s13332_s1 + $0x98] sm:$0xff]  ;;  %v11931_v11 = vpop.permute.xlu1 %2427 }
 0x1e2   : > { %13875 = vst [vmem:[#allocation55_spill] sm:$0xff] %v11880_v27  ;;  %v11909_v49 = vmul.f32 %v5549_v33, %v13885_v26  ;;  %8874 = vmatprep.mubr.bf16.mxu1 %v11880_v27  ;;  %13887 = vst [vmem:[#allocation49_spill] sm:$0xff] %v11926_v37  ;;  %v13888_v33 = vunpack.c.l.bf16 %v11803_v60  ;;  %v4126_v12 = vrot.slane %v11885_v44, 4  ;;  %v1949_v41 = vpack.c.bf16 %v1928_v13, %v1927_v21 }
 0x1e3   : > { %v11896_v38 = vrot.slane %v13879_v1, 3  ;;  %v11912_v1 = vrot.slane %v11882_v61, 4  ;;  %v4918_v3 = vshrl.u32 %v4828_v58, 16  ;;  %v4922_v32 = vshll.u32 %v4829_v50, 16  ;;  %9443 = vset.pattern.permute.xlu1 %v13726_v46  ;;  %v11952_v44 = vpop.permute.xlu0 %2527 }
 0x1e4   : > { %v1929_v26 = vmul.f32 %v11604_v10, %v13888_v33  ;;  %v5343_v6 = vunpack.c.h.bf16 %v11610_v51  ;;  %v13889_v18 = vrot.slane %v13866_v7, 1  ;;  %v13890_v8 = vrot.slane %v13858_v28, 1  ;;  %2503 = vperm.xlu1 %9443, %v11926_v37   ;;  %8726 = vmatprep.mubr.bf16.mxu0 %v1949_v41  ;;  %13894 = vst [vmem:[#allocation50_spill] sm:$0xff] %v11952_v44  ;;  %v11954_v33 = vld [vmem:[#allocation2 + $0x80] sm:$0xf] }
 0x1e5   : > { %13880 = vst [vmem:[#allocation4_spill] sm:$0xff] %v11896_v38  ;;  %13886 = vst [vmem:[#allocation47_spill] sm:$0xff] %v11912_v1  ;;  %v4930_v10 = vshll.u32 %v4830_v42, 16  ;;  %3310 = vperm.xlu0 %9470, %v11918_v30   ;;  %v4920_v58 = vor.u32 %v4918_v3, %v4916_v48  ;;  %v4924_v21 = vrot.slane %v4922_v32, 1  ;;  %v4926_v51 = vshrl.u32 %v4829_v50, 16  ;;  %v11972_v0 = vpop.permute.xlu1 %2435 }
 0x1e6   : > { %v5551_v29 = vsel %vm963_vm0, %v13890_v8, %v13889_v18  ;;  %v1950_v60 = vpack.c.bf16 %v1930_v34, %v1929_v26  ;;  %v13891_v13 = vrot.slane %v11805_v5, 4  ;;  %v13892_v18 = vld [vmem:[#allocation70_spill] sm:$0xff]  ;;  %v13893_v34 = vld [vmem:[#allocation67_spill] sm:$0xff]  ;;  %v4127_v3 = vsel %vm655_vm1, %v11912_v1, %v4126_v12 }
 0x1e7   : > { %v4932_v8 = vrot.slane %v4930_v10, 1  ;;  %v4831_v26 = vpack.c.bf16 %v13893_v34, %v13892_v18  ;;  %v4128_v32 = vrot.slane %v4031_v24, 4  ;;  %v11959_v48 = vsel %vm2748_vm4, %v4920_v58, %v4924_v21  ;;  %v13902_v5 = vld [vmem:[#allocation63_spill] sm:$0xff] }
 0x1e8   : > { %v11948_v28 = vsel %vm655_vm1, %v13891_v13, %v11912_v1  ;;  %v4928_v50 = vor.u32 %v4926_v51, %v4924_v21  ;;  %8727 = vmatmul.mubr.bf16.gmra.mrb[52].mxu0 %v1950_v60  ;;  %v13895_v41 = vrot.slane %v13809_v53, 1  ;;  %v13896_v10 = vrot.slane %v13866_v7, 1  ;;  %9444 = vset.pattern.permute.xlu1 %v13754_v31  ;;  %v13900_v13 = vld [vmem:[#allocation69_spill] sm:$0xff] }
 0x1e9   : > { %v11969_v34 = vmul.f32 %v5551_v29, %v5343_v6  ;;  %8875 = vmatmul.mubr.bf16.gmra.mrb[8].mxu1 %v11948_v28  ;;  %v4934_v60 = vshrl.u32 %v4830_v42, 16  ;;  %v4938_v58 = vshll.u32 %v4831_v26, 16  ;;  %v13897_v29 = vunpack.c.l.bf16 %v11880_v27  ;;  %v13898_v6 = vld [vmem:[#allocation66_spill] sm:$0xff]  ;;  %6370 = vperm.xlu1 %9444, %v11859_v20  }
 0x1ea   : > { %v11967_v18 = vsel %vm963_vm0, %v13896_v10, %v13895_v41  ;;  %v11977_v24 = vsel %vm2748_vm4, %v4928_v50, %v4932_v8  ;;  %v1665_v41 = vrot.slane %v11954_v33, 4  ;;  %8878 = vmatprep.mubr.bf16.mxu1 %v4127_v3  ;;  %v13899_v10 = vld [vmem:[#allocation10_spill] sm:$0xff]  ;;  %v4129_v50 = vsel %vm655_vm1, %v4126_v12, %v4128_v32  ;;  %9471 = vset.pattern.permute.xlu0 %v13901_v39  ;;  %v11994_v3 = vpop.permute.xlu0 %2531 }
 0x1eb   : > { %v1933_v51 = vmul.f32 %v13898_v6, %v13897_v29  ;;  %v4832_v44 = vpack.c.bf16 %v13900_v13, %v13899_v10  ;;  %v4936_v42 = vor.u32 %v4934_v60, %v4932_v8  ;;  %v4940_v61 = vrot.slane %v4938_v58, 1  ;;  %v13903_v29 = vld [vmem:[#allocation12_spill] sm:$0xff]  ;;  %13904 = vst [vmem:[#allocation41_spill] sm:$0xff] %v11994_v3  ;;  %v2276_v10 = vld [vmem:[#allocation2] sm:$0xf0] }
 0x1ec   : > { %v13471_v7 = vunpack.c.h.bf16 %v11853_v22  ;;  %v4942_v21 = vshrl.u32 %v4831_v26, 16  ;;  %v4833_v6 = vpack.c.bf16 %v13903_v29, %v13902_v5  ;;  %v13474_v33 = vunpack.c.h.bf16 %v11880_v27  ;;  %v12009_v29 = vpop.permute.xlu1 %2439  ;;  %v13906_v3 = vld [vmem:[#allocation20_spill] sm:$0xff] }
 0x1ed   : > { %v4946_v38 = vshll.u32 %v4832_v44, 16  ;;  %v11997_v20 = vsel %vm2748_vm4, %v4936_v42, %v4940_v61  ;;  %v13905_v12 = vunpack.c.l.bf16 %v11853_v22  ;;  %v4950_v26 = vshrl.u32 %v4832_v44, 16  ;;  %9445 = vset.pattern.permute.xlu1 %v13726_v46  ;;  %v2277_v42 = vld [vmem:[#allocation2 + $0x8] sm:$0xff]  ;;  %v13909_v44 = vld [vmem:[#allocation16_spill] sm:$0xff] }
 0x1ee   : > { %v1932_v32 = vmul.f32 %v11794_v63, %v13471_v7  ;;  %v4944_v13 = vor.u32 %v4942_v21, %v4940_v61  ;;  %v4954_v60 = vshll.u32 %v4833_v6, 16  ;;  %v1934_v58 = vmul.f32 %v11845_v19, %v13474_v33  ;;  %v13908_v63 = vld [vmem:[#allocation31_spill] sm:$0xff] }
 0x1ef   : > { %v1931_v8 = vmul.f32 %v11734_v25, %v13905_v12  ;;  %v4948_v5 = vrot.slane %v4946_v38, 1  ;;  %v13907_v12 = vld [vmem:[#allocation25_spill] sm:$0xff]  ;;  %v4834_v7 = vpack.c.bf16 %v13909_v44, %v13908_v63  ;;  %v4958_v39 = vshrl.u32 %v4833_v6, 16  ;;  %v9522_v63 = vld [vmem:[%s13335_s4 + $0x188] sm:$0xff]  }
 0x1f0   : > { %2507 = vperm.xlu1 %9445, %v13907_v12   ;;  %v4956_v21 = vrot.slane %v4954_v60, 1  ;;  %v1952_v27 = vpack.c.bf16 %v1934_v58, %v1933_v51  ;;  %v2310_v33 = vrot.slane %v2276_v10, 4  ;;  %v2311_v37 = vrot.slane %v2277_v42, 4  ;;  %v13911_v51 = vld [vmem:[#allocation36_spill] sm:$0xff]  ;;  %v12038_v10 = vld [vmem:[#allocation2 + $0x10] sm:$0xff]  ;;  %v1895_v42 = vpop.permute.xlu1 %1894 }
 0x1f1   : > { %v1951_v22 = vpack.c.bf16 %v1932_v32, %v1931_v8  ;;  %v12016_v61 = vsel %vm2748_vm4, %v4944_v13, %v4948_v5  ;;  %v4952_v38 = vor.u32 %v4950_v26, %v4948_v5  ;;  %8879 = vmatmul.mubr.bf16.gmra.mrb[12].mxu1 %v4129_v50  ;;  %v4962_v19 = vshll.u32 %v4834_v7, 16  ;;  %v13912_v50 = vld [vmem:[#allocation11_spill] sm:$0xff] }
 0x1f2   : > { %v2554_v25 = vrot.slane %v11931_v11, 7  ;;  %v12022_v8 = vsel %vm655_vm1, %v11912_v1, %v1665_v41  ;;  %8898 = vmatprep.mubr.bf16.mxu1 %v11862_v36  ;;  %v4835_v32 = vpack.c.bf16 %v13912_v50, %v13911_v51  ;;  %v4960_v11 = vor.u32 %v4958_v39, %v4956_v21 }
 0x1f3   : > { %8730 = vmatprep.mubr.bf16.mxu0 %v1951_v22  ;;  %v12026_v6 = vsel %vm2748_vm4, %v4952_v38, %v4956_v21  ;;  %v12030_v22 = vpop.permute.xlu0 %2543  ;;  %v4964_v26 = vrot.slane %v4962_v19, 1  ;;  %v2312_v13 = vsel %vm655_vm1, %v2310_v33, %v2311_v37  ;;  %v13914_v41 = vrot.slane %v13906_v3, 7  ;;  %v13915_v33 = vld [vmem:[#allocation21_spill] sm:$0xff] }
 0x1f4   : > { %8731 = vmatmul.mubr.bf16.gmra.mrb[56].mxu0 %v1952_v27  ;;  %13913 = vst [vmem:[#allocation23_spill] sm:$0xff] %v12030_v22  ;;  %9446 = vset.pattern.permute.xlu1 %v13754_v31  ;;  %v2360_v36 = vunpack.c.l.bf16 %v2312_v13  ;;  %v2361_v60 = vunpack.c.h.bf16 %v2312_v13  ;;  %v4966_v27 = vshrl.u32 %v4834_v7, 16  ;;  %v4970_v58 = vshll.u32 %v4835_v32, 16  ;;  %v13916_v38 = vld [vmem:[#allocation45_spill] sm:$0xff] }
 0x1f5   : > { %v2556_v5 = vsel %vm2553_vm3, %v2554_v25, %v13914_v41  ;;  %6375 = vperm.xlu1 %9446, %v11918_v30   ;;  %v1714_v39 = vunpack.c.h.bf16 %v12022_v8  ;;  %v12043_v44 = vsel %vm2748_vm4, %v4960_v11, %v4964_v26  ;;  %v4836_v21 = vpack.c.bf16 %v13916_v38, %v13915_v33  ;;  %v13920_v33 = vld [vmem:[#allocation48_spill] sm:$0xff] }
 0x1f6   : > { %v2650_v19 = vmul.f32 %v2554_v25, %v2360_v36  ;;  %v2651_v51 = vmul.f32 %v2556_v5, %v2361_v60  ;;  %v4968_v30 = vor.u32 %v4966_v27, %v4964_v26  ;;  %v4972_v50 = vrot.slane %v4970_v58, 1 }
 0x1f7   : > { %v4974_v13 = vshrl.u32 %v4835_v32, 16  ;;  %v4978_v7 = vshll.u32 %v4836_v21, 16  ;;  %v13477_v41 = vrot.slane %v12038_v10, 4  ;;  %v2557_v12 = vrot.slane %v11972_v0, 7  ;;  %v12059_v26 = vpop.permute.xlu0 %2547 }
 0x1f8   : > { %v12056_v25 = vsel %vm2748_vm4, %v4968_v30, %v4972_v50  ;;  %v13478_v32 = vrot.slane %v12009_v29, 7  ;;  %13917 = vst [vmem:[#allocation61_spill] sm:$0xff] %v12059_v26  ;;  %v13482_v60 = vrot.slane %v12030_v22, 7  ;;  %v13918_v27 = vrot.slane %v13910_v17, 1 }
 0x1f9   : > { %6380 = vperm.xlu1 %9446, %v11664_v2   ;;  %8899 = vmatmul.mubr.bf16.vlgmr.msra.gmra.mrb[16].mxu1 %v11889_v35  ;;  %v4976_v0 = vor.u32 %v4974_v13, %v4972_v50  ;;  %v4980_v5 = vrot.slane %v4978_v7, 1  ;;  %v2314_v36 = vsel %vm655_vm1, %v2311_v37, %v13477_v41  ;;  %v13919_v2 = vrot.slane %v13809_v53, 1  ;;  %v13922_v35 = vld [vmem:[#allocation19_spill] sm:$0xff]  ;;  %v12081_v37 = vld [vmem:[%s13332_s1 + $0xb8] sm:$0xff]  ;;  %v1900_v53 = vpop.permute.xlu1 %1899 }
 0x1fa   : > { %v13921_v30 = vunpack.c.l.bf16 %v11948_v28  ;;  %8902 = vmatprep.mubr.bf16.mxu1 %v11921_v55  ;;  %v12083_v13 = vpack.c.bf16 %v2651_v51, %v2650_v19  ;;  %8931 = vmatpush3.bf16.msra.mxu1 %v11827_v52  ;;  %v13923_v7 = vld [vmem:[#allocation52_spill] sm:$0xff]  ;;  %v13924_v1 = vrot.slane %v13906_v3, 7  ;;  %v13481_v55 = vrot.slane %v12059_v26, 7  ;;  %v9524_v19 = vld [vmem:[%s13335_s4 + $0x190] sm:$0xff]  }
 0x1fb   : > { %v12071_v58 = vsel %vm963_vm0, %v13919_v2, %v13918_v27  ;;  %v1938_v27 = vmul.f32 %v13923_v7, %v1714_v39  ;;  %v12088_v2 = vsel %vm2748_vm4, %v4976_v0, %v4980_v5  ;;  %8932 = vmatprep.subr.bf16.mxu1 %v9522_v63  ;;  %v13925_v51 = vld [vmem:[#allocation68_spill] sm:$0xff]  ;;  %v2362_v52 = vunpack.c.l.bf16 %v2314_v36  ;;  %v13926_v0 = vld [vmem:[#allocation5_spill] sm:$0xff]  ;;  %v13927_v3 = vld [vmem:[#allocation75_spill] sm:$0xff] }
 0x1fc   : > { %v1935_v50 = vmul.f32 %v13922_v35, %v13921_v30  ;;  %v2558_v30 = vsel %vm2553_vm3, %v13924_v1, %v2557_v12  ;;  %v2560_v39 = vsel %vm2553_vm3, %v2557_v12, %v13478_v32  ;;  %v4837_v7 = vpack.c.bf16 %v13927_v3, %v13926_v0  ;;  %v13929_v35 = vld [vmem:[#allocation7_spill] sm:$0xff] }
 0x1fd   : > { %9447 = vset.pattern.permute.xlu1 %v13726_v46  ;;  %v2363_v1 = vunpack.c.h.bf16 %v2314_v36  ;;  %v12110_v11 = vsel %vm2553_vm3, %v13482_v60, %v13481_v55  ;;  %v4838_v38 = vpack.c.bf16 %v11530_v47, %v13929_v35  ;;  %v1712_v41 = vunpack.c.h.bf16 %v11948_v28  ;;  %v6288_v36 = vld [vmem:[%s13332_s1 + $0x88] sm:$0xff] }
 0x1fe   : > { %2519 = vperm.xlu1 %9447, %v12081_v37   ;;  %13928 = vst [vmem:[#allocation51_spill] sm:$0xff] %v12110_v11  ;;  %v2752_v12 = vshll.u32 %v12083_v13, 16  ;;  %v2652_v32 = vmul.f32 %v2558_v30, %v2362_v52  ;;  %8933 = vmatpush3.bf16.msra.mxu1 %v9522_v63  ;;  %v4982_v0 = vshrl.u32 %v4836_v21, 16  ;;  %v4986_v3 = vshll.u32 %v4837_v7, 16  ;;  %v9526_v63 = vld [vmem:[%s13335_s4 + $0x198] sm:$0xff]   ;;  %v2444_v30 = vpop.permute.xlu1 %2443 }
 0x1ff   : > { %v2653_v26 = vmul.f32 %v2560_v39, %v2363_v1  ;;  %8934 = vmatprep.subr.bf16.mxu1 %v9524_v19  ;;  %v4994_v22 = vshll.u32 %v4838_v38, 16  ;;  %v1936_v55 = vmul.f32 %v1895_v42, %v1712_v41  ;;  %v1713_v47 = vunpack.c.l.bf16 %v12022_v8  ;;  %v2279_v52 = vld [vmem:[#allocation2 + $0x18] sm:$0xff] }
 0x200   : > { %v4984_v35 = vor.u32 %v4982_v0, %v4980_v5  ;;  %v4988_v60 = vrot.slane %v4986_v3, 1  ;;  %v4990_v11 = vshrl.u32 %v4837_v7, 16  ;;  %v4839_v21 = vpack.c.bf16 %v11555_v15, %v11553_v4 }
 0x201   : > { %8903 = vmatmul.mubr.bf16.gmra.mrb[20].mxu1 %v11959_v48  ;;  %v4996_v39 = vrot.slane %v4994_v22, 1  ;;  %v1953_v42 = vpack.c.bf16 %v1936_v55, %v1935_v50  ;;  %v1937_v1 = vmul.f32 %v1900_v53, %v1713_v47  ;;  %v12131_v8 = vpack.c.bf16 %v11627_v56, %v11606_v54  ;;  %v2417_v54 = vld [vmem:[%s13332_s1 + $0xc0] sm:$0xff] }
 0x202   : > { %9448 = vset.pattern.permute.xlu1 %v13754_v31  ;;  %8906 = vmatprep.mubr.bf16.mxu1 %v11977_v24  ;;  %v12135_v5 = vsel %vm2748_vm4, %v4984_v35, %v4988_v60  ;;  %v4992_v4 = vor.u32 %v4990_v11, %v4988_v60  ;;  %v4998_v15 = vshrl.u32 %v4838_v38, 16  ;;  %v5002_v7 = vshll.u32 %v4839_v21, 16  ;;  %v9528_v60 = vld [vmem:[%s13335_s4 + $0x1a0] sm:$0xff]  }
 0x203   : > { %6390 = vperm.xlu1 %9448, %v6288_v36   ;;  %8935 = vmatpush3.bf16.msra.mxu1 %v9524_v19  ;;  %v1954_v48 = vpack.c.bf16 %v1938_v27, %v1937_v1  ;;  %v5006_v0 = vshrl.u32 %v4839_v21, 16  ;;  %v5010_v22 = vshll.u32 %v12131_v8, 16  ;;  %v12138_v50 = vrot.slane %v2279_v52, 4  ;;  %v13932_v19 = vld [vmem:[#allocation56_spill] sm:$0xff] }
 0x204   : > { %8734 = vmatprep.mubr.bf16.mxu0 %v1953_v42  ;;  %v12144_v56 = vsel %vm2748_vm4, %v4992_v4, %v4996_v39  ;;  %8936 = vmatprep.subr.bf16.mxu1 %v9526_v63  ;;  %v5000_v24 = vor.u32 %v4998_v15, %v4996_v39  ;;  %v5004_v11 = vrot.slane %v5002_v7, 1  ;;  %v2561_v38 = vrot.slane %v2444_v30, 7  ;;  %v12167_v39 = vpop.permute.xlu1 %2451 }
 0x205   : > { %v13930_v53 = vrot.slane %v13817_v23, 1  ;;  %v13931_v27 = vrot.slane %v13910_v17, 1  ;;  %v5562_v3 = vrot.slane %v13932_v19, 1  ;;  %v12155_v36 = vrot.slane %v5010_v22, 1  ;;  %8735 = vmatmul.mubr.bf16.gmra.mrb[60].mxu0 %v1954_v48 }
 0x206   : > { %v12157_v47 = vpack.c.bf16 %v2653_v26, %v2652_v32  ;;  %v12161_v35 = vsel %vm2748_vm4, %v5000_v24, %v5004_v11  ;;  %v5008_v21 = vor.u32 %v5006_v0, %v5004_v11  ;;  %v13933_v30 = vrot.slane %v12038_v10, 4 }
 0x207   : > { %v5557_v55 = vsel %vm963_vm0, %v13931_v27, %v13930_v53  ;;  %9449 = vset.pattern.permute.xlu1 %v13726_v46  ;;  %v2754_v52 = vrot.slane %v2752_v12, 1  ;;  %v13934_v42 = vunpack.c.h.bf16 %v11631_v14  ;;  %v13935_v32 = vrot.slane %v13920_v33, 1  ;;  %8937 = vmatpush3.bf16.msra.mxu1 %v9526_v63  ;;  %v9530_v63 = vld [vmem:[%s13335_s4 + $0x1a8] sm:$0xff]  }
 0x208   : > { %v2316_v17 = vsel %vm655_vm1, %v13933_v30, %v12138_v50  ;;  %v13936_v26 = vmov %v13930_v53  ;;  %v5349_v15 = vunpack.c.h.bf16 %v11757_v40  ;;  %2523 = vperm.xlu1 %9449, %v2417_v54   ;;  %v2757_v10 = vshll.u32 %v12157_v47, 16  ;;  %8938 = vmatprep.subr.bf16.mxu1 %v9528_v60 }
 0x209   : > { %v5634_v1 = vmul.f32 %v12071_v58, %v13934_v42  ;;  %v5559_v4 = vsel %vm963_vm0, %v13936_v26, %v13935_v32  ;;  %v2750_v12 = vshrl.u32 %v12083_v13, 16  ;;  %v12182_v7 = vsel %vm2748_vm4, %v5008_v21, %v12155_v36  ;;  %8907 = vmatmul.mubr.bf16.gmra.mrb[24].mxu1 %v11997_v20  ;;  %v2280_v42 = vld [vmem:[#allocation2 + $0x20] sm:$0xff]  ;;  %v13944_v26 = vld [vmem:[#allocation62_spill] sm:$0xff] }
 0x20a   : > { %v13937_v58 = vrot.slane %v12009_v29, 7  ;;  %v13938_v23 = vrot.slane %v13925_v51, 7  ;;  %v13939_v22 = vrot.slane %v13825_v16, 1  ;;  %v6289_v29 = vld [vmem:[%s13332_s1 + $0x90] sm:$0xff]  ;;  %v2364_v54 = vunpack.c.l.bf16 %v2316_v17  ;;  %8910 = vmatprep.mubr.bf16.mxu1 %v12016_v61 }
 0x20b   : > { %v2365_v24 = vunpack.c.h.bf16 %v2316_v17  ;;  %v12200_v11 = vrot.slane %v2757_v10, 1  ;;  %v13941_v27 = vmov %v13935_v32  ;;  %v13942_v20 = vunpack.c.h.bf16 %v11737_v43  ;;  %8939 = vmatpush3.bf16.msra.mxu1 %v9528_v60 }
 0x20c   : > { %v2562_v48 = vsel %vm2553_vm3, %v13937_v58, %v2561_v38  ;;  %v2564_v0 = vsel %vm2553_vm3, %v2561_v38, %v13938_v23  ;;  %v5563_v13 = vsel %vm963_vm0, %v13939_v22, %v5562_v3  ;;  %v12204_v38 = vpack.c.bf16 %v11847_v45, %v11808_v59  ;;  %9450 = vset.pattern.permute.xlu1 %v13754_v31 }
 0x20d   : > { %v13940_v53 = vmov %v13939_v22  ;;  %v5636_v21 = vmul.f32 %v5559_v4, %v13942_v20  ;;  %v2755_v30 = vor.u32 %v2754_v52, %v2750_v12  ;;  %v13943_v17 = vunpack.c.l.bf16 %v11631_v14  ;;  %6395 = vperm.xlu1 %9450, %v6289_v29   ;;  %8940 = vmatprep.subr.bf16.mxu1 %v9530_v63  ;;  %v12228_v52 = vpop.permute.xlu1 %2455  ;;  %v13952_v20 = vld [vmem:[#allocation4_spill] sm:$0xff] }
 0x20e   : > { %v5561_v19 = vsel %vm963_vm0, %v13941_v27, %v13940_v53  ;;  %v5564_v59 = vrot.slane %v13944_v26, 1  ;;  %v2654_v16 = vmul.f32 %v2562_v48, %v2364_v54  ;;  %v2655_v45 = vmul.f32 %v2564_v0, %v2365_v24  ;;  %v13950_v24 = vld [vmem:[#allocation49_spill] sm:$0xff] }
 0x20f   : > { %v5633_v32 = vmul.f32 %v11967_v18, %v13943_v17  ;;  %v13945_v33 = vshll.u32 %v11719_v9, 16  ;;  %v13946_v4 = vunpack.c.l.bf16 %v11737_v43  ;;  %v5638_v61 = vmul.f32 %v5563_v13, %v5349_v15  ;;  %v9532_v18 = vld [vmem:[%s13335_s4 + $0x1b0] sm:$0xff]   ;;  %8941 = vmatpush3.bf16.msra.mxu1 %v9530_v63  ;;  %v13948_v13 = vld [vmem:[#allocation76_spill] sm:$0xff]  ;;  %v13953_v17 = vld [vmem:[#allocation57_spill] sm:$0xff] }
 0x210   : > { %v2760_v14 = vsel %vm2748_vm4, %v2755_v30, %v12200_v11  ;;  %v12232_v60 = vpack.c.bf16 %v11969_v34, %v11909_v49  ;;  %v13947_v43 = vunpack.c.l.bf16 %v11757_v40  ;;  %v12238_v15 = vrot.slane %v2280_v42, 4  ;;  %8942 = vmatprep.subr.bf16.mxu1 %v9532_v18  ;;  %v6965_v30 = vld [vmem:[%s13332_s1 + $0x80] sm:$0xff] }
 0x211   : > { %v5738_v10 = vrot.slane %v13945_v33, 4  ;;  %v5635_v58 = vmul.f32 %v5557_v55, %v13946_v4  ;;  %v12234_v9 = vpack.c.bf16 %v5634_v1, %v5633_v32  ;;  %8754 = vmatprep.mubr.bf16.mxu0 %v2760_v14  ;;  %v5350_v48 = vunpack.c.l.bf16 %v11788_v62  ;;  %6400 = vperm.xlu1 %9450, %v13950_v24   ;;  %v13955_v4 = vld [vmem:[#allocation72_spill] sm:$0xff] }
 0x212   : > { %v5637_v55 = vmul.f32 %v5561_v19, %v13947_v43  ;;  %v5724_v23 = vshrl.u32 %v11702_v57, 16  ;;  %v5727_v0 = vshll.u32 %v11702_v57, 16  ;;  %v5351_v22 = vunpack.c.h.bf16 %v11788_v62  ;;  %v9534_v62 = vld [vmem:[%s13335_s4 + $0x1b8] sm:$0xff]   ;;  %8911 = vmatmul.mubr.bf16.gmra.mrb[28].mxu1 %v12026_v6  ;;  %7047 = vperm.xlu0 %9471, %v6965_v30  }
 0x213   : > { %v12240_v12 = vpack.c.bf16 %v5636_v21, %v5635_v58  ;;  %v5565_v49 = vsel %vm963_vm0, %v5562_v3, %v5564_v59  ;;  %v12247_v34 = vpack.c.bf16 %v2655_v45, %v2654_v16  ;;  %v2567_v40 = vrot.slane %v12228_v52, 7  ;;  %v13951_v3 = vld [vmem:[#allocation37_spill] sm:$0xff]  ;;  %8914 = vmatprep.mubr.bf16.mxu1 %v12043_v44  ;;  %v2420_v6 = vld [vmem:[%s13332_s1 + $0xd8] sm:$0xff]  ;;  %8943 = vmatpush3.bf16.msra.mxu1 %v9532_v18 }
 0x214   : > { %v12250_v1 = vpack.c.bf16 %v5638_v61, %v5637_v55  ;;  %v13949_v29 = vrot.slane %v13948_v13, 1  ;;  %v5726_v53 = vrot.slane %v5724_v23, 3  ;;  %v5729_v57 = vrot.slane %v5727_v0, 4  ;;  %v13954_v16 = vld [vmem:[#allocation64_spill] sm:$0xff]  ;;  %8944 = vmatprep.subr.bf16.mxu1 %v9534_v62  ;;  %v12300_v18 = vld [vmem:[%s13335_s4 + $0x1c0] sm:$0xff]   ;;  %v13957_v23 = vld [vmem:[#allocation43_spill] sm:$0xff] }
 0x215   : > { %v5352_v27 = vunpack.c.l.bf16 %v13951_v3  ;;  %v12264_v63 = vsel %vm655_vm1, %v12138_v50, %v12238_v15  ;;  %v2565_v19 = vrot.slane %v12167_v39, 7  ;;  %v5739_v21 = vor.u32 %v5738_v10, %v13952_v20  ;;  %v6968_v44 = vld [vmem:[%s13332_s1 + $0x98] sm:$0xff]  ;;  %9451 = vset.pattern.permute.xlu1 %v13726_v46 }
 0x216   : > { %v5567_v54 = vsel %vm963_vm0, %v5564_v59, %v13949_v29  ;;  %v12271_v42 = vmul.f32 %v5565_v49, %v5350_v48  ;;  %v5568_v32 = vrot.slane %v13953_v17, 1  ;;  %v2761_v26 = vshrl.u32 %v12157_v47, 16  ;;  %2535 = vperm.xlu1 %9451, %v2420_v6   ;;  %7059 = vperm.xlu0 %9471, %v6968_v44   ;;  %v13959_v20 = vld [vmem:[#allocation40_spill] sm:$0xff] }
 0x217   : > { %v12279_v59 = vor.u32 %v5729_v57, %v5726_v53  ;;  %v5640_v39 = vmul.f32 %v5567_v54, %v5351_v22  ;;  %v5570_v45 = vrot.slane %v13954_v16, 1  ;;  %v2568_v33 = vsel %vm2553_vm3, %v2565_v19, %v2567_v40  ;;  %v6292_v53 = vld [vmem:[%s13332_s1 + $0xa8] sm:$0xff]  ;;  %8945 = vmatpush3.bf16.msra.mxu1 %v9534_v62 }
 0x218   : > { %v2765_v10 = vshll.u32 %v12247_v34, 16  ;;  %v5572_v58 = vrot.slane %v13955_v4, 1  ;;  %v2763_v47 = vor.u32 %v2761_v26, %v12200_v11  ;;  %v2367_v61 = vunpack.c.h.bf16 %v12264_v63  ;;  %v13960_v26 = vld [vmem:[#allocation74_spill] sm:$0xff]  ;;  %8978 = vmatprep.subr.bf16.mxu1 %v12300_v18 }
 0x219   : > { %v12295_v14 = vsel %vm1158_vm2, %v12279_v59, %v5739_v21  ;;  %v13956_v43 = vrot.slane %v13925_v51, 7  ;;  %v5742_v11 = vshrl.u32 %v13957_v23, 16  ;;  %v5745_v0 = vshll.u32 %v13957_v23, 16  ;;  %v13963_v23 = vld [vmem:[#allocation39_spill] sm:$0xff] }
 0x21a   : > { %v2767_v48 = vrot.slane %v2765_v10, 1  ;;  %v13958_v22 = vmov %v13949_v29  ;;  %v5353_v29 = vunpack.c.h.bf16 %v13951_v3  ;;  %v2366_v54 = vunpack.c.l.bf16 %v12264_v63  ;;  %8915 = vmatmul.mubr.bf16.gmra.mrb[0].mxu1 %v12056_v25  ;;  %9452 = vset.pattern.permute.xlu1 %v13754_v31 }
 0x21b   : > { %v2566_v55 = vsel %vm2553_vm3, %v13956_v43, %v2565_v19  ;;  %v5569_v49 = vsel %vm963_vm0, %v13958_v22, %v5568_v32  ;;  %v2657_v24 = vmul.f32 %v2568_v33, %v2367_v61  ;;  %v5571_v51 = vsel %vm963_vm0, %v5568_v32, %v5570_v45  ;;  %v13961_v33 = vld [vmem:[#allocation33_spill] sm:$0xff]  ;;  %8918 = vmatprep.mubr.bf16.mxu1 %v12088_v2 }
 0x21c   : > { %v2768_v57 = vsel %vm2748_vm4, %v2763_v47, %v2767_v48  ;;  %v5744_v13 = vrot.slane %v5742_v11, 3  ;;  %v5747_v19 = vrot.slane %v5745_v0, 4  ;;  %v5354_v30 = vunpack.c.l.bf16 %v13959_v20  ;;  %6410 = vperm.xlu1 %9452, %v6292_v53   ;;  %v13964_v11 = vld [vmem:[#allocation73_spill] sm:$0xff]  ;;  %7067 = vperm.xlu0 %9471, %v6292_v53   ;;  %v9564_v53 = vld [vmem:[%s13335_s4 + $0xc8] sm:$0xff]  }
 0x21d   : > { %v5355_v17 = vunpack.c.h.bf16 %v13959_v20  ;;  %v2656_v6 = vmul.f32 %v2566_v55, %v2366_v54  ;;  %8755 = vmatmul.mubr.bf16.vlgmr.msra.gmra.mrb[32].mxu0 %v2768_v57  ;;  %v5751_v16 = vshrl.u32 %v13960_v26, 16  ;;  %v5573_v32 = vsel %vm963_vm0, %v5570_v45, %v5572_v58 }
 0x21e   : > { %v13962_v62 = vrot.slane %v13961_v33, 1  ;;  %v5748_v44 = vor.u32 %v5747_v19, %v5744_v13  ;;  %v5754_v4 = vshll.u32 %v13960_v26, 16  ;;  %v5642_v47 = vmul.f32 %v5571_v51, %v5353_v29  ;;  %v13966_v13 = vld [vmem:[#allocation34_spill] sm:$0xff]  ;;  %v12346_v51 = vpop.permute.xlu1 %6310 }
 0x21f   : > { %v5753_v43 = vrot.slane %v5751_v16, 3  ;;  %v12333_v55 = vpack.c.bf16 %v2657_v24, %v2656_v6  ;;  %v5760_v45 = vshrl.u32 %v13963_v23, 16  ;;  %v13965_v0 = vrot.slane %v13964_v11, 4  ;;  %8787 = vmatpush3.bf16.msra.mxu0 %v13966_v13  ;;  %v2421_v24 = vld [vmem:[%s13332_s1 + $0xe0] sm:$0xff] }
 0x220   : > { %v5575_v10 = vsel %vm963_vm0, %v5572_v58, %v13962_v62  ;;  %v12339_v58 = vsel %vm1158_vm2, %v5739_v21, %v5748_v44  ;;  %v5756_v25 = vrot.slane %v5754_v4, 4  ;;  %v5763_v57 = vshll.u32 %v13963_v23, 16  ;;  %v6972_v21 = vld [vmem:[%s13332_s1 + $0xb8] sm:$0xff]  ;;  %8788 = vmatprep.subr.bf16.mxu0 %v9564_v53  ;;  %9453 = vset.pattern.permute.xlu1 %v13726_v46  ;;  %v13970_v11 = vld [vmem:[#allocation17_spill] sm:$0xff] }
 0x221   : > { %v4535_v22 = vunpack.c.l.bf16 %v13965_v0  ;;  %v5643_v29 = vmul.f32 %v5573_v32, %v5354_v30  ;;  %v5644_v2 = vmul.f32 %v5575_v10, %v5355_v17  ;;  %v2769_v19 = vshrl.u32 %v12247_v34, 16  ;;  %v13967_v10 = vld [vmem:[#allocation60_spill] sm:$0xff]  ;;  %2539 = vperm.xlu1 %9453, %v2421_v24   ;;  %7075 = vperm.xlu0 %9471, %v6972_v21   ;;  %v13972_v13 = vld [vmem:[#allocation13_spill] sm:$0xff]  ;;  %v13973_v21 = vld [vmem:[#allocation27_spill] sm:$0xff] }
 0x222   : > { %v2773_v20 = vshll.u32 %v12333_v55, 16  ;;  %v12357_v30 = vpack.c.bf16 %v5640_v39, %v12271_v42  ;;  %v5757_v17 = vor.u32 %v5756_v25, %v5753_v43  ;;  %v5762_v6 = vrot.slane %v5760_v45, 3  ;;  %8919 = vmatmul.mubr.bf16.gmra.mrb[4].mxu1 %v12135_v5  ;;  %v13971_v25 = vld [vmem:[#allocation71_spill] sm:$0xff]  ;;  %v2460_v5 = vpop.permute.xlu1 %2459 }
 0x223   : > { %v5765_v26 = vrot.slane %v5763_v57, 4  ;;  %v5641_v34 = vmul.f32 %v5569_v49, %v5352_v27  ;;  %v2771_v16 = vor.u32 %v2769_v19, %v2767_v48  ;;  %v5769_v62 = vshrl.u32 %v12204_v38, 16  ;;  %v13969_v48 = vld [vmem:[#allocation54_spill] sm:$0xff]  ;;  %8789 = vmatpush3.bf16.msra.mxu0 %v9564_v53  ;;  %8922 = vmatprep.mubr.bf16.mxu1 %v12144_v56 }
 0x224   : > { %v12362_v32 = vrot.slane %v2773_v20, 1  ;;  %v13968_v4 = vrot.slane %v13967_v10, 7  ;;  %v12368_v42 = vsel %vm1158_vm2, %v5748_v44, %v5757_v17  ;;  %v5772_v43 = vshll.u32 %v12204_v38, 16  ;;  %v6293_v44 = vld [vmem:[%s13332_s1 + $0xb0] sm:$0xff]  ;;  %v12396_v19 = vld [vmem:[%s13332_s1 + $0xc8] sm:$0xff] }
 0x225   : > { %v5766_v39 = vor.u32 %v5765_v26, %v5762_v6  ;;  %v12371_v3 = vpack.c.bf16 %v5642_v47, %v5641_v34  ;;  %v12373_v27 = vpack.c.bf16 %v5644_v2, %v5643_v29  ;;  %v5356_v49 = vunpack.c.l.bf16 %v13969_v48  ;;  %v9565_v20 = vld [vmem:[%s13335_s4 + $0xd0] sm:$0xff]   ;;  %9454 = vset.pattern.permute.xlu1 %v13754_v31  ;;  %7083 = vperm.xlu0 %9471, %v12396_v19  }
 0x226   : > { %v4824_v23 = vmul.f32 %v13968_v4, %v4535_v22  ;;  %v2776_v45 = vsel %vm2748_vm4, %v2771_v16, %v12362_v32  ;;  %v2320_v38 = vsel %vm655_vm1, %v12238_v15, %v13970_v11  ;;  %v5771_v0 = vrot.slane %v5769_v62, 3  ;;  %8790 = vmatprep.subr.bf16.mxu0 %v9565_v20  ;;  %6415 = vperm.xlu1 %9454, %v6293_v44   ;;  %v6976_v62 = vld [vmem:[%s13332_s1 + $0xd8] sm:$0xff] }
 0x227   : > { %8758 = vmatprep.mubr.bf16.mxu0 %v2776_v45  ;;  %v12386_v47 = vsel %vm1158_vm2, %v5757_v17, %v5766_v39  ;;  %v5774_v22 = vrot.slane %v5772_v43, 4  ;;  %v5576_v57 = vrot.slane %v13971_v25, 1  ;;  %v2571_v29 = vrot.slane %v13972_v13, 7  ;;  %8791 = vmatpush3.bf16.msra.mxu0 %v9565_v20  ;;  %v9566_v45 = vld [vmem:[%s13335_s4 + $0xd8] sm:$0xff]   ;;  %v6316_v25 = vpop.permute.xlu1 %6315 }
 0x228   : > { %v5778_v2 = vshrl.u32 %v12232_v60, 16  ;;  %v5781_v24 = vshll.u32 %v12232_v60, 16  ;;  %v5578_v53 = vrot.slane %v13973_v21, 1  ;;  %v4841_v17 = vpack.c.bf16 %v4824_v23, %v4824_v23  ;;  %8792 = vmatprep.subr.bf16.mxu0 %v9566_v45 }
 0x229   : > { %v2569_v56 = vrot.slane %v2460_v5, 7  ;;  %v5775_v6 = vor.u32 %v5774_v22, %v5771_v0  ;;  %v2368_v60 = vunpack.c.l.bf16 %v2320_v38  ;;  %v2369_v26 = vunpack.c.h.bf16 %v2320_v38  ;;  %7091 = vperm.xlu0 %9471, %v6976_v62  }
 0x22a   : > { %v5780_v34 = vrot.slane %v5778_v2, 3  ;;  %v5783_v16 = vrot.slane %v5781_v24, 4  ;;  %v5357_v10 = vunpack.c.h.bf16 %v13969_v48  ;;  %v5014_v44 = vshrl.u32 %v12131_v8, 16  ;;  %6420 = vperm.xlu1 %9454, %v12081_v37   ;;  %8923 = vmatmul.mubr.bf16.gmra.mrb[8].mxu1 %v12161_v35 }
 0x22b   : > { %v2570_v4 = vsel %vm2553_vm3, %v2567_v40, %v2569_v56  ;;  %v2572_v23 = vsel %vm2553_vm3, %v2569_v56, %v2571_v29  ;;  %v12415_v43 = vsel %vm1158_vm2, %v5766_v39, %v5775_v6  ;;  %v13974_v52 = vrot.slane %v13961_v33, 1  ;;  %8793 = vmatpush3.bf16.msra.mxu0 %v9566_v45  ;;  %8926 = vmatprep.mubr.bf16.mxu1 %v12182_v7  ;;  %v9567_v7 = vld [vmem:[%s13335_s4 + $0xe0] sm:$0xff]   ;;  %v6321_v62 = vpop.permute.xlu1 %6320 }
 0x22c   : > { %v2658_v11 = vmul.f32 %v2570_v4, %v2368_v60  ;;  %v2659_v38 = vmul.f32 %v2572_v23, %v2369_v26  ;;  %v5784_v0 = vor.u32 %v5783_v16, %v5780_v34  ;;  %v5018_v22 = vshll.u32 %v4841_v17, 16  ;;  %v2424_v26 = vld [vmem:[%s13332_s1 + $0xf8] sm:$0xff]  ;;  %v12452_v34 = vld [vmem:[%s13332_s1 + $0xe8] sm:$0xff]  ;;  %8794 = vmatprep.subr.bf16.mxu0 %v9567_v7 }
 0x22d   : > { %v5577_v40 = vsel %vm963_vm0, %v13974_v52, %v5576_v57  ;;  %v5787_v5 = vshrl.u32 %v12234_v9, 16  ;;  %v5790_v39 = vshll.u32 %v12234_v9, 16  ;;  %v5579_v2 = vsel %vm963_vm0, %v5576_v57, %v5578_v53  ;;  %v13975_v57 = vld [vmem:[#allocation22_spill] sm:$0xff]  ;;  %7099 = vperm.xlu0 %9471, %v12452_v34  }
 0x22e   : > { %v5016_v8 = vor.u32 %v5014_v44, %v12155_v36  ;;  %v12432_v24 = vsel %vm1158_vm2, %v5775_v6, %v5784_v0  ;;  %v12434_v33 = vpack.c.bf16 %v2659_v38, %v2658_v11  ;;  %v2777_v20 = vshrl.u32 %v12333_v55, 16  ;;  %9455 = vset.pattern.permute.xlu1 %v13726_v46 }
 0x22f   : > { %v5789_v17 = vrot.slane %v5787_v5, 3  ;;  %v5792_v9 = vrot.slane %v5790_v39, 4  ;;  %v5796_v56 = vshrl.u32 %v12240_v12, 16  ;;  %v13976_v36 = vshrl.u32 %v13975_v57, 16  ;;  %2551 = vperm.xlu1 %9455, %v2424_v26   ;;  %8795 = vmatpush3.bf16.msra.mxu0 %v9567_v7  ;;  %v13979_v7 = vld [vmem:[#allocation53_spill] sm:$0xff] }
 0x230   : > { %v13977_v37 = vshll.u32 %v13975_v57, 16  ;;  %v2781_v35 = vshll.u32 %v12434_v33, 16  ;;  %v5799_v55 = vshll.u32 %v12240_v12, 16  ;;  %v5020_v16 = vrot.slane %v5018_v22, 1 }
 0x231   : > { %v5718_v60 = vrot.slane %v13976_v36, 3  ;;  %v2779_v4 = vor.u32 %v2777_v20, %v12362_v32  ;;  %v5793_v23 = vor.u32 %v5792_v9, %v5789_v17  ;;  %v5798_v45 = vrot.slane %v5796_v56, 3  ;;  %7107 = vperm.xlu0 %9471, %v2424_v26   ;;  %v2472_v36 = vpop.permute.xlu1 %2471 }
 0x232   : > { %v5721_v6 = vrot.slane %v13977_v37, 4  ;;  %v12461_v12 = vmul.f32 %v6316_v25, %v2366_v54  ;;  %v12466_v44 = vmul.f32 %v6321_v62, %v2367_v61  ;;  %v12468_v11 = vrot.slane %v2781_v35, 1  ;;  %v13978_v54 = vld [vmem:[#allocation42_spill] sm:$0xff] }
 0x233   : > { %v5801_v38 = vrot.slane %v5799_v55, 4  ;;  %v5646_v52 = vmul.f32 %v5579_v2, %v5357_v10  ;;  %v12471_v32 = vsel %vm1158_vm2, %v5784_v0, %v5793_v23  ;;  %v5805_v22 = vshrl.u32 %v12250_v1, 16  ;;  %v9568_v10 = vld [vmem:[%s13335_s4 + $0xe8] sm:$0xff]   ;;  %9456 = vset.pattern.permute.xlu1 %v13754_v31  ;;  %v9569_v55 = vld [vmem:[%s13335_s4 + $0xf0] sm:$0xff]  }
 0x234   : > { %v5808_v5 = vshll.u32 %v12250_v1, 16  ;;  %v2573_v25 = vrot.slane %v13978_v54, 7  ;;  %v6496_v46 = vpack.c.bf16 %v12466_v44, %v12461_v12  ;;  %v2784_v63 = vsel %vm2748_vm4, %v2779_v4, %v12468_v11  ;;  %8796 = vmatprep.subr.bf16.mxu0 %v9568_v10  ;;  %6430 = vperm.xlu1 %9456, %v12396_v19  }
 0x235   : > { %v5802_v61 = vor.u32 %v5801_v38, %v5798_v45  ;;  %v5645_v0 = vmul.f32 %v5577_v40, %v5356_v49  ;;  %v5722_v39 = vor.u32 %v5721_v6, %v5718_v60  ;;  %8759 = vmatmul.mubr.bf16.gmra.mrb[36].mxu0 %v2784_v63  ;;  %v5807_v1 = vrot.slane %v5805_v22, 3 }
 0x236   : > { %v5810_v2 = vrot.slane %v5808_v5, 4  ;;  %v5021_v20 = vsel %vm2748_vm4, %v5016_v8, %v5020_v16  ;;  %v5814_v9 = vshrl.u32 %v12357_v30, 16  ;;  %v5817_v56 = vshll.u32 %v12357_v30, 16  ;;  %8797 = vmatpush3.bf16.msra.mxu0 %v9568_v10 }
 0x237   : > { %v12487_v17 = vsel %vm1158_vm2, %v5793_v23, %v5802_v61  ;;  %v5664_v57 = vpack.c.bf16 %v5646_v52, %v5645_v0  ;;  %8927 = vmatmul.mubr.bf16.gmra.mrb[12].mxu1 %v5021_v20  ;;  %v5731_v48 = vsel %vm1158_vm2, %v5722_v39, %v12279_v59  ;;  %v5823_v40 = vshrl.u32 %v12371_v3, 16  ;;  %v12502_v59 = vld [vmem:[%s13332_s1 + $0xd0] sm:$0xff]  ;;  %8798 = vmatprep.subr.bf16.mxu0 %v9569_v55  ;;  %v9537_v0 = vld [vmem:[%s13335_s4 + $0x1c8] sm:$0xff]  }
 0x238   : > { %v5811_v49 = vor.u32 %v5810_v2, %v5807_v1  ;;  %v2574_v8 = vsel %vm2553_vm3, %v2571_v29, %v2573_v25  ;;  %8946 = vmatprep.mubr.bf16.mxu1 %v5731_v48  ;;  %v5816_v60 = vrot.slane %v5814_v9, 3  ;;  %v5819_v30 = vrot.slane %v5817_v56, 4  ;;  %6435 = vperm.xlu1 %9456, %v12502_v59   ;;  %v9570_v1 = vld [vmem:[%s13335_s4 + $0xf8] sm:$0xff]  }
 0x239   : > { %v2575_v37 = vrot.slane %v2472_v36, 7  ;;  %v5825_v26 = vrot.slane %v5823_v40, 3  ;;  %v5826_v13 = vshll.u32 %v12371_v3, 16  ;;  %v5832_v35 = vshrl.u32 %v12373_v27, 16  ;;  %v13983_v36 = vld [vmem:[#allocation8_spill] sm:$0xff] }
 0x23a   : > { %v12505_v6 = vsel %vm1158_vm2, %v5802_v61, %v5811_v49  ;;  %v5820_v29 = vor.u32 %v5819_v30, %v5816_v60  ;;  %v5835_v19 = vshll.u32 %v12373_v27, 16  ;;  %v13980_v16 = vunpack.c.l.bf16 %v13979_v7  ;;  %8799 = vmatpush3.bf16.msra.mxu0 %v9569_v55  ;;  %v12522_v61 = vpop.permute.xlu1 %6330 }
 0x23b   : > { %v2576_v4 = vsel %vm2553_vm3, %v2573_v25, %v2575_v37  ;;  %v5828_v23 = vrot.slane %v5826_v13, 4  ;;  %v5841_v45 = vshrl.u32 %v5664_v57, 16  ;;  %v13981_v3 = vunpack.c.h.bf16 %v13979_v7  ;;  %v3220_v25 = vld [vmem:[%s13332_s1] sm:$0xff]  ;;  %8800 = vmatprep.subr.bf16.mxu0 %v9570_v1 }
 0x23c   : > { %v2660_v62 = vmul.f32 %v2574_v8, %v13980_v16  ;;  %v12520_v52 = vsel %vm1158_vm2, %v5811_v49, %v5820_v29  ;;  %v5834_v27 = vrot.slane %v5832_v35, 3  ;;  %v5837_v22 = vrot.slane %v5835_v19, 4  ;;  %v9538_v8 = vld [vmem:[%s13335_s4 + $0x1d0] sm:$0xff]   ;;  %v13984_v35 = vld [vmem:[#allocation14_spill] sm:$0xff] }
 0x23d   : > { %v2661_v38 = vmul.f32 %v2576_v4, %v13981_v3  ;;  %v5829_v5 = vor.u32 %v5828_v23, %v5825_v26  ;;  %v5843_v54 = vrot.slane %v5841_v45, 3  ;;  %v5844_v63 = vshll.u32 %v5664_v57, 16  ;;  %v9540_v3 = vld [vmem:[%s13335_s4 + $0x1e0] sm:$0xff]  }
 0x23e   : > { %v5838_v39 = vor.u32 %v5837_v22, %v5834_v27  ;;  %v13982_v9 = vmov 3   ;;  %v2785_v56 = vshrl.u32 %v12434_v33, 16  ;;  %8801 = vmatpush3.bf16.msra.mxu0 %v9570_v1  ;;  %v2476_v33 = vpop.permute.xlu1 %2475  ;;  %v2579_v60 = vrot.slane %v13983_v36, 7  ;;  %v13989_v1 = vld [vmem:[#allocation78_spill] sm:$0xff] }
 0x23f   : > { %v2688_v10 = vpack.c.bf16 %v2661_v38, %v2660_v62  ;;  %8947 = vmatmul.mubr.bf16.vlgmr.msra.gmra.mrb[16].mxu1 %v12295_v14  ;;  %v12535_v2 = vsel %vm1158_vm2, %v5820_v29, %v5829_v5  ;;  %v5846_v20 = vrot.slane %v5844_v63, 4  ;;  %9457 = vset.pattern.permute.xlu1 %v13982_v9  ;;  %v12549_v14 = vld [vmem:[%s13332_s1 + $0x10] sm:$0xff]  ;;  %v2577_v30 = vrot.slane %v2476_v33, 7  ;;  %v12567_v29 = vld [vmem:[%s13332_s1 + $0x18] sm:$0xff] }
 0x240   : > { %8950 = vmatprep.mubr.bf16.mxu1 %v12339_v58  ;;  %v12541_v48 = vsel %vm1158_vm2, %v5829_v5, %v5838_v39  ;;  %3254 = vperm.xlu1 %9457, %v3220_v25   ;;  %v2787_v58 = vor.u32 %v2785_v56, %v12468_v11  ;;  %v13985_v19 = vunpack.c.l.bf16 %v13984_v35  ;;  %v13986_v7 = vunpack.c.h.bf16 %v13984_v35  ;;  %v13988_v5 = vld [vmem:[#allocation9_spill] sm:$0xff]  ;;  %v9541_v25 = vld [vmem:[%s13335_s4 + $0x1e8] sm:$0xff]   ;;  %v13991_v33 = vld [vmem:[#allocation15_spill] sm:$0xff] }
 0x241   : > { %v2789_v57 = vshll.u32 %v2688_v10, 16  ;;  %8979 = vmatpush3.bf16.msra.mxu1 %v12300_v18  ;;  %v12544_v49 = vor.u32 %v5846_v20, %v5843_v54  ;;  %v2578_v11 = vsel %vm2553_vm3, %v2575_v37, %v2577_v30  ;;  %v2580_v13 = vsel %vm2553_vm3, %v2577_v30, %v2579_v60  ;;  %v9539_v37 = vld [vmem:[%s13335_s4 + $0x1d8] sm:$0xff]   ;;  %v12606_v56 = vld [vmem:[#allocation2 + $0x88] sm:$0xff] }
 0x242   : > { %8980 = vmatprep.subr.bf16.mxu1 %v9537_v0  ;;  %v2662_v55 = vmul.f32 %v2578_v11, %v13985_v19  ;;  %v2663_v16 = vmul.f32 %v2580_v13, %v13986_v7  ;;  %v12578_v62 = vpop.permute.xlu1 %6335  ;;  %v2793_v23 = vshrl.u32 %v2688_v10, 16  ;;  %v2581_v54 = vrot.slane %v13988_v5, 7  ;;  %v12600_v10 = vld [vmem:[%s13332_s1 + $0x20] sm:$0xff]  ;;  %v9543_v35 = vld [vmem:[%s13335_s4 + $0x1f8] sm:$0xff]  }
 0x243   : > { %v2791_v40 = vrot.slane %v2789_v57, 1  ;;  %v12557_v18 = vsel %vm1158_vm2, %v5838_v39, %v12544_v49  ;;  %v5582_v20 = vrot.slane %v13989_v1, 1  ;;  %v5359_v11 = vunpack.c.h.bf16 %v12606_v56 }
 0x244   : > { %3262 = vperm.xlu1 %9457, %v12549_v14   ;;  %v2689_v4 = vpack.c.bf16 %v2663_v16, %v2662_v55 }
 0x245   : > { %v2792_v26 = vsel %vm2748_vm4, %v2787_v58, %v2791_v40  ;;  %8981 = vmatpush3.bf16.msra.mxu1 %v9537_v0  ;;  %v2795_v27 = vor.u32 %v2793_v23, %v2791_v40  ;;  %v9542_v40 = vld [vmem:[%s13335_s4 + $0x1f0] sm:$0xff]  }
 0x246   : > { %8762 = vmatprep.mubr.bf16.mxu0 %v2792_v26  ;;  %8982 = vmatprep.subr.bf16.mxu1 %v9538_v8  ;;  %v2797_v45 = vshll.u32 %v2689_v4, 16  ;;  %v12587_v38 = vpop.permute.xlu1 %6340  ;;  %v5358_v26 = vunpack.c.l.bf16 %v12606_v56 }
 0x247   : > { %8951 = vmatmul.mubr.bf16.gmra.mrb[20].mxu1 %v12368_v42  ;;  %v6950_v42 = vld [vmem:[%s13332_s1 + $0x8] sm:$0xff] }
 0x248   : > { %8954 = vmatprep.mubr.bf16.mxu1 %v12386_v47  ;;  %3266 = vperm.xlu1 %9457, %v12567_v29   ;;  %v13987_v47 = vmov 8   ;;  %v2799_v22 = vrot.slane %v2797_v45, 1 }
 0x249   : > { %8983 = vmatpush3.bf16.msra.mxu1 %v9538_v8  ;;  %v13992_v8 = vunpack.c.l.bf16 %v13991_v33 }
 0x24a   : > { %8984 = vmatprep.subr.bf16.mxu1 %v9539_v37  ;;  %v2800_v63 = vsel %vm2748_vm4, %v2795_v27, %v2799_v22  ;;  %v2488_v0 = vpop.permute.xlu1 %2487 }
 0x24b   : > { %8763 = vmatmul.mubr.bf16.gmra.mrb[40].mxu0 %v2800_v63  ;;  %v2583_v39 = vrot.slane %v2488_v0, 7  ;;  %v13995_v63 = vld [vmem:[#allocation77_spill] sm:$0xff] }
 0x24c   : > { %9459 = vset.pattern.permute.xlu1 %v13987_v47 }
 0x24d   : > { %6987 = vperm.xlu1 %9459, %v6950_v42   ;;  %8985 = vmatpush3.bf16.msra.mxu1 %v9539_v37  ;;  %v2584_v58 = vsel %vm2553_vm3, %v2581_v54, %v2583_v39 }
 0x24e   : > { %8986 = vmatprep.subr.bf16.mxu1 %v9540_v3 }
 0x24f   : > { %8955 = vmatmul.mubr.bf16.gmra.mrb[24].mxu1 %v12415_v43  ;;  %v2582_v43 = vsel %vm2553_vm3, %v2579_v60, %v2581_v54  ;;  %v13993_v60 = vunpack.c.h.bf16 %v13991_v33  ;;  %v12621_v13 = vpop.permute.xlu1 %6350 }
 0x250   : > { %8958 = vmatprep.mubr.bf16.mxu1 %v12432_v24  ;;  %v13990_v24 = vld [vmem:[#allocation28_spill] sm:$0xff]  ;;  %v2664_v36 = vmul.f32 %v2582_v43, %v13992_v8  ;;  %v13997_v43 = vunpack.c.h.bf16 %v13995_v63 }
 0x251   : > { %9460 = vset.pattern.permute.xlu1 %v13982_v9  ;;  %8987 = vmatpush3.bf16.msra.mxu1 %v9540_v3  ;;  %v5580_v57 = vrot.slane %v13990_v24, 1  ;;  %v2665_v30 = vmul.f32 %v2584_v58, %v13993_v60 }
 0x252   : > { %3270 = vperm.xlu1 %9460, %v12600_v10   ;;  %8988 = vmatprep.subr.bf16.mxu1 %v9541_v25 }
 0x253   : > { %v5581_v19 = vsel %vm963_vm0, %v5578_v53, %v5580_v57  ;;  %v5583_v55 = vsel %vm963_vm0, %v5580_v57, %v5582_v20  ;;  %v2690_v7 = vpack.c.bf16 %v2665_v30, %v2664_v36  ;;  %v13994_v53 = vld [vmem:[#allocation44_spill] sm:$0xff]  ;;  %v13998_v30 = vld [vmem:[#allocation26_spill] sm:$0xff] }
 0x254   : > { %v5647_v37 = vmul.f32 %v5581_v19, %v5358_v26  ;;  %v5648_v42 = vmul.f32 %v5583_v55, %v5359_v11  ;;  %v2492_v23 = vpop.permute.xlu1 %2491  ;;  %v2587_v3 = vrot.slane %v13994_v53, 7  ;;  %v2589_v26 = vrot.slane %v13998_v30, 7  ;;  %v14002_v30 = vld [vmem:[#allocation29_spill] sm:$0xff] }
 0x255   : > { %8989 = vmatpush3.bf16.msra.mxu1 %v9541_v25  ;;  %v2805_v16 = vshll.u32 %v2690_v7, 16  ;;  %v2585_v27 = vrot.slane %v2492_v23, 7  ;;  %v13996_v25 = vunpack.c.l.bf16 %v13995_v63  ;;  %v2809_v33 = vshrl.u32 %v2690_v7, 16 }
 0x256   : > { %9462 = vset.pattern.permute.xlu1 %v13987_v47  ;;  %8990 = vmatprep.subr.bf16.mxu1 %v9542_v40  ;;  %v5665_v54 = vpack.c.bf16 %v5648_v42, %v5647_v37  ;;  %v2590_v42 = vsel %vm2553_vm3, %v2587_v3, %v2589_v26 }
 0x257   : > { %8959 = vmatmul.mubr.bf16.gmra.mrb[28].mxu1 %v12471_v32  ;;  %6991 = vperm.xlu1 %9462, %v12549_v14   ;;  %v2801_v32 = vshrl.u32 %v2689_v4, 16  ;;  %v2807_v45 = vrot.slane %v2805_v16, 1  ;;  %v9571_v14 = vld [vmem:[#allocation2 + $0x80] ss:$16 sps:$4 sm:$0xff]  }
 0x258   : > { %8962 = vmatprep.mubr.bf16.mxu1 %v12487_v17  ;;  %v12637_v17 = vld [vmem:[%s13335_s4 + $0x200] sm:$0xff]   ;;  %v5360_v4 = vunpack.c.h.bf16 %v9571_v14  ;;  %v5850_v57 = vshrl.u32 %v5665_v54, 16  ;;  %v5853_v58 = vshll.u32 %v5665_v54, 16  ;;  %v13999_v14 = vld [vmem:[#allocation30_spill] sm:$0xff] }
 0x259   : > { %8991 = vmatpush3.bf16.msra.mxu1 %v9542_v40  ;;  %v2803_v21 = vor.u32 %v2801_v32, %v2799_v22  ;;  %v2588_v22 = vsel %vm2553_vm3, %v2585_v27, %v2587_v3  ;;  %v12658_v40 = vpop.permute.xlu0 %3258  ;;  %v2811_v60 = vor.u32 %v2809_v33, %v2807_v45  ;;  %v14001_v54 = vunpack.c.h.bf16 %v13999_v14 }
 0x25a   : > { %8992 = vmatprep.subr.bf16.mxu1 %v9543_v35  ;;  %v2667_v1 = vmul.f32 %v2588_v22, %v13997_v43  ;;  %v12650_v24 = vpop.permute.xlu1 %6355  ;;  %v5852_v11 = vrot.slane %v5850_v57, 3  ;;  %v3227_v43 = vld [vmem:[%s13332_s1 + $0x38] sm:$0xff] }
 0x25b   : > { %6995 = vperm.xlu1 %9462, %v12567_v29   ;;  %v2808_v5 = vsel %vm2748_vm4, %v2803_v21, %v2807_v45  ;;  %v2586_v29 = vsel %vm2553_vm3, %v2583_v39, %v2585_v27  ;;  %v12656_v39 = vld [vmem:[%s13332_s1 + $0xf0] sm:$0xff] }
 0x25c   : > { %8766 = vmatprep.mubr.bf16.mxu0 %v2808_v5  ;;  %v2666_v0 = vmul.f32 %v2586_v29, %v13996_v25 }
 0x25d   : > { %8993 = vmatpush3.bf16.msra.mxu1 %v9543_v35  ;;  %v5855_v35 = vrot.slane %v5853_v58, 4  ;;  %v12668_v16 = vpop.permute.xlu0 %3274 }
 0x25e   : > { %9026 = vmatprep.subr.bf16.mxu1 %v12637_v17 }
 0x25f   : > { %8963 = vmatmul.mubr.bf16.gmra.mrb[0].mxu1 %v12505_v6  ;;  %9463 = vset.pattern.permute.xlu1 %v13754_v31  ;;  %v5649_v6 = vmul.f32 %v5582_v20, %v5360_v4  ;;  %v6156_v31 = vld [vmem:[#allocation2 + $0x10] sm:$0xf0]  ;;  %v14000_v4 = vunpack.c.l.bf16 %v13999_v14 }
 0x260   : > { %8966 = vmatprep.mubr.bf16.mxu1 %v12520_v52  ;;  %6450 = vperm.xlu1 %9463, %v12452_v34   ;;  %v2691_v52 = vpack.c.bf16 %v2667_v1, %v2666_v0  ;;  %v12661_v34 = vpop.permute.xlu1 %6360  ;;  %v6190_v19 = vrot.slane %v6156_v31, 4  ;;  %v12695_v31 = vld [vmem:[%s13332_s1 + $0x48] sm:$0xff] }
 0x261   : > { %v5666_v36 = vpack.c.bf16 %v5649_v6, %v5649_v6  ;;  %v2668_v5 = vmul.f32 %v2590_v42, %v14000_v4  ;;  %v6306_v25 = vpop.permute.xlu0 %6305 }
 0x262   : > { %v2813_v8 = vshll.u32 %v2691_v52, 16  ;;  %v6192_v21 = vsel %vm655_vm1, %v6190_v19, %v12138_v50  ;;  %v2817_v33 = vshrl.u32 %v2691_v52, 16  ;;  %v6161_v52 = vld [vmem:[#allocation2 + $0x38] sm:$0xff] }
 0x263   : > { %v5859_v7 = vshrl.u32 %v5666_v36, 16  ;;  %v5862_v32 = vshll.u32 %v5666_v36, 16  ;;  %v6240_v29 = vunpack.c.h.bf16 %v6192_v21  ;;  %v6239_v1 = vunpack.c.l.bf16 %v6192_v21  ;;  %v14003_v21 = vld [vmem:[#allocation32_spill] sm:$0xff] }
 0x264   : > { %6455 = vperm.xlu1 %9463, %v12656_v39   ;;  %v2815_v20 = vrot.slane %v2813_v8, 1  ;;  %v2504_v37 = vpop.permute.xlu1 %2503  ;;  %v6199_v14 = vrot.slane %v6161_v52, 4 }
 0x265   : > { %v2591_v23 = vrot.slane %v2504_v37, 7  ;;  %v5861_v53 = vrot.slane %v5859_v7, 3  ;;  %v5864_v27 = vrot.slane %v5862_v32, 4  ;;  %v6464_v57 = vmul.f32 %v12346_v51, %v6240_v29 }
 0x266   : > { %v2816_v55 = vsel %vm2748_vm4, %v2811_v60, %v2815_v20  ;;  %v6463_v8 = vmul.f32 %v6306_v25, %v6239_v1  ;;  %v2819_v36 = vor.u32 %v2817_v33, %v2815_v20  ;;  %v12720_v1 = vld [vmem:[#allocation2 + $0x40] sm:$0xff] }
 0x267   : > { %8967 = vmatmul.mubr.bf16.gmra.mrb[4].mxu1 %v12535_v2  ;;  %8767 = vmatmul.mubr.bf16.gmra.mrb[44].mxu0 %v2816_v55  ;;  %v5856_v2 = vor.u32 %v5855_v35, %v5852_v11  ;;  %v2592_v45 = vsel %vm2553_vm3, %v2589_v26, %v2591_v23  ;;  %v5865_v58 = vor.u32 %v5864_v27, %v5861_v53  ;;  %v2595_v26 = vrot.slane %v14002_v30, 7  ;;  %v6160_v35 = vld [vmem:[#allocation2 + $0x30] sm:$0xff] }
 0x268   : > { %8970 = vmatprep.mubr.bf16.mxu1 %v12541_v48  ;;  %9465 = vset.pattern.permute.xlu1 %v13987_v47  ;;  %v3226_v48 = vld [vmem:[%s13332_s1 + $0x30] sm:$0xff]  ;;  %v2669_v3 = vmul.f32 %v2592_v45, %v14001_v54  ;;  %v12686_v63 = vpop.permute.xlu1 %6370  ;;  %v6495_v51 = vpack.c.bf16 %v6464_v57, %v6463_v8  ;;  %v6197_v20 = vrot.slane %v6160_v35, 4  ;;  %v14005_v53 = vunpack.c.h.bf16 %v14003_v21 }
 0x269   : > { %6999 = vperm.xlu1 %9465, %v12600_v10   ;;  %v6159_v10 = vld [vmem:[#allocation2 + $0x28] sm:$0xff]  ;;  %v5857_v22 = vsel %vm1158_vm2, %v12544_v49, %v5856_v2  ;;  %v5866_v55 = vsel %vm1158_vm2, %v5856_v2, %v5865_v58  ;;  %v6326_v2 = vpop.permute.xlu0 %6325 }
 0x26a   : > { %v2692_v0 = vpack.c.bf16 %v2669_v3, %v2668_v5  ;;  %v6195_v6 = vrot.slane %v6159_v10, 4  ;;  %v12715_v3 = vld [vmem:[#allocation2 + $0x48] sm:$0xff] }
 0x26b   : > { %v14006_v58 = vld [vmem:[#allocation18_spill] sm:$0xff] }
 0x26c   : > { %v6196_v11 = vsel %vm655_vm1, %v12238_v15, %v6195_v6  ;;  %v14004_v15 = vunpack.c.l.bf16 %v14003_v21  ;;  %v6198_v29 = vsel %vm655_vm1, %v6195_v6, %v6197_v20  ;;  %v2597_v33 = vrot.slane %v14006_v58, 7 }
 0x26d   : > { %9466 = vset.pattern.permute.xlu1 %v13982_v9  ;;  %v6244_v42 = vunpack.c.h.bf16 %v6196_v11  ;;  %v6243_v5 = vunpack.c.l.bf16 %v6196_v11  ;;  %v6246_v6 = vunpack.c.h.bf16 %v6198_v29  ;;  %v6346_v11 = vpop.permute.xlu0 %6345  ;;  %v6245_v35 = vunpack.c.l.bf16 %v6198_v29 }
 0x26e   : > { %3278 = vperm.xlu1 %9466, %v3226_v48  }
 0x26f   : > { %8971 = vmatmul.mubr.bf16.gmra.mrb[8].mxu1 %v12557_v18  ;;  %v2821_v18 = vshll.u32 %v2692_v0, 16  ;;  %v2508_v49 = vpop.permute.xlu1 %2507  ;;  %v6467_v54 = vmul.f32 %v6326_v2, %v6243_v5  ;;  %v3231_v5 = vld [vmem:[%s13332_s1 + $0x58] sm:$0xff] }
 0x270   : > { %8974 = vmatprep.mubr.bf16.mxu1 %v5857_v22  ;;  %v2593_v19 = vrot.slane %v2508_v49, 7  ;;  %v2825_v22 = vshrl.u32 %v2692_v0, 16  ;;  %v6203_v0 = vrot.slane %v12715_v3, 4 }
 0x271   : > { %v2823_v60 = vrot.slane %v2821_v18, 1 }
 0x272   : > { %3282 = vperm.xlu1 %9466, %v3227_v43   ;;  %v2594_v32 = vsel %vm2553_vm3, %v2591_v23, %v2593_v19  ;;  %v2596_v37 = vsel %vm2553_vm3, %v2593_v19, %v2595_v26  ;;  %v6468_v23 = vmul.f32 %v12522_v61, %v6244_v42  ;;  %v6200_v43 = vsel %vm655_vm1, %v6197_v20, %v6199_v14  ;;  %v6957_v61 = vld [vmem:[%s13332_s1 + $0x40] sm:$0xff] }
 0x273   : > { %v2824_v7 = vsel %vm2748_vm4, %v2819_v36, %v2823_v60  ;;  %v2670_v45 = vmul.f32 %v2594_v32, %v14004_v15  ;;  %v2671_v27 = vmul.f32 %v2596_v37, %v14005_v53  ;;  %v2827_v8 = vor.u32 %v2825_v22, %v2823_v60  ;;  %v12752_v37 = vld [vmem:[#allocation2 + $0x58] sm:$0xff] }
 0x274   : > { %8770 = vmatprep.mubr.bf16.mxu0 %v2824_v7  ;;  %v12709_v4 = vpop.permute.xlu1 %6375  ;;  %v6497_v18 = vpack.c.bf16 %v6468_v23, %v6467_v54  ;;  %v6201_v36 = vrot.slane %v12720_v1, 4  ;;  %v6248_v30 = vunpack.c.h.bf16 %v6200_v43  ;;  %v2598_v19 = vsel %vm2553_vm3, %v2595_v26, %v2597_v33  ;;  %v6164_v7 = vld [vmem:[#allocation2 + $0x50] sm:$0xff] }
 0x275   : > { %v12712_v10 = vpack.c.bf16 %v2671_v27, %v2670_v45  ;;  %v6247_v52 = vunpack.c.l.bf16 %v6200_v43  ;;  %v6205_v45 = vrot.slane %v6164_v7, 4  ;;  %v6207_v23 = vrot.slane %v12752_v37, 4 }
 0x276   : > { %3290 = vperm.xlu1 %9466, %v12695_v31   ;;  %v6472_v12 = vmul.f32 %v12621_v13, %v6248_v30  ;;  %v6202_v26 = vsel %vm655_vm1, %v6199_v14, %v6201_v36  ;;  %v14007_v13 = vld [vmem:[#allocation35_spill] sm:$0xff]  ;;  %v6366_v14 = vpop.permute.xlu0 %6365 }
 0x277   : > { %8975 = vmatmul.mubr.bf16.gmra.mrb[12].mxu1 %v5866_v55  ;;  %v2829_v25 = vshll.u32 %v12712_v10, 16  ;;  %v6204_v55 = vsel %vm655_vm1, %v6201_v36, %v6203_v0  ;;  %v14008_v20 = vunpack.c.l.bf16 %v14007_v13  ;;  %v6250_v54 = vunpack.c.h.bf16 %v6202_v26  ;;  %v14010_v36 = vld [vmem:[#allocation50_spill] sm:$0xff] }
 0x278   : > { %8994 = vmatprep.mubr.bf16.mxu1 %v6495_v51  ;;  %v12722_v57 = vpop.permute.xlu1 %6380  ;;  %v6470_v51 = vmul.f32 %v12587_v38, %v6246_v6  ;;  %v6469_v38 = vmul.f32 %v12578_v62, %v6245_v35  ;;  %v6252_v27 = vunpack.c.h.bf16 %v6204_v55  ;;  %v14009_v62 = vunpack.c.h.bf16 %v14007_v13  ;;  %v14011_v13 = vld [vmem:[#allocation24_spill] sm:$0xff] }
 0x279   : > { %v12728_v49 = vrot.slane %v2829_v25, 1  ;;  %v2672_v42 = vmul.f32 %v2598_v19, %v14008_v20  ;;  %v6251_v29 = vunpack.c.l.bf16 %v6204_v55  ;;  %v6249_v43 = vunpack.c.l.bf16 %v6202_v26 }
 0x27a   : > { %9467 = vset.pattern.permute.xlu1 %v13987_v47  ;;  %v6498_v21 = vpack.c.bf16 %v6470_v51, %v6469_v38  ;;  %v6476_v22 = vmul.f32 %v12686_v63, %v6252_v27  ;;  %v2833_v63 = vshrl.u32 %v12712_v10, 16  ;;  %v2603_v30 = vrot.slane %v14010_v36, 7 }
 0x27b   : > { %7007 = vperm.xlu1 %9467, %v3226_v48   ;;  %v9545_v48 = vld [vmem:[%s13335_s4 + $0x208] sm:$0xff]   ;;  %v2832_v60 = vsel %vm2748_vm4, %v2827_v8, %v12728_v49  ;;  %v6475_v58 = vmul.f32 %v6366_v14, %v6251_v29  ;;  %v3232_v8 = vld [vmem:[%s13332_s1 + $0x60] sm:$0xff]  ;;  %v6473_v6 = vmul.f32 %v12650_v24, %v6249_v43  ;;  %v14012_v20 = vunpack.c.l.bf16 %v14011_v13 }
 0x27c   : > { %8771 = vmatmul.mubr.bf16.gmra.mrb[48].mxu0 %v2832_v60  ;;  %v9549_v24 = vld [vmem:[%s13335_s4 + $0x228] sm:$0xff]  }
 0x27d   : > { %v12744_v44 = vpop.permute.xlu1 %2519 }
 0x27e   : > { %v2599_v32 = vrot.slane %v12744_v44, 7 }
 0x27f   : > { %8995 = vmatmul.mubr.bf16.vlgmr.msra.gmra.mrb[16].mxu1 %v6496_v46  ;;  %7015 = vperm.xlu1 %9467, %v6957_v61   ;;  %v9546_v46 = vld [vmem:[%s13335_s4 + $0x210] sm:$0xff]   ;;  %v6474_v61 = vmul.f32 %v12661_v34, %v6250_v54  ;;  %v6208_v34 = vsel %vm655_vm1, %v6205_v45, %v6207_v23 }
 0x280   : > { %8998 = vmatprep.mubr.bf16.mxu1 %v6497_v18  ;;  %9027 = vmatpush3.bf16.msra.mxu1 %v12637_v17  ;;  %v6471_v17 = vmul.f32 %v6346_v11, %v6247_v52  ;;  %v2600_v15 = vsel %vm2553_vm3, %v2597_v33, %v2599_v32  ;;  %v12773_v33 = vld [vmem:[#allocation2 + $0x60] sm:$0xff]  ;;  %v6206_v18 = vsel %vm655_vm1, %v6203_v0, %v6205_v45  ;;  %v6255_v37 = vunpack.c.l.bf16 %v6208_v34 }
 0x281   : > { %9028 = vmatprep.subr.bf16.mxu1 %v9545_v48  ;;  %v2673_v2 = vmul.f32 %v2600_v15, %v14009_v62  ;;  %v6501_v0 = vpack.c.bf16 %v6476_v22, %v6475_v58  ;;  %v2835_v11 = vor.u32 %v2833_v63, %v12728_v49  ;;  %v6209_v10 = vrot.slane %v12773_v33, 4  ;;  %v9550_v62 = vld [vmem:[%s13335_s4 + $0x230] sm:$0xff]   ;;  %v14014_v22 = vld [vmem:[#allocation41_spill] sm:$0xff] }
 0x282   : > { %v6499_v53 = vpack.c.bf16 %v6472_v12, %v6471_v17  ;;  %v6391_v3 = vpop.permute.xlu1 %6390  ;;  %v6500_v51 = vpack.c.bf16 %v6474_v61, %v6473_v6  ;;  %v6254_v19 = vunpack.c.h.bf16 %v6206_v18  ;;  %v6256_v12 = vunpack.c.h.bf16 %v6208_v34  ;;  %v6959_v17 = vld [vmem:[%s13332_s1 + $0x50] sm:$0xff] }
 0x283   : > { %7019 = vperm.xlu1 %9467, %v12695_v31   ;;  %v9547_v31 = vld [vmem:[%s13335_s4 + $0x218] sm:$0xff]   ;;  %v12769_v25 = vpack.c.bf16 %v2673_v2, %v2672_v42  ;;  %v6253_v55 = vunpack.c.l.bf16 %v6206_v18  ;;  %v6210_v27 = vsel %vm655_vm1, %v6207_v23, %v6209_v10  ;;  %v2605_v43 = vrot.slane %v14014_v22, 7 }
 0x284   : > { %9029 = vmatpush3.bf16.msra.mxu1 %v9545_v48  ;;  %v6478_v49 = vmul.f32 %v12722_v57, %v6254_v19  ;;  %v6480_v26 = vmul.f32 %v6391_v3, %v6256_v12  ;;  %v6258_v54 = vunpack.c.h.bf16 %v6210_v27  ;;  %v9551_v23 = vld [vmem:[%s13335_s4 + $0x238] sm:$0xff]   ;;  %v6257_v58 = vunpack.c.l.bf16 %v6210_v27  ;;  %v6967_v27 = vld [vmem:[%s13332_s1 + $0x90] sm:$0xff] }
 0x285   : > { %9030 = vmatprep.subr.bf16.mxu1 %v9546_v46  ;;  %v2837_v48 = vshll.u32 %v12769_v25, 16 }
 0x287   : > { %8999 = vmatmul.mubr.bf16.gmra.mrb[20].mxu1 %v6498_v21  ;;  %9468 = vset.pattern.permute.xlu1 %v13982_v9  ;;  %v9548_v9 = vld [vmem:[%s13335_s4 + $0x220] sm:$0xff]   ;;  %v2524_v60 = vpop.permute.xlu1 %2523  ;;  %v2839_v35 = vrot.slane %v2837_v48, 1  ;;  %v14013_v21 = vunpack.c.h.bf16 %v14011_v13  ;;  %v2606_v48 = vsel %vm2553_vm3, %v2603_v30, %v2605_v43 }
 0x288   : > { %9002 = vmatprep.mubr.bf16.mxu1 %v6499_v53  ;;  %3298 = vperm.xlu1 %9468, %v3231_v5   ;;  %v2601_v52 = vrot.slane %v2524_v60, 7  ;;  %v12811_v5 = vld [vmem:[#allocation2 + $0x68] sm:$0xff] }
 0x289   : > { %9031 = vmatpush3.bf16.msra.mxu1 %v9546_v46  ;;  %v2840_v44 = vsel %vm2748_vm4, %v2835_v11, %v2839_v35  ;;  %v6386_v46 = vpop.permute.xlu0 %6385  ;;  %v6211_v61 = vrot.slane %v12811_v5, 4 }
 0x28a   : > { %9032 = vmatprep.subr.bf16.mxu1 %v9547_v31  ;;  %v2602_v7 = vsel %vm2553_vm3, %v2599_v32, %v2601_v52  ;;  %v2604_v38 = vsel %vm2553_vm3, %v2601_v52, %v2603_v30  ;;  %8774 = vmatprep.mubr.bf16.mxu0 %v2840_v44  ;;  %v6477_v32 = vmul.f32 %v12709_v4, %v6253_v55  ;;  %v2841_v4 = vshrl.u32 %v12769_v25, 16  ;;  %v6962_v25 = vld [vmem:[%s13332_s1 + $0x68] sm:$0xff]  ;;  %v6964_v44 = vld [vmem:[%s13332_s1 + $0x78] sm:$0xff] }
 0x28b   : > { %v2674_v42 = vmul.f32 %v2602_v7, %v14012_v20  ;;  %v2675_v57 = vmul.f32 %v2604_v38, %v14013_v21  ;;  %v6479_v45 = vmul.f32 %v6386_v46, %v6255_v37  ;;  %v6966_v37 = vld [vmem:[%s13332_s1 + $0x88] sm:$0xff] }
 0x28c   : > { %3302 = vperm.xlu1 %9468, %v3232_v8   ;;  %v6396_v15 = vpop.permute.xlu1 %6395  ;;  %v6502_v2 = vpack.c.bf16 %v6478_v49, %v6477_v32  ;;  %v2843_v3 = vor.u32 %v2841_v4, %v2839_v35  ;;  %v14015_v35 = vld [vmem:[#allocation55_spill] sm:$0xff] }
 0x28d   : > { %9033 = vmatpush3.bf16.msra.mxu1 %v9547_v31  ;;  %v2695_v53 = vpack.c.bf16 %v2675_v57, %v2674_v42  ;;  %v6503_v31 = vpack.c.bf16 %v6480_v26, %v6479_v45  ;;  %v6406_v60 = vpop.permute.xlu0 %6405  ;;  %v14017_v36 = vunpack.c.h.bf16 %v14015_v35  ;;  %v6168_v49 = vld [vmem:[#allocation2 + $0x70] sm:$0xff] }
 0x28e   : > { %9034 = vmatprep.subr.bf16.mxu1 %v9548_v9  ;;  %v6213_v42 = vrot.slane %v6168_v49, 4 }
 0x28f   : > { %9003 = vmatmul.mubr.bf16.gmra.mrb[24].mxu1 %v6500_v51  ;;  %v2845_v14 = vshll.u32 %v2695_v53, 16  ;;  %v14016_v51 = vunpack.c.l.bf16 %v14015_v35  ;;  %v2849_v38 = vshrl.u32 %v2695_v53, 16 }
 0x290   : > { %9006 = vmatprep.mubr.bf16.mxu1 %v6501_v0  ;;  %9469 = vset.pattern.permute.xlu1 %v13987_v47  ;;  %v6401_v47 = vpop.permute.xlu1 %6400  ;;  %v6963_v0 = vld [vmem:[%s13332_s1 + $0x70] sm:$0xff] }
 0x291   : > { %9035 = vmatpush3.bf16.msra.mxu1 %v9548_v9  ;;  %7023 = vperm.xlu1 %9469, %v6959_v17   ;;  %v2847_v29 = vrot.slane %v2845_v14, 1  ;;  %v6482_v33 = vmul.f32 %v6401_v47, %v6258_v54  ;;  %v6212_v9 = vsel %vm655_vm1, %v6209_v10, %v6211_v61  ;;  %v2676_v19 = vmul.f32 %v2606_v48, %v14016_v51  ;;  %v14021_v48 = vld [vmem:[#allocation47_spill] sm:$0xff] }
 0x292   : > { %9036 = vmatprep.subr.bf16.mxu1 %v9549_v24  ;;  %v6259_v52 = vunpack.c.l.bf16 %v6212_v9  ;;  %v6260_v30 = vunpack.c.h.bf16 %v6212_v9  ;;  %v6214_v14 = vsel %vm655_vm1, %v6211_v61, %v6213_v42  ;;  %v12857_v61 = vld [vmem:[#allocation2 + $0x80] sm:$0xff] }
 0x293   : > { %v2848_v18 = vsel %vm2748_vm4, %v2843_v3, %v2847_v29  ;;  %v2851_v13 = vor.u32 %v2849_v38, %v2847_v29  ;;  %v6969_v3 = vld [vmem:[%s13332_s1 + $0xa0] sm:$0xff]  ;;  %v6169_v29 = vld [vmem:[#allocation2 + $0x78] sm:$0xff]  ;;  %v6262_v22 = vunpack.c.h.bf16 %v6214_v14 }
 0x294   : > { %8775 = vmatmul.mubr.bf16.gmra.mrb[52].mxu0 %v2848_v18 }
 0x295   : > { %9037 = vmatpush3.bf16.msra.mxu1 %v9549_v24  ;;  %7031 = vperm.xlu1 %9469, %v3232_v8   ;;  %v6481_v8 = vmul.f32 %v6396_v15, %v6257_v58  ;;  %v2536_v63 = vpop.permute.xlu1 %2535  ;;  %v6483_v24 = vmul.f32 %v6406_v60, %v6259_v52  ;;  %v14018_v15 = vld [vmem:[#allocation23_spill] sm:$0xff]  ;;  %v6217_v60 = vrot.slane %v12857_v61, 4 }
 0x296   : > { %9038 = vmatprep.subr.bf16.mxu1 %v9550_v62  ;;  %v2607_v6 = vrot.slane %v2536_v63, 7  ;;  %v14019_v45 = vrot.slane %v14018_v15, 7  ;;  %v6971_v63 = vld [vmem:[%s13332_s1 + $0xb0] sm:$0xff] }
 0x297   : > { %9007 = vmatmul.mubr.bf16.gmra.mrb[28].mxu1 %v6502_v2  ;;  %v6504_v34 = vpack.c.bf16 %v6482_v33, %v6481_v8  ;;  %v14020_v2 = vunpack.c.l.bf16 %v11948_v28  ;;  %v6215_v8 = vrot.slane %v6169_v29, 4 }
 0x298   : > { %9010 = vmatprep.mubr.bf16.mxu1 %v6503_v31  ;;  %v2608_v11 = vsel %vm2553_vm3, %v2605_v43, %v2607_v6 }
 0x299   : > { %9039 = vmatpush3.bf16.msra.mxu1 %v9550_v62  ;;  %7035 = vperm.xlu1 %9469, %v6962_v25   ;;  %v2677_v12 = vmul.f32 %v2608_v11, %v14017_v36  ;;  %v2292_v62 = vld [vmem:[#allocation2 + $0x80] sm:$0x1f]  ;;  %v6216_v51 = vsel %vm655_vm1, %v6213_v42, %v6215_v8 }
 0x29a   : > { %9040 = vmatprep.subr.bf16.mxu1 %v9551_v23  ;;  %v2341_v54 = vrot.slane %v2292_v62, 4  ;;  %v6973_v36 = vld [vmem:[%s13332_s1 + $0xc0] sm:$0xff]  ;;  %v6263_v49 = vunpack.c.l.bf16 %v6216_v51 }
 0x29b   : > { %v6411_v10 = vpop.permute.xlu1 %6410  ;;  %v2696_v46 = vpack.c.bf16 %v2677_v12, %v2676_v19 }
 0x29c   : > { %v6484_v55 = vmul.f32 %v6411_v10, %v6260_v30  ;;  %v2342_v9 = vsel %vm655_vm1, %v14021_v48, %v2341_v54  ;;  %v2392_v19 = vunpack.c.l.bf16 %v2341_v54  ;;  %v14022_v30 = vld [vmem:[#allocation51_spill] sm:$0xff] }
 0x29d   : > { %9041 = vmatpush3.bf16.msra.mxu1 %v9551_v23  ;;  %7039 = vperm.xlu1 %9469, %v6963_v0   ;;  %v2853_v17 = vshll.u32 %v2696_v46, 16  ;;  %v6261_v23 = vunpack.c.l.bf16 %v6214_v14  ;;  %v2857_v43 = vshrl.u32 %v2696_v46, 16  ;;  %v6426_v0 = vpop.permute.xlu0 %6425  ;;  %v2390_v35 = vunpack.c.l.bf16 %v2342_v9 }
 0x29e   : > { %v6505_v7 = vpack.c.bf16 %v6484_v55, %v6483_v24  ;;  %v2391_v12 = vunpack.c.h.bf16 %v2342_v9 }
 0x29f   : > { %9011 = vmatmul.mubr.bf16.gmra.mrb[0].mxu1 %v6504_v34  ;;  %v2855_v20 = vrot.slane %v2853_v17, 1  ;;  %v2680_v10 = vmul.f32 %v14022_v30, %v2390_v35  ;;  %v6264_v17 = vunpack.c.h.bf16 %v6216_v51 }
 0x2a0   : > { %v2540_v26 = vpop.permute.xlu1 %2539  ;;  %9014 = vmatprep.mubr.bf16.mxu1 %v6505_v7  ;;  %v6218_v7 = vsel %vm655_vm1, %v6215_v8, %v6217_v60 }
 0x2a1   : > { %7043 = vperm.xlu1 %9469, %v6964_v44   ;;  %v2609_v21 = vrot.slane %v2540_v26, 7  ;;  %v2856_v57 = vsel %vm2748_vm4, %v2851_v13, %v2855_v20  ;;  %v2859_v28 = vor.u32 %v2857_v43, %v2855_v20  ;;  %v14023_v44 = vld [vmem:[#allocation61_spill] sm:$0xff]  ;;  %v6487_v13 = vmul.f32 %v6426_v0, %v6263_v49  ;;  %v6441_v20 = vpop.permute.xlu0 %6440 }
 0x2a2   : > { %8778 = vmatprep.mubr.bf16.mxu0 %v2856_v57  ;;  %v14024_v24 = vrot.slane %v14023_v44, 7  ;;  %v6266_v57 = vunpack.c.h.bf16 %v6218_v7 }
 0x2a3   : > { %v2610_v32 = vsel %vm2553_vm3, %v2607_v6, %v2609_v21  ;;  %v2612_v53 = vsel %vm2553_vm3, %v2609_v21, %v14019_v45 }
 0x2a4   : > { %v2678_v5 = vmul.f32 %v2610_v32, %v14020_v2  ;;  %v2679_v31 = vmul.f32 %v2612_v53, %v1712_v41  ;;  %v6265_v32 = vunpack.c.l.bf16 %v6218_v7  ;;  %v6490_v62 = vmul.f32 %v6441_v20, %v6266_v57 }
 0x2a5   : > { %7051 = vperm.xlu1 %9469, %v6966_v37   ;;  %v6416_v4 = vpop.permute.xlu1 %6415 }
 0x2a6   : > { %v2697_v47 = vpack.c.bf16 %v2679_v31, %v2678_v5  ;;  %v6485_v25 = vmul.f32 %v6416_v4, %v6261_v23  ;;  %v6977_v5 = vld [vmem:[%s13332_s1 + $0xe0] sm:$0xff] }
 0x2a8   : > { %v2861_v58 = vshll.u32 %v2697_v47, 16  ;;  %v2865_v53 = vshrl.u32 %v2697_v47, 16  ;;  %v3381_v47 = vrot.slane %v12658_v40, 1 }
 0x2a9   : > { %7055 = vperm.xlu1 %9469, %v6967_v27   ;;  %v6421_v33 = vpop.permute.xlu1 %6420 }
 0x2aa   : > { %v6486_v18 = vmul.f32 %v6421_v33, %v6262_v22  ;;  %v2863_v41 = vrot.slane %v2861_v58, 1  ;;  %v3170_v22 = vld [vmem:[#allocation2 + $0x8] sm:$0xf8] }
 0x2ab   : > { %v3187_v33 = vunpack.c.l.bf16 %v3170_v22 }
 0x2ac   : > { %v6506_v34 = vpack.c.bf16 %v6486_v18, %v6485_v25  ;;  %v2864_v6 = vsel %vm2748_vm4, %v2859_v28, %v2863_v41  ;;  %v2867_v4 = vor.u32 %v2865_v53, %v2863_v41  ;;  %v3188_v18 = vunpack.c.h.bf16 %v3170_v22  ;;  %v12885_v28 = vpop.permute.xlu0 %6445  ;;  %v12895_v53 = vld [vmem:[#allocation2 + $0x20] sm:$0xff] }
 0x2ad   : > { %7063 = vperm.xlu1 %9469, %v6969_v3   ;;  %8779 = vmatmul.mubr.bf16.gmra.mrb[56].mxu0 %v2864_v6  ;;  %v6219_v22 = vrot.slane %v12606_v56, 4 }
 0x2ae   : > { %v2552_v11 = vpop.permute.xlu1 %2551  ;;  %9015 = vmatmul.mubr.bf16.gmra.mrb[4].mxu1 %v6506_v34  ;;  %v3171_v34 = vld [vmem:[#allocation2 + $0x10] sm:$0xff] }
 0x2af   : > { %v2615_v52 = vrot.slane %v2552_v11, 7  ;;  %v3189_v51 = vunpack.c.l.bf16 %v3171_v34  ;;  %v6220_v56 = vsel %vm655_vm1, %v6217_v60, %v6219_v22 }
 0x2b0   : > { %v12888_v0 = vpop.permute.xlu0 %6460 }
 0x2b1   : > { %7071 = vperm.xlu1 %9469, %v6971_v63   ;;  %v2616_v46 = vsel %vm2553_vm3, %v14024_v24, %v2615_v52  ;;  %v2682_v55 = vmul.f32 %v2615_v52, %v2392_v19  ;;  %v3190_v19 = vunpack.c.h.bf16 %v3171_v34  ;;  %v6832_v52 = vld [vmem:[#allocation2 + $0x10] sm:$0xf0] }
 0x2b2   : > { %v2681_v38 = vmul.f32 %v2616_v46, %v2391_v12  ;;  %v6866_v24 = vrot.slane %v6832_v52, 4 }
 0x2b3   : > { %v2699_v37 = vpack.c.bf16 %v2682_v55, %v2682_v55  ;;  %v6431_v26 = vpop.permute.xlu1 %6430 }
 0x2b4   : > { %v2698_v42 = vpack.c.bf16 %v2681_v38, %v2680_v10  ;;  %v6488_v21 = vmul.f32 %v6431_v26, %v6264_v17  ;;  %v6984_v55 = vpop.permute.xlu0 %6983  ;;  %v3172_v17 = vld [vmem:[#allocation2 + $0x18] sm:$0xff] }
 0x2b5   : > { %7079 = vperm.xlu1 %9469, %v6973_v36   ;;  %v2877_v15 = vshll.u32 %v2699_v37, 16  ;;  %v7109_v20 = vrot.slane %v6984_v55, 7 }
 0x2b6   : > { %v6507_v45 = vpack.c.bf16 %v6488_v21, %v6487_v13  ;;  %v2869_v27 = vshll.u32 %v2698_v42, 16  ;;  %v2873_v54 = vshrl.u32 %v2698_v42, 16  ;;  %v6868_v13 = vsel %vm655_vm1, %v6866_v24, %v12138_v50 }
 0x2b7   : > { %v6436_v2 = vpop.permute.xlu1 %6435  ;;  %v2879_v3 = vrot.slane %v2877_v15, 1  ;;  %v3191_v15 = vunpack.c.l.bf16 %v3172_v17 }
 0x2b8   : > { %v6489_v31 = vmul.f32 %v6436_v2, %v6265_v32  ;;  %9018 = vmatprep.mubr.bf16.mxu1 %v6507_v45  ;;  %v2871_v14 = vrot.slane %v2869_v27, 1  ;;  %v3389_v32 = vrot.slane %v12668_v16, 1 }
 0x2b9   : > { %7087 = vperm.xlu1 %9469, %v12502_v59  }
 0x2ba   : > { %v6508_v29 = vpack.c.bf16 %v6490_v62, %v6489_v31  ;;  %v2872_v23 = vsel %vm2748_vm4, %v2867_v4, %v2871_v14  ;;  %v2875_v59 = vor.u32 %v2873_v54, %v2871_v14  ;;  %v3192_v62 = vunpack.c.h.bf16 %v3172_v17 }
 0x2bb   : > { %8782 = vmatprep.mubr.bf16.mxu0 %v2872_v23  ;;  %v6917_v31 = vunpack.c.h.bf16 %v6868_v13 }
 0x2bc   : > { %9019 = vmatmul.mubr.bf16.gmra.mrb[8].mxu1 %v6508_v29  ;;  %v2880_v58 = vsel %vm2748_vm4, %v2875_v59, %v2879_v3  ;;  %v6869_v29 = vrot.slane %v12895_v53, 4  ;;  %v6172_v59 = vld [vmem:[#allocation2 + $0x90] sm:$0xf] }
 0x2bd   : > { %7095 = vperm.xlu1 %9469, %v6977_v5   ;;  %8783 = vmatmul.mubr.bf16.gmra.mrb[60].mxu0 %v2880_v58 }
 0x2bf   : > { %v3255_v43 = vpop.permute.xlu1 %3254 }
 0x2c0   : > { %v3380_v25 = vrot.slane %v3255_v43, 1 }
 0x2c1   : > { %7103 = vperm.xlu1 %9469, %v12656_v39  }
 0x2c2   : > { %v3382_v41 = vsel %vm963_vm0, %v3380_v25, %v3381_v47  ;;  %v3476_v8 = vmul.f32 %v3380_v25, %v3187_v33  ;;  %v12905_v33 = vpop.permute.xlu0 %7003 }
 0x2c3   : > { %v3477_v63 = vmul.f32 %v3382_v41, %v3188_v18  ;;  %v3263_v48 = vpop.permute.xlu1 %3262 }
 0x2c4   : > { %v3383_v9 = vrot.slane %v3263_v48, 1 }
 0x2c5   : > { %v3509_v40 = vpack.c.bf16 %v3477_v63, %v3476_v8  ;;  %v6221_v8 = vrot.slane %v6172_v59, 4 }
 0x2c6   : > { %v3384_v11 = vsel %vm963_vm0, %v3381_v47, %v3383_v9  ;;  %v6916_v47 = vunpack.c.l.bf16 %v6868_v13 }
 0x2c7   : > { %v3267_v6 = vpop.permute.xlu1 %3266  ;;  %v3575_v39 = vshrl.u32 %v3509_v40, 16  ;;  %v3578_v12 = vshll.u32 %v3509_v40, 16  ;;  %v3478_v30 = vmul.f32 %v3384_v11, %v3189_v51 }
 0x2c8   : > { %v3385_v35 = vrot.slane %v3267_v6, 1  ;;  %v7205_v41 = vmul.f32 %v7109_v20, %v6916_v47 }
 0x2c9   : > { %v3577_v49 = vrot.slane %v3575_v39, 3  ;;  %v3580_v7 = vrot.slane %v3578_v12, 4  ;;  %v6267_v39 = vunpack.c.l.bf16 %v6220_v56  ;;  %v12914_v12 = vpop.permute.xlu0 %7011 }
 0x2ca   : > { %v3386_v36 = vsel %vm963_vm0, %v3383_v9, %v3385_v35  ;;  %v6870_v9 = vsel %vm655_vm1, %v12138_v50, %v6869_v29 }
 0x2cb   : > { %v3479_v10 = vmul.f32 %v3386_v36, %v3190_v19  ;;  %v3581_v2 = vor.u32 %v3580_v7, %v3577_v49  ;;  %v6918_v19 = vunpack.c.l.bf16 %v6870_v9  ;;  %v6919_v52 = vunpack.c.h.bf16 %v6870_v9 }
 0x2cc   : > { %v6988_v44 = vpop.permute.xlu1 %6987  ;;  %v6222_v36 = vsel %vm655_vm1, %v6219_v22, %v6221_v8  ;;  %v6491_v55 = vmul.f32 %v12885_v28, %v6267_v39 }
 0x2cd   : > { %v3510_v46 = vpack.c.bf16 %v3479_v10, %v3478_v30  ;;  %v7110_v38 = vrot.slane %v6988_v44, 7  ;;  %v6268_v10 = vunpack.c.h.bf16 %v6220_v56  ;;  %v6270_v17 = vunpack.c.h.bf16 %v6222_v36 }
 0x2cf   : > { %v3583_v37 = vshrl.u32 %v3510_v46, 16  ;;  %v3586_v26 = vshll.u32 %v3510_v46, 16  ;;  %v7111_v27 = vsel %vm2553_vm3, %v7109_v20, %v7110_v38 }
 0x2d0   : > { %v7206_v43 = vmul.f32 %v7111_v27, %v6917_v31 }
 0x2d1   : > { %v3271_v42 = vpop.permute.xlu1 %3270  ;;  %v3585_v21 = vrot.slane %v3583_v37, 3  ;;  %v3588_v57 = vrot.slane %v3586_v26, 4  ;;  %v6269_v26 = vunpack.c.l.bf16 %v6222_v36 }
 0x2d2   : > { %v3387_v45 = vrot.slane %v3271_v42, 1  ;;  %v7238_v40 = vpack.c.bf16 %v7206_v43, %v7205_v41  ;;  %v12924_v42 = vpop.permute.xlu0 %7027 }
 0x2d3   : > { %v3589_v5 = vor.u32 %v3588_v57, %v3585_v21 }
 0x2d4   : > { %v3388_v4 = vsel %vm963_vm0, %v3385_v35, %v3387_v45  ;;  %v3390_v14 = vsel %vm963_vm0, %v3387_v45, %v3389_v32  ;;  %v7306_v44 = vshll.u32 %v7238_v40, 16  ;;  %v7304_v28 = vshrl.u32 %v7238_v40, 16 }
 0x2d5   : > { %v3480_v54 = vmul.f32 %v3388_v4, %v3191_v15  ;;  %v3481_v3 = vmul.f32 %v3390_v14, %v3192_v62  ;;  %v3590_v23 = vsel %vm1158_vm2, %v3581_v2, %v3589_v5  ;;  %v6494_v15 = vmul.f32 %v12888_v0, %v6270_v17 }
 0x2d6   : > { %v6992_v58 = vpop.permute.xlu1 %6991  ;;  %8802 = vmatprep.mubr.bf16.mxu0 %v3590_v23  ;;  %v7308_v13 = vrot.slane %v7306_v44, 1  ;;  %v7122_v44 = vrot.slane %v12914_v12, 7 }
 0x2d7   : > { %v3511_v25 = vpack.c.bf16 %v3481_v3, %v3480_v54  ;;  %v7112_v18 = vrot.slane %v6992_v58, 7  ;;  %v3287_v54 = vpop.permute.xlu0 %3286 }
 0x2d8   : > { %v7309_v2 = vor.u32 %v7308_v13, %v7304_v28  ;;  %v3395_v8 = vrot.slane %v3287_v54, 1 }
 0x2d9   : > { %v3592_v63 = vshrl.u32 %v3511_v25, 16  ;;  %v3595_v48 = vshll.u32 %v3511_v25, 16  ;;  %v7113_v35 = vsel %vm2553_vm3, %v7110_v38, %v7112_v18  ;;  %v12922_v38 = vld [vmem:[#allocation2 + $0x28] sm:$0xff] }
 0x2da   : > { %v6996_v34 = vpop.permute.xlu1 %6995  ;;  %v7207_v61 = vmul.f32 %v7113_v35, %v6918_v19  ;;  %v6871_v57 = vrot.slane %v12922_v38, 4 }
 0x2db   : > { %v3594_v6 = vrot.slane %v3592_v63, 3  ;;  %v3597_v11 = vrot.slane %v3595_v48, 4  ;;  %v7114_v51 = vrot.slane %v6996_v34, 7  ;;  %v12938_v48 = vld [vmem:[#allocation2 + $0x30] sm:$0xff] }
 0x2dc   : > { %v6872_v31 = vsel %vm655_vm1, %v6869_v29, %v6871_v57  ;;  %v12935_v29 = vpop.permute.xlu0 %3294  ;;  %v6873_v19 = vrot.slane %v12938_v48, 4 }
 0x2dd   : > { %v7115_v50 = vsel %vm2553_vm3, %v7112_v18, %v7114_v51  ;;  %v12917_v30 = vor.u32 %v3597_v11, %v3594_v6  ;;  %v6920_v23 = vunpack.c.l.bf16 %v6872_v31  ;;  %v6921_v22 = vunpack.c.h.bf16 %v6872_v31 }
 0x2de   : > { %v7208_v60 = vmul.f32 %v7115_v50, %v6919_v52  ;;  %v3193_v6 = vunpack.c.l.bf16 %v12895_v53  ;;  %v3194_v11 = vunpack.c.h.bf16 %v12895_v53 }
 0x2df   : > { %v6451_v24 = vpop.permute.xlu1 %6450  ;;  %v3599_v46 = vsel %vm1158_vm2, %v3589_v5, %v12917_v30  ;;  %v7118_v5 = vrot.slane %v12905_v33, 7 }
 0x2e0   : > { %v7239_v49 = vpack.c.bf16 %v7208_v60, %v7207_v61  ;;  %v6492_v7 = vmul.f32 %v6451_v24, %v6268_v10  ;;  %8803 = vmatmul.mubr.bf16.vlgmr.msra.gmra.mrb[32].mxu0 %v3599_v46  ;;  %v12951_v52 = vpop.permute.xlu0 %3306  ;;  %v3195_v61 = vunpack.c.l.bf16 %v12922_v38  ;;  %v3196_v10 = vunpack.c.h.bf16 %v12922_v38 }
 0x2e1   : > { %v6874_v46 = vsel %vm655_vm1, %v6871_v57, %v6873_v19  ;;  %v3405_v12 = vrot.slane %v12951_v52, 1 }
 0x2e2   : > { %v6509_v37 = vpack.c.bf16 %v6492_v7, %v6491_v55  ;;  %v7311_v20 = vshll.u32 %v7239_v49, 16  ;;  %v7315_v18 = vshrl.u32 %v7239_v49, 16  ;;  %v6923_v28 = vunpack.c.h.bf16 %v6874_v46 }
 0x2e3   : > { %v6456_v21 = vpop.permute.xlu1 %6455 }
 0x2e4   : > { %v6493_v45 = vmul.f32 %v6456_v21, %v6269_v26  ;;  %9022 = vmatprep.mubr.bf16.mxu1 %v6509_v37  ;;  %v7313_v27 = vrot.slane %v7311_v20, 1  ;;  %v3311_v13 = vpop.permute.xlu0 %3310 }
 0x2e6   : > { %v6510_v62 = vpack.c.bf16 %v6494_v15, %v6493_v45  ;;  %v7314_v14 = vsel %vm2748_vm4, %v7309_v2, %v7313_v27  ;;  %v7317_v9 = vor.u32 %v7315_v18, %v7313_v27  ;;  %v6922_v45 = vunpack.c.l.bf16 %v6874_v46 }
 0x2e8   : > { %v7000_v4 = vpop.permute.xlu1 %6999  ;;  %9023 = vmatmul.mubr.bf16.gmra.mrb[12].mxu1 %v6510_v62 }
 0x2e9   : > { %v7116_v3 = vrot.slane %v7000_v4, 7  ;;  %9042 = vmatprep.mubr.bf16.mxu1 %v7314_v14  ;;  %v3407_v4 = vrot.slane %v3311_v13, 1 }
 0x2eb   : > { %v7117_v0 = vsel %vm2553_vm3, %v7114_v51, %v7116_v3  ;;  %v7119_v59 = vsel %vm2553_vm3, %v7116_v3, %v7118_v5  ;;  %v3408_v18 = vsel %vm963_vm0, %v3405_v12, %v3407_v4 }
 0x2ec   : > { %v7209_v47 = vmul.f32 %v7117_v0, %v6920_v23  ;;  %v7210_v43 = vmul.f32 %v7119_v59, %v6921_v22 }
 0x2ed   : > { %v3279_v58 = vpop.permute.xlu1 %3278 }
 0x2ee   : > { %v12933_v25 = vpack.c.bf16 %v7210_v43, %v7209_v47  ;;  %v3391_v33 = vrot.slane %v3279_v58, 1  ;;  %v3201_v58 = vunpack.c.l.bf16 %v12720_v1 }
 0x2f0   : > { %v7319_v41 = vshll.u32 %v12933_v25, 16  ;;  %v3392_v56 = vsel %vm963_vm0, %v3389_v32, %v3391_v33  ;;  %v12955_v32 = vld [vmem:[#allocation2 + $0x38] sm:$0xff] }
 0x2f1   : > { %v3283_v63 = vpop.permute.xlu1 %3282  ;;  %v3482_v39 = vmul.f32 %v3392_v56, %v3193_v6  ;;  %v6875_v55 = vrot.slane %v12955_v32, 4 }
 0x2f2   : > { %v3393_v40 = vrot.slane %v3283_v63, 1  ;;  %v12943_v34 = vrot.slane %v7319_v41, 1  ;;  %v7323_v63 = vshrl.u32 %v12933_v25, 16 }
 0x2f3   : > { %v6876_v57 = vsel %vm655_vm1, %v6873_v19, %v6875_v55 }
 0x2f4   : > { %v3394_v35 = vsel %vm963_vm0, %v3391_v33, %v3393_v40  ;;  %v7322_v51 = vsel %vm2748_vm4, %v7317_v9, %v12943_v34  ;;  %v3396_v50 = vsel %vm963_vm0, %v3393_v40, %v3395_v8  ;;  %v6924_v33 = vunpack.c.l.bf16 %v6876_v57  ;;  %v14025_v9 = vld [vmem:[#allocation6_spill] sm:$0xff] }
 0x2f5   : > { %v3483_v16 = vmul.f32 %v3394_v35, %v3194_v11  ;;  %v12953_v36 = vpop.permute.xlu1 %3290  ;;  %9043 = vmatmul.mubr.bf16.vlgmr.msra.gmra.mrb[16].mxu1 %v7322_v51  ;;  %v3484_v49 = vmul.f32 %v3396_v50, %v3195_v61  ;;  %v14026_v56 = vrot.slane %v14025_v9, 1  ;;  %v6925_v11 = vunpack.c.h.bf16 %v6876_v57 }
 0x2f6   : > { %v3397_v53 = vrot.slane %v12953_v36, 1  ;;  %v3399_v35 = vrot.slane %v12935_v29, 1  ;;  %v7325_v19 = vor.u32 %v7323_v63, %v12943_v34  ;;  %v3199_v57 = vunpack.c.l.bf16 %v12955_v32 }
 0x2f7   : > { %v3512_v60 = vpack.c.bf16 %v3483_v16, %v3482_v39  ;;  %v3410_v40 = vsel %vm963_vm0, %v3407_v4, %v14026_v56  ;;  %v3490_v16 = vmul.f32 %v3408_v18, %v3201_v58 }
 0x2f8   : > { %v3398_v24 = vsel %vm963_vm0, %v3395_v8, %v3397_v53  ;;  %v3400_v29 = vsel %vm963_vm0, %v3397_v53, %v3399_v35 }
 0x2f9   : > { %v3485_v7 = vmul.f32 %v3398_v24, %v3196_v10  ;;  %v3601_v17 = vshrl.u32 %v3512_v60, 16  ;;  %v3604_v37 = vshll.u32 %v3512_v60, 16 }
 0x2fa   : > { %v7008_v26 = vpop.permute.xlu1 %7007 }
 0x2fb   : > { %v3513_v20 = vpack.c.bf16 %v3485_v7, %v3484_v49  ;;  %v7120_v21 = vrot.slane %v7008_v26, 7  ;;  %v3603_v15 = vrot.slane %v3601_v17, 3  ;;  %v3606_v38 = vrot.slane %v3604_v37, 4 }
 0x2fc   : > { %v3197_v49 = vunpack.c.l.bf16 %v12938_v48  ;;  %v3198_v7 = vunpack.c.h.bf16 %v12938_v48 }
 0x2fd   : > { %v7121_v27 = vsel %vm2553_vm3, %v7118_v5, %v7120_v21  ;;  %v7123_v62 = vsel %vm2553_vm3, %v7120_v21, %v7122_v44  ;;  %v3607_v2 = vor.u32 %v3606_v38, %v3603_v15  ;;  %v3610_v31 = vshrl.u32 %v3513_v20, 16 }
 0x2fe   : > { %v7211_v14 = vmul.f32 %v7121_v27, %v6922_v45  ;;  %v7212_v54 = vmul.f32 %v7123_v62, %v6923_v28  ;;  %v7016_v3 = vpop.permute.xlu1 %7015  ;;  %v3613_v23 = vshll.u32 %v3513_v20, 16  ;;  %v3202_v5 = vunpack.c.h.bf16 %v12720_v1 }
 0x2ff   : > { %v7124_v22 = vrot.slane %v7016_v3, 7  ;;  %v3608_v0 = vsel %vm1158_vm2, %v12917_v30, %v3607_v2  ;;  %v3612_v59 = vrot.slane %v3610_v31, 3  ;;  %v3486_v21 = vmul.f32 %v3400_v29, %v3197_v49  ;;  %v6839_v3 = vld [vmem:[#allocation2 + $0x48] sm:$0xff] }
 0x300   : > { %v7241_v47 = vpack.c.bf16 %v7212_v54, %v7211_v14  ;;  %8806 = vmatprep.mubr.bf16.mxu0 %v3608_v0  ;;  %v3615_v43 = vrot.slane %v3613_v23, 4  ;;  %v3491_v50 = vmul.f32 %v3410_v40, %v3202_v5  ;;  %v3200_v27 = vunpack.c.h.bf16 %v12955_v32 }
 0x301   : > { %v7125_v6 = vsel %vm2553_vm3, %v7122_v44, %v7124_v22  ;;  %v6838_v44 = vld [vmem:[#allocation2 + $0x40] sm:$0xff]  ;;  %v7130_v0 = vrot.slane %v12924_v42, 7 }
 0x302   : > { %v12980_v41 = vpop.permute.xlu1 %7019  ;;  %v12982_v8 = vor.u32 %v3615_v43, %v3612_v59  ;;  %v7327_v30 = vshll.u32 %v7241_v47, 16  ;;  %v7213_v61 = vmul.f32 %v7125_v6, %v6924_v33  ;;  %v6877_v17 = vrot.slane %v6838_v44, 4 }
 0x303   : > { %v7126_v1 = vrot.slane %v12980_v41, 7  ;;  %v3516_v37 = vpack.c.bf16 %v3491_v50, %v3490_v16  ;;  %v7331_v13 = vshrl.u32 %v7241_v47, 16  ;;  %v6879_v33 = vrot.slane %v6839_v3, 4 }
 0x304   : > { %v3617_v51 = vsel %vm1158_vm2, %v3607_v2, %v12982_v8  ;;  %v7329_v39 = vrot.slane %v7327_v30, 1  ;;  %v6878_v48 = vsel %vm655_vm1, %v6875_v55, %v6877_v17  ;;  %v13016_v55 = vpop.permute.xlu0 %7047 }
 0x305   : > { %v7127_v25 = vsel %vm2553_vm3, %v7124_v22, %v7126_v1  ;;  %8807 = vmatmul.mubr.bf16.gmra.mrb[36].mxu0 %v3617_v51  ;;  %v3637_v4 = vshrl.u32 %v3516_v37, 16  ;;  %v3640_v59 = vshll.u32 %v3516_v37, 16  ;;  %v6927_v5 = vunpack.c.h.bf16 %v6878_v48 }
 0x306   : > { %v7214_v60 = vmul.f32 %v7127_v25, %v6925_v11  ;;  %v7330_v10 = vsel %vm2748_vm4, %v7325_v19, %v7329_v39  ;;  %v7333_v45 = vor.u32 %v7331_v13, %v7329_v39  ;;  %v6880_v25 = vsel %vm655_vm1, %v6877_v17, %v6879_v33 }
 0x307   : > { %v3299_v24 = vpop.permute.xlu1 %3298  ;;  %9046 = vmatprep.mubr.bf16.mxu1 %v7330_v10  ;;  %v3639_v18 = vrot.slane %v3637_v4, 3  ;;  %v3642_v11 = vrot.slane %v3640_v59, 4 }
 0x308   : > { %v12999_v46 = vpack.c.bf16 %v7214_v60, %v7213_v61  ;;  %v3401_v34 = vrot.slane %v3299_v24, 1  ;;  %v13023_v50 = vpop.permute.xlu0 %7059 }
 0x309   : > { %v3643_v44 = vor.u32 %v3642_v11, %v3639_v18 }
 0x30a   : > { %v3402_v26 = vsel %vm963_vm0, %v3399_v35, %v3401_v34  ;;  %v7335_v20 = vshll.u32 %v12999_v46, 16  ;;  %v6840_v35 = vld [vmem:[#allocation2 + $0x50] sm:$0xff]  ;;  %v7339_v24 = vshrl.u32 %v12999_v46, 16 }
 0x30b   : > { %v3487_v15 = vmul.f32 %v3402_v26, %v3198_v7  ;;  %v3303_v38 = vpop.permute.xlu1 %3302  ;;  %v6881_v61 = vrot.slane %v6840_v35, 4  ;;  %v6929_v7 = vunpack.c.h.bf16 %v6880_v25 }
 0x30c   : > { %v3403_v36 = vrot.slane %v3303_v38, 1  ;;  %v7337_v53 = vrot.slane %v7335_v20, 1 }
 0x30d   : > { %v3514_v28 = vpack.c.bf16 %v3487_v15, %v3486_v21 }
 0x30e   : > { %v3404_v62 = vsel %vm963_vm0, %v3401_v34, %v3403_v36  ;;  %v3406_v2 = vsel %vm963_vm0, %v3403_v36, %v3405_v12  ;;  %v7338_v31 = vsel %vm2748_vm4, %v7333_v45, %v7337_v53  ;;  %v6926_v12 = vunpack.c.l.bf16 %v6878_v48  ;;  %v6841_v36 = vld [vmem:[#allocation2 + $0x58] sm:$0xff]  ;;  %v13031_v45 = vpop.permute.xlu0 %7067 }
 0x30f   : > { %v3488_v14 = vmul.f32 %v3404_v62, %v3199_v57  ;;  %v3489_v54 = vmul.f32 %v3406_v2, %v3200_v27  ;;  %9047 = vmatmul.mubr.bf16.gmra.mrb[20].mxu1 %v7338_v31  ;;  %v3619_v23 = vshrl.u32 %v3514_v28, 16  ;;  %v3622_v22 = vshll.u32 %v3514_v28, 16  ;;  %v6842_v57 = vld [vmem:[#allocation2 + $0x60] sm:$0xff] }
 0x310   : > { %v7024_v32 = vpop.permute.xlu1 %7023  ;;  %v6928_v34 = vunpack.c.l.bf16 %v6880_v25  ;;  %v7341_v26 = vor.u32 %v7339_v24, %v7337_v53  ;;  %v6882_v48 = vsel %vm655_vm1, %v6879_v33, %v6881_v61  ;;  %v6883_v53 = vrot.slane %v6841_v36, 4 }
 0x311   : > { %v3515_v47 = vpack.c.bf16 %v3489_v54, %v3488_v14  ;;  %v7128_v43 = vrot.slane %v7024_v32, 7  ;;  %v3621_v52 = vrot.slane %v3619_v23, 3  ;;  %v3624_v58 = vrot.slane %v3622_v22, 4 }
 0x312   : > { %v6885_v4 = vrot.slane %v6842_v57, 4  ;;  %v7140_v14 = vrot.slane %v13016_v55, 7  ;;  %v6930_v54 = vunpack.c.l.bf16 %v6882_v48  ;;  %v6931_v22 = vunpack.c.h.bf16 %v6882_v48 }
 0x313   : > { %v7129_v41 = vsel %vm2553_vm3, %v7126_v1, %v7128_v43  ;;  %v7131_v63 = vsel %vm2553_vm3, %v7128_v43, %v7130_v0  ;;  %v3625_v30 = vor.u32 %v3624_v58, %v3621_v52  ;;  %v3628_v9 = vshrl.u32 %v3515_v47, 16  ;;  %v13038_v43 = vpop.permute.xlu0 %7075 }
 0x314   : > { %v7215_v56 = vmul.f32 %v7129_v41, %v6926_v12  ;;  %v7216_v42 = vmul.f32 %v7131_v63, %v6927_v5  ;;  %v7032_v40 = vpop.permute.xlu1 %7031  ;;  %v3631_v6 = vshll.u32 %v3515_v47, 16  ;;  %v6884_v52 = vsel %vm655_vm1, %v6881_v61, %v6883_v53  ;;  %v6843_v41 = vld [vmem:[#allocation2 + $0x68] sm:$0xff]  ;;  %v13050_v61 = vld [vmem:[#allocation2 + $0x80] sm:$0xff] }
 0x315   : > { %v7132_v51 = vrot.slane %v7032_v40, 7  ;;  %v3626_v19 = vsel %vm1158_vm2, %v12982_v8, %v3625_v30  ;;  %v3630_v39 = vrot.slane %v3628_v9, 3  ;;  %v6886_v18 = vsel %vm655_vm1, %v6883_v53, %v6885_v4  ;;  %v13045_v40 = vld [vmem:[#allocation2 + $0x70] sm:$0xff] }
 0x316   : > { %v7243_v16 = vpack.c.bf16 %v7216_v42, %v7215_v56  ;;  %8810 = vmatprep.mubr.bf16.mxu0 %v3626_v19  ;;  %v3633_v1 = vrot.slane %v3631_v6, 4  ;;  %v6932_v9 = vunpack.c.l.bf16 %v6884_v52  ;;  %v6933_v42 = vunpack.c.h.bf16 %v6884_v52 }
 0x317   : > { %v7133_v49 = vsel %vm2553_vm3, %v7130_v0, %v7132_v51  ;;  %v14027_v0 = vld [vmem:[#allocation38_spill] sm:$0xff]  ;;  %v6934_v11 = vunpack.c.l.bf16 %v6886_v18  ;;  %v6887_v35 = vrot.slane %v6843_v41, 4  ;;  %v7150_v36 = vrot.slane %v13031_v45, 7 }
 0x318   : > { %v7036_v60 = vpop.permute.xlu1 %7035  ;;  %v3634_v10 = vor.u32 %v3633_v1, %v3630_v39  ;;  %v7343_v29 = vshll.u32 %v7243_v16, 16  ;;  %v7217_v21 = vmul.f32 %v7133_v49, %v6928_v34  ;;  %v7347_v2 = vshrl.u32 %v7243_v16, 16  ;;  %v13056_v34 = vld [vmem:[#allocation2 + $0x88] sm:$0xff] }
 0x319   : > { %v7134_v8 = vrot.slane %v7036_v60, 7  ;;  %v3653_v32 = vsel %vm1158_vm2, %v3643_v44, %v14027_v0  ;;  %v7146_v60 = vrot.slane %v13023_v50, 7  ;;  %v6893_v50 = vrot.slane %v13050_v61, 4 }
 0x31a   : > { %v3635_v37 = vsel %vm1158_vm2, %v3625_v30, %v3634_v10  ;;  %v3644_v17 = vsel %vm1158_vm2, %v3634_v10, %v3643_v44  ;;  %v7345_v13 = vrot.slane %v7343_v29, 1  ;;  %v13053_v10 = vpop.permute.xlu0 %7083  ;;  %v6935_v44 = vunpack.c.h.bf16 %v6886_v18 }
 0x31b   : > { %v7135_v20 = vsel %vm2553_vm3, %v7132_v51, %v7134_v8  ;;  %8811 = vmatmul.mubr.bf16.gmra.mrb[40].mxu0 %v3635_v37  ;;  %v13048_v51 = vld [vmem:[#allocation2 + $0x78] sm:$0xff]  ;;  %v6889_v29 = vrot.slane %v13045_v40, 4 }
 0x31c   : > { %v7218_v15 = vmul.f32 %v7135_v20, %v6929_v7  ;;  %8814 = vmatprep.mubr.bf16.mxu0 %v3644_v17  ;;  %v7040_v38 = vpop.permute.xlu1 %7039  ;;  %v7346_v46 = vsel %vm2748_vm4, %v7341_v26, %v7345_v13  ;;  %v7349_v59 = vor.u32 %v7347_v2, %v7345_v13  ;;  %v6891_v37 = vrot.slane %v13048_v51, 4 }
 0x31d   : > { %v7136_v28 = vrot.slane %v7040_v38, 7  ;;  %9050 = vmatprep.mubr.bf16.mxu1 %v7346_v46  ;;  %v6888_v13 = vsel %vm655_vm1, %v6885_v4, %v6887_v35  ;;  %v6895_v46 = vrot.slane %v13056_v34, 4  ;;  %v6890_v2 = vsel %vm655_vm1, %v6887_v35, %v6889_v29  ;;  %v9556_v34 = vld [vmem:[%s13337_s6 + $0x20] sm:$0xff]  }
 0x31e   : > { %v7244_v27 = vpack.c.bf16 %v7218_v15, %v7217_v21  ;;  %v6936_v53 = vunpack.c.l.bf16 %v6888_v13  ;;  %v6938_v52 = vunpack.c.l.bf16 %v6890_v2 }
 0x31f   : > { %v7137_v3 = vsel %vm2553_vm3, %v7134_v8, %v7136_v28 }
 0x320   : > { %v7044_v62 = vpop.permute.xlu1 %7043  ;;  %v7351_v31 = vshll.u32 %v7244_v27, 16  ;;  %v7219_v12 = vmul.f32 %v7137_v3, %v6930_v54  ;;  %v7355_v25 = vshrl.u32 %v7244_v27, 16 }
 0x321   : > { %v7138_v23 = vrot.slane %v7044_v62, 7  ;;  %v6937_v62 = vunpack.c.h.bf16 %v6888_v13 }
 0x322   : > { %v7353_v47 = vrot.slane %v7351_v31, 1  ;;  %v13067_v31 = vpop.permute.xlu0 %7091 }
 0x323   : > { %v7139_v58 = vsel %vm2553_vm3, %v7136_v28, %v7138_v23  ;;  %8815 = vmatmul.mubr.bf16.gmra.mrb[44].mxu0 %v3653_v32  ;;  %v7141_v63 = vsel %vm2553_vm3, %v7138_v23, %v7140_v14  ;;  %v13071_v23 = vld [vmem:[#allocation2 + $0x90] sm:$0x1f]  ;;  %v7162_v13 = vrot.slane %v13067_v31, 7 }
 0x324   : > { %v7220_v5 = vmul.f32 %v7139_v58, %v6931_v22  ;;  %v7052_v55 = vpop.permute.xlu1 %7051  ;;  %v7354_v33 = vsel %vm2748_vm4, %v7349_v59, %v7353_v47  ;;  %v7221_v19 = vmul.f32 %v7141_v63, %v6932_v9  ;;  %v7357_v7 = vor.u32 %v7355_v25, %v7353_v47 }
 0x325   : > { %v7142_v30 = vrot.slane %v7052_v55, 7  ;;  %9051 = vmatmul.mubr.bf16.gmra.mrb[24].mxu1 %v7354_v33  ;;  %v7154_v47 = vrot.slane %v13038_v43, 7  ;;  %v6939_v55 = vunpack.c.h.bf16 %v6890_v2  ;;  %v6897_v41 = vrot.slane %v13071_v23, 4 }
 0x326   : > { %v7245_v56 = vpack.c.bf16 %v7220_v5, %v7219_v12  ;;  %v6892_v9 = vsel %vm655_vm1, %v6889_v29, %v6891_v37  ;;  %v13082_v35 = vpop.permute.xlu0 %7099 }
 0x327   : > { %v7143_v6 = vsel %vm2553_vm3, %v7140_v14, %v7142_v30  ;;  %v6941_v61 = vunpack.c.h.bf16 %v6892_v9 }
 0x328   : > { %v7222_v39 = vmul.f32 %v7143_v6, %v6933_v42  ;;  %v7056_v16 = vpop.permute.xlu1 %7055  ;;  %v7359_v1 = vshll.u32 %v7245_v56, 16  ;;  %v7363_v57 = vshrl.u32 %v7245_v56, 16  ;;  %v6894_v6 = vsel %vm655_vm1, %v6891_v37, %v6893_v50 }
 0x329   : > { %v7144_v24 = vrot.slane %v7056_v16, 7  ;;  %v9552_v16 = vld [vmem:[%s13337_s6] sm:$0xff]  }
 0x32a   : > { %v7246_v49 = vpack.c.bf16 %v7222_v39, %v7221_v19  ;;  %v7361_v8 = vrot.slane %v7359_v1, 1  ;;  %v6940_v1 = vunpack.c.l.bf16 %v6892_v9  ;;  %9074 = vmatprep.subr.bf16.mxu0 %v9552_v16 }
 0x32b   : > { %v7145_v17 = vsel %vm2553_vm3, %v7142_v30, %v7144_v24  ;;  %v7147_v26 = vsel %vm2553_vm3, %v7144_v24, %v7146_v60  ;;  %9075 = vmatpush3.bf16.msra.mxu0 %v9552_v16 }
 0x32c   : > { %v7223_v20 = vmul.f32 %v7145_v17, %v6934_v11  ;;  %v7224_v21 = vmul.f32 %v7147_v26, %v6935_v44  ;;  %v7064_v15 = vpop.permute.xlu1 %7063  ;;  %v7362_v38 = vsel %vm2748_vm4, %v7357_v7, %v7361_v8  ;;  %v7367_v27 = vshll.u32 %v7246_v49, 16 }
 0x32d   : > { %v7148_v28 = vrot.slane %v7064_v15, 7  ;;  %9054 = vmatprep.mubr.bf16.mxu1 %v7362_v38  ;;  %v7365_v54 = vor.u32 %v7363_v57, %v7361_v8  ;;  %v7371_v32 = vshrl.u32 %v7246_v49, 16  ;;  %v7158_v11 = vrot.slane %v13053_v10, 7  ;;  %v9553_v10 = vld [vmem:[%s13337_s6 + $0x8] sm:$0xff]   ;;  %v9554_v15 = vld [vmem:[%s13337_s6 + $0x10] sm:$0xff]  }
 0x32e   : > { %v7247_v48 = vpack.c.bf16 %v7224_v21, %v7223_v20  ;;  %v7369_v3 = vrot.slane %v7367_v27, 1  ;;  %9076 = vmatprep.subr.bf16.mxu0 %v9553_v10  ;;  %v7108_v27 = vpop.permute.xlu0 %7107 }
 0x32f   : > { %v7149_v4 = vsel %vm2553_vm3, %v7146_v60, %v7148_v28  ;;  %v7151_v14 = vsel %vm2553_vm3, %v7148_v28, %v7150_v36  ;;  %v6896_v60 = vsel %vm655_vm1, %v6893_v50, %v6895_v46  ;;  %v6942_v50 = vunpack.c.l.bf16 %v6894_v6  ;;  %9077 = vmatpush3.bf16.msra.mxu0 %v9553_v10 }
 0x330   : > { %v7225_v45 = vmul.f32 %v7149_v4, %v6936_v53  ;;  %v7226_v22 = vmul.f32 %v7151_v14, %v6937_v62  ;;  %v7072_v0 = vpop.permute.xlu1 %7071  ;;  %v7375_v59 = vshll.u32 %v7247_v48, 16  ;;  %v7370_v12 = vsel %vm2748_vm4, %v7365_v54, %v7369_v3  ;;  %9078 = vmatprep.subr.bf16.mxu0 %v9554_v15 }
 0x331   : > { %v7152_v58 = vrot.slane %v7072_v0, 7  ;;  %9055 = vmatmul.mubr.bf16.gmra.mrb[28].mxu1 %v7370_v12  ;;  %v7373_v33 = vor.u32 %v7371_v32, %v7369_v3  ;;  %v7379_v19 = vshrl.u32 %v7247_v48, 16  ;;  %v6944_v62 = vunpack.c.l.bf16 %v6896_v60  ;;  %v9555_v32 = vld [vmem:[%s13337_s6 + $0x18] sm:$0xff]  }
 0x332   : > { %v7248_v5 = vpack.c.bf16 %v7226_v22, %v7225_v45  ;;  %v7377_v18 = vrot.slane %v7375_v59, 1  ;;  %v6945_v14 = vunpack.c.h.bf16 %v6896_v60  ;;  %v7166_v3 = vrot.slane %v13082_v35, 7 }
 0x333   : > { %v7153_v63 = vsel %vm2553_vm3, %v7150_v36, %v7152_v58  ;;  %v7155_v30 = vsel %vm2553_vm3, %v7152_v58, %v7154_v47  ;;  %v6943_v36 = vunpack.c.h.bf16 %v6894_v6  ;;  %v6948_v59 = vunpack.c.l.bf16 %v6897_v41  ;;  %9079 = vmatpush3.bf16.msra.mxu0 %v9554_v15  ;;  %v9558_v15 = vld [vmem:[%s13337_s6 + $0x30] sm:$0xff]  }
 0x334   : > { %v7227_v56 = vmul.f32 %v7153_v63, %v6938_v52  ;;  %v7228_v42 = vmul.f32 %v7155_v30, %v6939_v55  ;;  %v7080_v43 = vpop.permute.xlu1 %7079  ;;  %v7378_v40 = vsel %vm2748_vm4, %v7373_v33, %v7377_v18  ;;  %v7383_v39 = vshll.u32 %v7248_v5, 16  ;;  %9080 = vmatprep.subr.bf16.mxu0 %v9555_v32 }
 0x335   : > { %v7156_v51 = vrot.slane %v7080_v43, 7  ;;  %9058 = vmatprep.mubr.bf16.mxu1 %v7378_v40  ;;  %v7381_v29 = vor.u32 %v7379_v19, %v7377_v18  ;;  %v7387_v17 = vshrl.u32 %v7248_v5, 16  ;;  %v6898_v58 = vsel %vm655_vm1, %v6895_v46, %v6897_v41 }
 0x336   : > { %v7249_v25 = vpack.c.bf16 %v7228_v42, %v7227_v56  ;;  %v7385_v49 = vrot.slane %v7383_v39, 1  ;;  %v6946_v42 = vunpack.c.l.bf16 %v6898_v58  ;;  %v6947_v41 = vunpack.c.h.bf16 %v6898_v58 }
 0x337   : > { %v7157_v44 = vsel %vm2553_vm3, %v7154_v47, %v7156_v51  ;;  %v7159_v24 = vsel %vm2553_vm3, %v7156_v51, %v7158_v11  ;;  %v7170_v47 = vrot.slane %v7108_v27, 7  ;;  %9081 = vmatpush3.bf16.msra.mxu0 %v9555_v32 }
 0x338   : > { %v7229_v7 = vmul.f32 %v7157_v44, %v6940_v1  ;;  %v7230_v8 = vmul.f32 %v7159_v24, %v6941_v61  ;;  %v7088_v37 = vpop.permute.xlu1 %7087  ;;  %v7391_v26 = vshll.u32 %v7249_v25, 16  ;;  %v7386_v21 = vsel %vm2748_vm4, %v7381_v29, %v7385_v49  ;;  %9082 = vmatprep.subr.bf16.mxu0 %v9556_v34 }
 0x339   : > { %v7160_v20 = vrot.slane %v7088_v37, 7  ;;  %9059 = vmatmul.mubr.bf16.gmra.mrb[0].mxu1 %v7386_v21  ;;  %v7389_v28 = vor.u32 %v7387_v17, %v7385_v49  ;;  %v7395_v22 = vshrl.u32 %v7249_v25, 16 }
 0x33a   : > { %v7250_v38 = vpack.c.bf16 %v7230_v8, %v7229_v7  ;;  %v7393_v57 = vrot.slane %v7391_v26, 1 }
 0x33b   : > { %v7161_v48 = vsel %vm2553_vm3, %v7158_v11, %v7160_v20  ;;  %v7163_v53 = vsel %vm2553_vm3, %v7160_v20, %v7162_v13  ;;  %v7237_v11 = vmul.f32 %v7170_v47, %v6948_v59  ;;  %9083 = vmatpush3.bf16.msra.mxu0 %v9556_v34 }
 0x33c   : > { %v7231_v2 = vmul.f32 %v7161_v48, %v6942_v50  ;;  %v7232_v31 = vmul.f32 %v7163_v53, %v6943_v36  ;;  %v7096_v4 = vpop.permute.xlu1 %7095  ;;  %v7394_v54 = vsel %vm2748_vm4, %v7389_v28, %v7393_v57  ;;  %v7399_v0 = vshll.u32 %v7250_v38, 16  ;;  %v9557_v50 = vld [vmem:[%s13337_s6 + $0x28] sm:$0xff]  }
 0x33d   : > { %v7164_v45 = vrot.slane %v7096_v4, 7  ;;  %9062 = vmatprep.mubr.bf16.mxu1 %v7394_v54  ;;  %v7397_v55 = vor.u32 %v7395_v22, %v7393_v57  ;;  %v7403_v9 = vshrl.u32 %v7250_v38, 16  ;;  %v7254_v60 = vpack.c.bf16 %v7237_v11, %v7237_v11  ;;  %9084 = vmatprep.subr.bf16.mxu0 %v9557_v50  ;;  %v9559_v38 = vld [vmem:[%s13337_s6 + $0x38] sm:$0xff]  }
 0x33e   : > { %v7251_v52 = vpack.c.bf16 %v7232_v31, %v7231_v2  ;;  %v7401_v33 = vrot.slane %v7399_v0, 1 }
 0x33f   : > { %v7165_v12 = vsel %vm2553_vm3, %v7162_v13, %v7164_v45  ;;  %v7167_v5 = vsel %vm2553_vm3, %v7164_v45, %v7166_v3  ;;  %v7431_v37 = vshll.u32 %v7254_v60, 16  ;;  %9085 = vmatpush3.bf16.msra.mxu0 %v9557_v50 }
 0x340   : > { %v7233_v18 = vmul.f32 %v7165_v12, %v6944_v62  ;;  %v7234_v63 = vmul.f32 %v7167_v5, %v6945_v14  ;;  %v7104_v30 = vpop.permute.xlu1 %7103  ;;  %v7407_v56 = vshll.u32 %v7251_v52, 16  ;;  %v7402_v23 = vsel %vm2748_vm4, %v7397_v55, %v7401_v33  ;;  %9086 = vmatprep.subr.bf16.mxu0 %v9558_v15  ;;  %v13170_v12 = vld [vmem:[%s13336_s5] ss:$0 sm:$0xff] }
 0x341   : > { %v7168_v43 = vrot.slane %v7104_v30, 7  ;;  %9063 = vmatmul.mubr.bf16.gmra.mrb[4].mxu1 %v7402_v23  ;;  %v7405_v40 = vor.u32 %v7403_v9, %v7401_v33  ;;  %v7411_v25 = vshrl.u32 %v7251_v52, 16  ;;  %v7433_v20 = vrot.slane %v7431_v37, 1 }
 0x342   : > { %v7252_v46 = vpack.c.bf16 %v7234_v63, %v7233_v18  ;;  %v7409_v6 = vrot.slane %v7407_v56, 1 }
 0x343   : > { %v7169_v35 = vsel %vm2553_vm3, %v7166_v3, %v7168_v43  ;;  %v7171_v51 = vsel %vm2553_vm3, %v7168_v43, %v7170_v47  ;;  %9087 = vmatpush3.bf16.msra.mxu0 %v9558_v15 }
 0x344   : > { %v7235_v19 = vmul.f32 %v7169_v35, %v6946_v42  ;;  %v7236_v39 = vmul.f32 %v7171_v51, %v6947_v41  ;;  %v7410_v16 = vsel %vm2748_vm4, %v7405_v40, %v7409_v6  ;;  %v7415_v1 = vshll.u32 %v7252_v46, 16  ;;  %9088 = vmatprep.subr.bf16.mxu0 %v9559_v38 }
 0x345   : > { %9066 = vmatprep.mubr.bf16.mxu1 %v7410_v16  ;;  %v7413_v10 = vor.u32 %v7411_v25, %v7409_v6  ;;  %v7419_v24 = vshrl.u32 %v7252_v46, 16 }
 0x346   : > { %v7253_v61 = vpack.c.bf16 %v7236_v39, %v7235_v19  ;;  %v7417_v44 = vrot.slane %v7415_v1, 1 }
 0x347   : > { %9089 = vmatpush3.bf16.msra.mxu0 %v9559_v38 }
 0x348   : > { %v7423_v29 = vshll.u32 %v7253_v61, 16  ;;  %v7418_v49 = vsel %vm2748_vm4, %v7413_v10, %v7417_v44  ;;  %v7421_v7 = vor.u32 %v7419_v24, %v7417_v44  ;;  %v7427_v17 = vshrl.u32 %v7253_v61, 16 }
 0x349   : > { %9067 = vmatmul.mubr.bf16.gmra.mrb[8].mxu1 %v7418_v49 }
 0x34a   : > { %v7425_v8 = vrot.slane %v7423_v29, 1 }
 0x34c   : > { %v7426_v26 = vsel %vm2748_vm4, %v7421_v7, %v7425_v8  ;;  %v7429_v13 = vor.u32 %v7427_v17, %v7425_v8 }
 0x34d   : > { %9070 = vmatprep.mubr.bf16.mxu1 %v7426_v26 }
 0x34e   : > { %v7434_v21 = vsel %vm2748_vm4, %v7429_v13, %v7433_v20 }
 0x34f   : > { %v13135_v36 = vpop.f32.mrb[48].mxu0 }
 0x350   : > { %v13137_v28 = vpop.f32.mrb[49].mxu0 }
 0x351   : > { %9071 = vmatmul.mubr.bf16.gmra.mrb[12].mxu1 %v7434_v21  ;;  %v13139_v57 = vpop.f32.mrb[50].mxu0 }
 0x352   : > { %v13141_v27 = vpop.f32.mrb[51].mxu0 }
 0x367   : > { %v13143_v48 = vpop.f32.mrb[52].mxu0 }
 0x368   : > { %v13145_v53 = vpop.f32.mrb[53].mxu0 }
 0x369   : > { %v13147_v62 = vpop.f32.mrb[54].mxu0 }
 0x36a   : > { %v13149_v2 = vpop.f32.mrb[55].mxu0 }
 0x380   : > { %v13151_v31 = vpop.f32.mrb[56].mxu0 }
 0x381   : > { %v13153_v4 = vpop.f32.mrb[57].mxu0 }
 0x382   : > { %v13155_v14 = vpop.f32.mrb[58].mxu0 }
 0x383   : > { %v13157_v54 = vpop.f32.mrb[59].mxu0 }
 0x390   : > { %v13159_v3 = vpop.f32.mrb[60].mxu0 }
 0x391   : > { %v13161_v45 = vpop.f32.mrb[61].mxu0 }
 0x392   : > { %v13163_v22 = vpop.f32.mrb[62].mxu0 }
 0x393   : > { %v13165_v0 = vpop.f32.mrb[63].mxu0 }
 0x3b3   : > { %v8804_v32 = vpop.f32.mrb[32].mxu0 }
 0x3b4   : > { %v3824_v59 = vpop.f32.mrb[33].mxu0 }
 0x3b5   : > { %v8805_v47 = vpop.f32.mrb[34].mxu0 }
 0x3b6   : > { %v3827_v52 = vpop.f32.mrb[35].mxu0 }
 0x3c8   : > { %v9044_v58 = vpop.f32.mrb[16].mxu1 }
 0x3c9   : > { %v9138_v5 = vadd.f32 %v9044_v58, %v8804_v32  ;;  %v7533_v55 = vpop.f32.mrb[17].mxu1 }
 0x3ca   : > { %v9139_v33 = vadd.f32 %v7533_v55, %v3824_v59  ;;  %v9045_v18 = vpop.f32.mrb[18].mxu1 }
 0x3cb   : > { %v7765_v63 = vadd.f32 %v9138_v5, %v13170_v12  ;;  %v9140_v30 = vadd.f32 %v9045_v18, %v8805_v47  ;;  %v7536_v9 = vpop.f32.mrb[19].mxu1 }
 0x3cc   : > { %v7763_v56 = vadd.f32 %v9139_v33, %v13170_v12  ;;  %v9141_v42 = vadd.f32 %v7536_v9, %v3827_v52 }
 0x3cd   : > { %v7766_v43 = vadd.f32 %v9140_v30, %v13170_v12  ;;  %v7797_v34 = vmax.f32 %v7765_v63, 0.0 }
 0x3ce   : > { %v7764_v23 = vadd.f32 %v9141_v42, %v13170_v12  ;;  %v7795_v41 = vmax.f32 %v7763_v56, 0.0 }
 0x3cf   : > { %v7798_v46 = vmax.f32 %v7766_v43, 0.0 }
 0x3d0   : > { %v7796_v40 = vmax.f32 %v7764_v23, 0.0 }
 0x3d1   : > { %v7828_v6 = vpack.c.bf16 %v7798_v46, %v7797_v34 }
 0x3d2   : > { %v7827_v11 = vpack.c.bf16 %v7796_v40, %v7795_v41 }
 0x3d4   : > { %9090 = vmatprep.mubr.bf16.mxu0 %v7827_v11 }
 0x3d5   : > { %9091 = vmatmul.mubr.bf16.vlgmr.msra.gmra.mrb[64].mxu0 %v7828_v6 }
 0x3d8   : > { %v8808_v35 = vpop.f32.mrb[36].mxu0 }
 0x3d9   : > { %v3840_v51 = vpop.f32.mrb[37].mxu0 }
 0x3da   : > { %v8809_v19 = vpop.f32.mrb[38].mxu0 }
 0x3db   : > { %v3843_v39 = vpop.f32.mrb[39].mxu0 }
 0x3e2   : > { %v9048_v16 = vpop.f32.mrb[20].mxu1 }
 0x3e3   : > { %v9142_v25 = vadd.f32 %v9048_v16, %v8808_v35  ;;  %v7549_v1 = vpop.f32.mrb[21].mxu1 }
 0x3e4   : > { %v9143_v61 = vadd.f32 %v7549_v1, %v3840_v51  ;;  %v9049_v60 = vpop.f32.mrb[22].mxu1 }
 0x3e5   : > { %v7769_v10 = vadd.f32 %v9142_v25, %v13170_v12  ;;  %v9144_v44 = vadd.f32 %v9049_v60, %v8809_v19  ;;  %v7552_v24 = vpop.f32.mrb[23].mxu1 }
 0x3e6   : > { %v7767_v29 = vadd.f32 %v9143_v61, %v13170_v12  ;;  %v9145_v49 = vadd.f32 %v7552_v24, %v3843_v39 }
 0x3e7   : > { %v7770_v7 = vadd.f32 %v9144_v44, %v13170_v12  ;;  %v7801_v37 = vmax.f32 %v7769_v10, 0.0 }
 0x3e8   : > { %v7768_v8 = vadd.f32 %v9145_v49, %v13170_v12  ;;  %v7799_v26 = vmax.f32 %v7767_v29, 0.0 }
 0x3e9   : > { %v7802_v17 = vmax.f32 %v7770_v7, 0.0 }
 0x3ea   : > { %v7800_v13 = vmax.f32 %v7768_v8, 0.0 }
 0x3eb   : > { %v7830_v50 = vpack.c.bf16 %v7802_v17, %v7801_v37 }
 0x3ec   : > { %v7829_v20 = vpack.c.bf16 %v7800_v13, %v7799_v26 }
 0x3ee   : > { %v8812_v21 = vpop.f32.mrb[40].mxu0  ;;  %9094 = vmatprep.mubr.bf16.mxu0 %v7829_v20 }
 0x3ef   : > { %v3856_v15 = vpop.f32.mrb[41].mxu0  ;;  %9095 = vmatmul.mubr.bf16.gmra.mrb[68].mxu0 %v7830_v50 }
 0x3f0   : > { %v8813_v38 = vpop.f32.mrb[42].mxu0 }
 0x3f1   : > { %v3859_v32 = vpop.f32.mrb[43].mxu0 }
 0x3f6   : > { %v8816_v59 = vpop.f32.mrb[44].mxu0 }
 0x3f7   : > { %v3872_v47 = vpop.f32.mrb[45].mxu0 }
 0x3f8   : > { %v8817_v52 = vpop.f32.mrb[46].mxu0  ;;  %v9052_v58 = vpop.f32.mrb[24].mxu1 }
 0x3f9   : > { %v3875_v5 = vpop.f32.mrb[47].mxu0  ;;  %v9146_v55 = vadd.f32 %v9052_v58, %v8812_v21  ;;  %v7565_v33 = vpop.f32.mrb[25].mxu1 }
 0x3fa   : > { %v9147_v18 = vadd.f32 %v7565_v33, %v3856_v15  ;;  %v9053_v63 = vpop.f32.mrb[26].mxu1 }
 0x3fb   : > { %v7773_v30 = vadd.f32 %v9146_v55, %v13170_v12  ;;  %v9148_v9 = vadd.f32 %v9053_v63, %v8813_v38  ;;  %v7568_v56 = vpop.f32.mrb[27].mxu1 }
 0x3fc   : > { %v7771_v42 = vadd.f32 %v9147_v18, %v13170_v12  ;;  %v9149_v43 = vadd.f32 %v7568_v56, %v3859_v32 }
 0x3fd   : > { %v7774_v23 = vadd.f32 %v9148_v9, %v13170_v12  ;;  %v7805_v46 = vmax.f32 %v7773_v30, 0.0 }
 0x3fe   : > { %v7772_v34 = vadd.f32 %v9149_v43, %v13170_v12  ;;  %v7803_v40 = vmax.f32 %v7771_v42, 0.0 }
 0x3ff   : > { %v7806_v41 = vmax.f32 %v7774_v23, 0.0 }
 0x400   : > { %v7804_v6 = vmax.f32 %v7772_v34, 0.0 }
 0x401   : > { %v7832_v11 = vpack.c.bf16 %v7806_v41, %v7805_v46 }
 0x402   : > { %v7831_v35 = vpack.c.bf16 %v7804_v6, %v7803_v40 }
 0x404   : > { %9098 = vmatprep.mubr.bf16.mxu0 %v7831_v35  ;;  %v9056_v51 = vpop.f32.mrb[28].mxu1 }
 0x405   : > { %9099 = vmatmul.mubr.bf16.gmra.mrb[72].mxu0 %v7832_v11  ;;  %v9150_v19 = vadd.f32 %v9056_v51, %v8816_v59  ;;  %v7581_v39 = vpop.f32.mrb[29].mxu1 }
 0x406   : > { %v9151_v16 = vadd.f32 %v7581_v39, %v3872_v47  ;;  %v9057_v25 = vpop.f32.mrb[30].mxu1 }
 0x407   : > { %v7777_v1 = vadd.f32 %v9150_v19, %v13170_v12  ;;  %v9152_v61 = vadd.f32 %v9057_v25, %v8817_v52  ;;  %v7584_v60 = vpop.f32.mrb[31].mxu1 }
 0x408   : > { %v7775_v10 = vadd.f32 %v9151_v16, %v13170_v12  ;;  %v9153_v44 = vadd.f32 %v7584_v60, %v3875_v5 }
 0x409   : > { %v7778_v24 = vadd.f32 %v9152_v61, %v13170_v12  ;;  %v7809_v49 = vmax.f32 %v7777_v1, 0.0 }
 0x40a   : > { %v7776_v29 = vadd.f32 %v9153_v44, %v13170_v12  ;;  %v7807_v8 = vmax.f32 %v7775_v10, 0.0 }
 0x40b   : > { %v7810_v7 = vmax.f32 %v7778_v24, 0.0 }
 0x40c   : > { %v7808_v37 = vmax.f32 %v7776_v29, 0.0  ;;  %v9060_v17 = vpop.f32.mrb[0].mxu1 }
 0x40d   : > { %v9154_v26 = vadd.f32 %v9060_v17, %v13135_v36  ;;  %v7597_v13 = vpop.f32.mrb[1].mxu1  ;;  %v7834_v50 = vpack.c.bf16 %v7810_v7, %v7809_v49 }
 0x40e   : > { %v9155_v20 = vadd.f32 %v7597_v13, %v13137_v28  ;;  %v9061_v21 = vpop.f32.mrb[2].mxu1  ;;  %v7833_v15 = vpack.c.bf16 %v7808_v37, %v7807_v8 }
 0x40f   : > { %v7781_v38 = vadd.f32 %v9154_v26, %v13170_v12  ;;  %v9156_v32 = vadd.f32 %v9061_v21, %v13139_v57  ;;  %v7600_v59 = vpop.f32.mrb[3].mxu1 }
 0x410   : > { %v7779_v47 = vadd.f32 %v9155_v20, %v13170_v12  ;;  %v9157_v52 = vadd.f32 %v7600_v59, %v13141_v27  ;;  %9102 = vmatprep.mubr.bf16.mxu0 %v7833_v15 }
 0x411   : > { %v7782_v58 = vadd.f32 %v9156_v32, %v13170_v12  ;;  %9103 = vmatmul.mubr.bf16.gmra.mrb[76].mxu0 %v7834_v50  ;;  %v7813_v5 = vmax.f32 %v7781_v38, 0.0 }
 0x412   : > { %v7780_v36 = vadd.f32 %v9157_v52, %v13170_v12  ;;  %v7811_v28 = vmax.f32 %v7779_v47, 0.0 }
 0x413   : > { %v7814_v55 = vmax.f32 %v7782_v58, 0.0 }
 0x414   : > { %v7812_v33 = vmax.f32 %v7780_v36, 0.0  ;;  %v9064_v18 = vpop.f32.mrb[4].mxu1 }
 0x415   : > { %v9158_v63 = vadd.f32 %v9064_v18, %v13143_v48  ;;  %v7613_v30 = vpop.f32.mrb[5].mxu1  ;;  %v7836_v57 = vpack.c.bf16 %v7814_v55, %v7813_v5 }
 0x416   : > { %v9159_v9 = vadd.f32 %v7613_v30, %v13145_v53  ;;  %v9065_v56 = vpop.f32.mrb[6].mxu1  ;;  %v7835_v42 = vpack.c.bf16 %v7812_v33, %v7811_v28  ;;  %v9572_v28 = vld [vmem:[%s9745_s15 + $0x10] sm:$0xff]  ;;  %v9573_v30 = vld [vmem:[%s9745_s15] sm:$0xff] }
 0x417   : > { %v7785_v27 = vadd.f32 %v9158_v63, %v13170_v12  ;;  %v9160_v43 = vadd.f32 %v9065_v56, %v13147_v62  ;;  %v7616_v23 = vpop.f32.mrb[7].mxu1 }
 0x418   : > { %v7783_v34 = vadd.f32 %v9159_v9, %v13170_v12  ;;  %v9161_v46 = vadd.f32 %v7616_v23, %v13149_v2  ;;  %9106 = vmatprep.mubr.bf16.mxu0 %v7835_v42  ;;  %v9574_v42 = vld [vmem:[%s9745_s15 + $0x18] sm:$0xff]  ;;  %v9575_v23 = vld [vmem:[%s9745_s15 + $0x8] sm:$0xff] }
 0x419   : > { %v7786_v41 = vadd.f32 %v9160_v43, %v13170_v12  ;;  %9107 = vmatmul.mubr.bf16.gmra.mrb[80].mxu0 %v7836_v57  ;;  %v7817_v40 = vmax.f32 %v7785_v27, 0.0 }
 0x41a   : > { %v7784_v48 = vadd.f32 %v9161_v46, %v13170_v12  ;;  %v7815_v53 = vmax.f32 %v7783_v34, 0.0 }
 0x41b   : > { %v7818_v6 = vmax.f32 %v7786_v41, 0.0 }
 0x41c   : > { %v7816_v11 = vmax.f32 %v7784_v48, 0.0  ;;  %v9068_v35 = vpop.f32.mrb[8].mxu1 }
 0x41d   : > { %v9162_v51 = vadd.f32 %v9068_v35, %v13151_v31  ;;  %v7629_v19 = vpop.f32.mrb[9].mxu1  ;;  %v7838_v62 = vpack.c.bf16 %v7818_v6, %v7817_v40  ;;  %v9576_v35 = vld [vmem:[%s9745_s15 + $0x30] sm:$0xff] }
 0x41e   : > { %v9163_v39 = vadd.f32 %v7629_v19, %v13153_v4  ;;  %v9069_v16 = vpop.f32.mrb[10].mxu1  ;;  %v7837_v25 = vpack.c.bf16 %v7816_v11, %v7815_v53 }
 0x41f   : > { %v7789_v2 = vadd.f32 %v9162_v51, %v13170_v12  ;;  %v9164_v1 = vadd.f32 %v9069_v16, %v13155_v14  ;;  %v7632_v61 = vpop.f32.mrb[11].mxu1 }
 0x420   : > { %v7787_v60 = vadd.f32 %v9163_v39, %v13170_v12  ;;  %v9165_v10 = vadd.f32 %v7632_v61, %v13157_v54  ;;  %9110 = vmatprep.mubr.bf16.mxu0 %v7837_v25  ;;  %v9577_v39 = vld [vmem:[%s9745_s15 + $0x20] sm:$0xff] }
 0x421   : > { %v7790_v44 = vadd.f32 %v9164_v1, %v13170_v12  ;;  %9111 = vmatmul.mubr.bf16.gmra.mrb[84].mxu0 %v7838_v62  ;;  %v7821_v24 = vmax.f32 %v7789_v2, 0.0  ;;  %v9578_v1 = vld [vmem:[%s9745_s15 + $0x38] sm:$0xff] }
 0x422   : > { %v7788_v31 = vadd.f32 %v9165_v10, %v13170_v12  ;;  %v7819_v4 = vmax.f32 %v7787_v60, 0.0  ;;  %v9579_v10 = vld [vmem:[%s9745_s15 + $0x28] sm:$0xff] }
 0x423   : > { %v7822_v29 = vmax.f32 %v7790_v44, 0.0 }
 0x424   : > { %v7820_v49 = vmax.f32 %v7788_v31, 0.0  ;;  %v9072_v7 = vpop.f32.mrb[12].mxu1 }
 0x425   : > { %v9166_v8 = vadd.f32 %v9072_v7, %v13159_v3  ;;  %v7645_v37 = vpop.f32.mrb[13].mxu1  ;;  %v7840_v14 = vpack.c.bf16 %v7822_v29, %v7821_v24 }
 0x426   : > { %v9167_v17 = vadd.f32 %v7645_v37, %v13161_v45  ;;  %v9073_v26 = vpop.f32.mrb[14].mxu1  ;;  %v7839_v13 = vpack.c.bf16 %v7820_v49, %v7819_v4  ;;  %v9580_v37 = vld [vmem:[%s9745_s15 + $0x50] sm:$0xff] }
 0x427   : > { %v7793_v54 = vadd.f32 %v9166_v8, %v13170_v12  ;;  %v9168_v50 = vadd.f32 %v9073_v26, %v13163_v22  ;;  %v7648_v20 = vpop.f32.mrb[15].mxu1 }
 0x428   : > { %v7791_v21 = vadd.f32 %v9167_v17, %v13170_v12  ;;  %v9169_v15 = vadd.f32 %v7648_v20, %v13165_v0  ;;  %9114 = vmatprep.mubr.bf16.mxu0 %v7839_v13  ;;  %v13223_v0 = vld [vmem:[%s13338_s7] ss:$0 sm:$0xff] }
 0x429   : > { %v7794_v38 = vadd.f32 %v9168_v50, %v13170_v12  ;;  %9115 = vmatmul.mubr.bf16.gmra.mrb[88].mxu0 %v7840_v14  ;;  %v7825_v32 = vmax.f32 %v7793_v54, 0.0  ;;  %v9581_v13 = vld [vmem:[%s9745_s15 + $0x40] sm:$0xff] }
 0x42a   : > { %v7792_v3 = vadd.f32 %v9169_v15, %v13170_v12  ;;  %v7823_v59 = vmax.f32 %v7791_v21, 0.0  ;;  %v9582_v21 = vld [vmem:[%s9745_s15 + $0x58] sm:$0xff] }
 0x42b   : > { %v7826_v45 = vmax.f32 %v7794_v38, 0.0 }
 0x42c   : > { %v7824_v47 = vmax.f32 %v7792_v3, 0.0  ;;  %v9583_v3 = vld [vmem:[%s9745_s15 + $0x48] sm:$0xff] }
 0x42d   : > { %v7842_v52 = vpack.c.bf16 %v7826_v45, %v7825_v32 }
 0x42e   : > { %v7841_v22 = vpack.c.bf16 %v7824_v47, %v7823_v59 }
 0x430   : > { %9118 = vmatprep.mubr.bf16.mxu0 %v7841_v22 }
 0x431   : > { %9119 = vmatmul.mubr.bf16.gmra.mrb[92].mxu0 %v7842_v52 }
 0x4a8   : > { %v9092_v58 = vpop.f32.mrb[64].mxu0 }
 0x4a9   : > { %v7957_v36 = vadd.f32 %v9092_v58, %v13223_v0  ;;  %v7948_v12 = vpop.f32.mrb[65].mxu0 }
 0x4aa   : > { %v7949_v5 = vadd.f32 %v13223_v0, %v7948_v12  ;;  %v9093_v55 = vpop.f32.mrb[66].mxu0  ;;  %v9584_v12 = vld [vmem:[%s9745_s15 + $0x70] sm:$0xff] }
 0x4ab   : > { %v8077_v33 = vadd.f32 %v9572_v28, %v7957_v36  ;;  %v7960_v18 = vadd.f32 %v9093_v55, %v13223_v0  ;;  %v7951_v63 = vpop.f32.mrb[67].mxu0 }
 0x4ac   : > { %v8075_v57 = vadd.f32 %v9573_v30, %v7949_v5  ;;  %v7952_v9 = vadd.f32 %v13223_v0, %v7951_v63 }
 0x4ad   : > { %v8109_v56 = vmax.f32 %v8077_v33, 0.0  ;;  %v8078_v27 = vadd.f32 %v9574_v42, %v7960_v18  ;;  %v9585_v33 = vld [vmem:[%s9745_s15 + $0x60] sm:$0xff]  ;;  %v9587_v42 = vld [vmem:[%s9745_s15 + $0x68] sm:$0xff] }
 0x4ae   : > { %v8107_v43 = vmax.f32 %v8075_v57, 0.0  ;;  %v8076_v34 = vadd.f32 %v9575_v23, %v7952_v9  ;;  %v9586_v57 = vld [vmem:[%s9745_s15 + $0x78] sm:$0xff] }
 0x4af   : > { %8141 = vst [vmem:[%s13234_s11 + $0x10] sm:$0xff] %v8109_v56  ;;  %v8110_v46 = vmax.f32 %v8078_v27, 0.0 }
 0x4b0   : > { %8139 = vst [vmem:[%s13234_s11] sm:$0xff] %v8107_v43  ;;  %v8108_v41 = vmax.f32 %v8076_v34, 0.0 }
 0x4b1   : > { %8142 = vst [vmem:[%s13234_s11 + $0x18] sm:$0xff] %v8110_v46 }
 0x4b2   : > { %8140 = vst [vmem:[%s13234_s11 + $0x8] sm:$0xff] %v8108_v41 }
 0x4c2   : > { %v9096_v48 = vpop.f32.mrb[68].mxu0 }
 0x4c3   : > { %v7973_v40 = vadd.f32 %v9096_v48, %v13223_v0  ;;  %v7964_v6 = vpop.f32.mrb[69].mxu0 }
 0x4c4   : > { %v7965_v53 = vadd.f32 %v13223_v0, %v7964_v6  ;;  %v9097_v11 = vpop.f32.mrb[70].mxu0  ;;  %v9588_v6 = vld [vmem:[%s9745_s15 + $0x90] sm:$0xff] }
 0x4c5   : > { %v8081_v51 = vadd.f32 %v9576_v35, %v7973_v40  ;;  %v7976_v19 = vadd.f32 %v9097_v11, %v13223_v0  ;;  %v7967_v62 = vpop.f32.mrb[71].mxu0 }
 0x4c6   : > { %v8079_v16 = vadd.f32 %v9577_v39, %v7965_v53  ;;  %v7968_v25 = vadd.f32 %v13223_v0, %v7967_v62 }
 0x4c7   : > { %v8113_v2 = vmax.f32 %v8081_v51, 0.0  ;;  %v8082_v61 = vadd.f32 %v9578_v1, %v7976_v19  ;;  %v9589_v51 = vld [vmem:[%s9745_s15 + $0x80] sm:$0xff]  ;;  %v9591_v1 = vld [vmem:[%s9745_s15 + $0x88] sm:$0xff] }
 0x4c8   : > { %v8111_v60 = vmax.f32 %v8079_v16, 0.0  ;;  %v8080_v44 = vadd.f32 %v9579_v10, %v7968_v25  ;;  %v9590_v16 = vld [vmem:[%s9745_s15 + $0x98] sm:$0xff] }
 0x4c9   : > { %8145 = vst [vmem:[%s13234_s11 + $0x30] sm:$0xff] %v8113_v2  ;;  %v8114_v31 = vmax.f32 %v8082_v61, 0.0 }
 0x4ca   : > { %8143 = vst [vmem:[%s13234_s11 + $0x20] sm:$0xff] %v8111_v60  ;;  %v8112_v24 = vmax.f32 %v8080_v44, 0.0 }
 0x4cb   : > { %8146 = vst [vmem:[%s13234_s11 + $0x38] sm:$0xff] %v8114_v31 }
 0x4cc   : > { %8144 = vst [vmem:[%s13234_s11 + $0x28] sm:$0xff] %v8112_v24 }
 0x4d8   : > { %v9100_v29 = vpop.f32.mrb[72].mxu0 }
 0x4d9   : > { %v7989_v4 = vadd.f32 %v9100_v29, %v13223_v0  ;;  %v7980_v49 = vpop.f32.mrb[73].mxu0 }
 0x4da   : > { %v7981_v7 = vadd.f32 %v13223_v0, %v7980_v49  ;;  %v9101_v8 = vpop.f32.mrb[74].mxu0  ;;  %v9592_v49 = vld [vmem:[%s9745_s15 + $0xb0] sm:$0xff] }
 0x4db   : > { %v8085_v14 = vadd.f32 %v9580_v37, %v7989_v4  ;;  %v7992_v17 = vadd.f32 %v9101_v8, %v13223_v0  ;;  %v7983_v26 = vpop.f32.mrb[75].mxu0 }
 0x4dc   : > { %v8083_v54 = vadd.f32 %v9581_v13, %v7981_v7  ;;  %v7984_v50 = vadd.f32 %v13223_v0, %v7983_v26 }
 0x4dd   : > { %v8117_v20 = vmax.f32 %v8085_v14, 0.0  ;;  %v8086_v15 = vadd.f32 %v9582_v21, %v7992_v17  ;;  %v9593_v14 = vld [vmem:[%s9745_s15 + $0xa0] sm:$0xff]  ;;  %v9595_v21 = vld [vmem:[%s9745_s15 + $0xa8] sm:$0xff] }
 0x4de   : > { %v8115_v38 = vmax.f32 %v8083_v54, 0.0  ;;  %v8084_v32 = vadd.f32 %v9583_v3, %v7984_v50  ;;  %v9594_v54 = vld [vmem:[%s9745_s15 + $0xb8] sm:$0xff] }
 0x4df   : > { %8149 = vst [vmem:[%s13234_s11 + $0x50] sm:$0xff] %v8117_v20  ;;  %v8118_v45 = vmax.f32 %v8086_v15, 0.0 }
 0x4e0   : > { %8147 = vst [vmem:[%s13234_s11 + $0x40] sm:$0xff] %v8115_v38  ;;  %v8116_v59 = vmax.f32 %v8084_v32, 0.0 }
 0x4e1   : > { %8150 = vst [vmem:[%s13234_s11 + $0x58] sm:$0xff] %v8118_v45 }
 0x4e2   : > { %8148 = vst [vmem:[%s13234_s11 + $0x48] sm:$0xff] %v8116_v59 }
 0x4e4   : > { %v9104_v47 = vpop.f32.mrb[76].mxu0 }
 0x4e5   : > { %v8005_v52 = vadd.f32 %v9104_v47, %v13223_v0  ;;  %v7996_v22 = vpop.f32.mrb[77].mxu0 }
 0x4e6   : > { %v7997_v58 = vadd.f32 %v13223_v0, %v7996_v22  ;;  %v9105_v36 = vpop.f32.mrb[78].mxu0  ;;  %v9596_v22 = vld [vmem:[%s9745_s15 + $0xd0] sm:$0xff] }
 0x4e7   : > { %v8089_v5 = vadd.f32 %v9584_v12, %v8005_v52  ;;  %v8008_v55 = vadd.f32 %v9105_v36, %v13223_v0  ;;  %v7999_v28 = vpop.f32.mrb[79].mxu0 }
 0x4e8   : > { %v8087_v18 = vadd.f32 %v9585_v33, %v7997_v58  ;;  %v8000_v63 = vadd.f32 %v13223_v0, %v7999_v28 }
 0x4e9   : > { %v8121_v30 = vmax.f32 %v8089_v5, 0.0  ;;  %v8090_v9 = vadd.f32 %v9586_v57, %v8008_v55  ;;  %v9597_v5 = vld [vmem:[%s9745_s15 + $0xc0] sm:$0xff]  ;;  %v9599_v57 = vld [vmem:[%s9745_s15 + $0xc8] sm:$0xff] }
 0x4ea   : > { %v8119_v56 = vmax.f32 %v8087_v18, 0.0  ;;  %v8088_v27 = vadd.f32 %v9587_v42, %v8000_v63  ;;  %v9598_v18 = vld [vmem:[%s9745_s15 + $0xd8] sm:$0xff] }
 0x4eb   : > { %8153 = vst [vmem:[%s13234_s11 + $0x70] sm:$0xff] %v8121_v30  ;;  %v8122_v43 = vmax.f32 %v8090_v9, 0.0 }
 0x4ec   : > { %8151 = vst [vmem:[%s13234_s11 + $0x60] sm:$0xff] %v8119_v56  ;;  %v8120_v23 = vmax.f32 %v8088_v27, 0.0  ;;  %v9108_v34 = vpop.f32.mrb[80].mxu0 }
 0x4ed   : > { %8154 = vst [vmem:[%s13234_s11 + $0x78] sm:$0xff] %v8122_v43  ;;  %v8021_v46 = vadd.f32 %v9108_v34, %v13223_v0  ;;  %v8012_v41 = vpop.f32.mrb[81].mxu0 }
 0x4ee   : > { %8152 = vst [vmem:[%s13234_s11 + $0x68] sm:$0xff] %v8120_v23  ;;  %v8013_v48 = vadd.f32 %v13223_v0, %v8012_v41  ;;  %v9109_v40 = vpop.f32.mrb[82].mxu0  ;;  %v9600_v41 = vld [vmem:[%s9745_s15 + $0xf0] sm:$0xff] }
 0x4ef   : > { %v8093_v53 = vadd.f32 %v9588_v6, %v8021_v46  ;;  %v8024_v11 = vadd.f32 %v9109_v40, %v13223_v0  ;;  %v8015_v35 = vpop.f32.mrb[83].mxu0 }
 0x4f0   : > { %v8091_v19 = vadd.f32 %v9589_v51, %v8013_v48  ;;  %v8016_v62 = vadd.f32 %v13223_v0, %v8015_v35 }
 0x4f1   : > { %v8125_v39 = vmax.f32 %v8093_v53, 0.0  ;;  %v8094_v25 = vadd.f32 %v9590_v16, %v8024_v11  ;;  %v9601_v53 = vld [vmem:[%s9745_s15 + $0xe0] sm:$0xff]  ;;  %v9603_v16 = vld [vmem:[%s9745_s15 + $0xe8] sm:$0xff] }
 0x4f2   : > { %v8123_v2 = vmax.f32 %v8091_v19, 0.0  ;;  %v8092_v61 = vadd.f32 %v9591_v1, %v8016_v62  ;;  %v9602_v19 = vld [vmem:[%s9745_s15 + $0xf8] sm:$0xff] }
 0x4f3   : > { %8157 = vst [vmem:[%s13234_s11 + $0x90] sm:$0xff] %v8125_v39  ;;  %v8126_v60 = vmax.f32 %v8094_v25, 0.0 }
 0x4f4   : > { %8155 = vst [vmem:[%s13234_s11 + $0x80] sm:$0xff] %v8123_v2  ;;  %v8124_v10 = vmax.f32 %v8092_v61, 0.0  ;;  %v9112_v44 = vpop.f32.mrb[84].mxu0 }
 0x4f5   : > { %8158 = vst [vmem:[%s13234_s11 + $0x98] sm:$0xff] %v8126_v60  ;;  %v8037_v31 = vadd.f32 %v9112_v44, %v13223_v0  ;;  %v8028_v24 = vpop.f32.mrb[85].mxu0 }
 0x4f6   : > { %8156 = vst [vmem:[%s13234_s11 + $0x88] sm:$0xff] %v8124_v10  ;;  %v8029_v29 = vadd.f32 %v13223_v0, %v8028_v24  ;;  %v9113_v4 = vpop.f32.mrb[86].mxu0 }
 0x4f7   : > { %v8097_v7 = vadd.f32 %v9592_v49, %v8037_v31  ;;  %v8040_v8 = vadd.f32 %v9113_v4, %v13223_v0  ;;  %v8031_v37 = vpop.f32.mrb[87].mxu0 }
 0x4f8   : > { %v8095_v17 = vadd.f32 %v9593_v14, %v8029_v29  ;;  %v8032_v26 = vadd.f32 %v13223_v0, %v8031_v37 }
 0x4f9   : > { %v8129_v13 = vmax.f32 %v8097_v7, 0.0  ;;  %v8098_v50 = vadd.f32 %v9594_v54, %v8040_v8 }
 0x4fa   : > { %v8127_v20 = vmax.f32 %v8095_v17, 0.0  ;;  %v8096_v15 = vadd.f32 %v9595_v21, %v8032_v26 }
 0x4fb   : > { %8161 = vst [vmem:[%s13234_s11 + $0xb0] sm:$0xff] %v8129_v13  ;;  %v8130_v38 = vmax.f32 %v8098_v50, 0.0 }
 0x4fc   : > { %8159 = vst [vmem:[%s13234_s11 + $0xa0] sm:$0xff] %v8127_v20  ;;  %v8128_v3 = vmax.f32 %v8096_v15, 0.0  ;;  %v9116_v32 = vpop.f32.mrb[88].mxu0 }
 0x4fd   : > { %8162 = vst [vmem:[%s13234_s11 + $0xb8] sm:$0xff] %v8130_v38  ;;  %v8053_v45 = vadd.f32 %v9116_v32, %v13223_v0  ;;  %v8044_v59 = vpop.f32.mrb[89].mxu0 }
 0x4fe   : > { %8160 = vst [vmem:[%s13234_s11 + $0xa8] sm:$0xff] %v8128_v3  ;;  %v8045_v47 = vadd.f32 %v13223_v0, %v8044_v59  ;;  %v9117_v52 = vpop.f32.mrb[90].mxu0 }
 0x4ff   : > { %v8101_v58 = vadd.f32 %v9596_v22, %v8053_v45  ;;  %v8056_v36 = vadd.f32 %v9117_v52, %v13223_v0  ;;  %v8047_v12 = vpop.f32.mrb[91].mxu0 }
 0x500   : > { %v8099_v55 = vadd.f32 %v9597_v5, %v8045_v47  ;;  %v8048_v28 = vadd.f32 %v13223_v0, %v8047_v12 }
 0x501   : > { %v8133_v33 = vmax.f32 %v8101_v58, 0.0  ;;  %v8102_v63 = vadd.f32 %v9598_v18, %v8056_v36 }
 0x502   : > { %v8131_v30 = vmax.f32 %v8099_v55, 0.0  ;;  %v8100_v9 = vadd.f32 %v9599_v57, %v8048_v28 }
 0x503   : > { %8165 = vst [vmem:[%s13234_s11 + $0xd0] sm:$0xff] %v8133_v33  ;;  %v8134_v56 = vmax.f32 %v8102_v63, 0.0 }
 0x504   : > { %8163 = vst [vmem:[%s13234_s11 + $0xc0] sm:$0xff] %v8131_v30  ;;  %v8132_v42 = vmax.f32 %v8100_v9, 0.0  ;;  %v9120_v27 = vpop.f32.mrb[92].mxu0 }
 0x505   : > { %8166 = vst [vmem:[%s13234_s11 + $0xd8] sm:$0xff] %v8134_v56  ;;  %v8069_v43 = vadd.f32 %v9120_v27, %v13223_v0  ;;  %v8060_v23 = vpop.f32.mrb[93].mxu0 }
 0x506   : > { %8164 = vst [vmem:[%s13234_s11 + $0xc8] sm:$0xff] %v8132_v42  ;;  %v8061_v34 = vadd.f32 %v13223_v0, %v8060_v23  ;;  %v9121_v46 = vpop.f32.mrb[94].mxu0 }
 0x507   : > { %v8105_v48 = vadd.f32 %v9600_v41, %v8069_v43  ;;  %v8072_v40 = vadd.f32 %v9121_v46, %v13223_v0  ;;  %v8063_v6 = vpop.f32.mrb[95].mxu0 }
 0x508   : > { %v8103_v11 = vadd.f32 %v9601_v53, %v8061_v34  ;;  %v8064_v35 = vadd.f32 %v13223_v0, %v8063_v6 }
 0x509   : > { %v8137_v51 = vmax.f32 %v8105_v48, 0.0  ;;  %v8106_v62 = vadd.f32 %v9602_v19, %v8072_v40 }
 0x50a   : > { %v8135_v39 = vmax.f32 %v8103_v11, 0.0  ;;  %v8104_v25 = vadd.f32 %v9603_v16, %v8064_v35 }
 0x50b   : > { %8169 = vst [vmem:[%s13234_s11 + $0xf0] sm:$0xff] %v8137_v51  ;;  %v8138_v2 = vmax.f32 %v8106_v62, 0.0 }
 0x50c   : > { %8167 = vst [vmem:[%s13234_s11 + $0xe0] sm:$0xff] %v8135_v39  ;;  %v8136_v1 = vmax.f32 %v8104_v25, 0.0 }
 0x50d   : > { %8170 = vst [vmem:[%s13234_s11 + $0xf8] sm:$0xff] %v8138_v2 }
 0x50e   : > { %8168 = vst [vmem:[%s13234_s11 + $0xe8] sm:$0xff] %v8136_v1 }
 0x50f PF: > { %s18_s27 = sadd.s32 1, %s9610_s27  }
 0x510   : > { %p15_p4 = scmp.ge.s32.totalorder %s18_s27, 4  }
 0x512   :  { %17 = sbr.rel (!%p15_p4) target bundleno = 1 (0x1), region = 82 }

</bundles_post_ra>
